<compile_context>
chip_gen: v5e
topology: v5e:2x2
jax: 0.10.0
libtpu: 0.0.40
codegen_flags: <defaults>
</compile_context>

<pallas_src>
import functools
import math

import jax
import jax.numpy as jnp
from jax import lax
from jax.experimental import pallas as pl
from jax.experimental.pallas import tpu as pltpu


def _attention_kernel(x_ref, wqkv_t_ref, wproj_ref, bproj_ref, o_ref, *,
                      bb, seq, num_heads, head_dim, mxu_dtype):
    """One grid step = `bb` packed batch elements (rows = bb * seq tokens)."""
    C = num_heads * head_dim
    rows = bb * seq

    # --- fused QKV projection, channel-major output (3C, rows) --------------
    # wqkv_t is the pre-transposed weight (3C, C) with the softmax scale
    # already folded into its Q rows: no in-kernel transpose / scale needed.
    qkv_t = lax.dot_general(
        wqkv_t_ref[...], x_ref[...],
        dimension_numbers=(((1,), (1,)), ((), ())),      # contract over C
        preferred_element_type=jnp.float32)              # (3C, rows), f32 accum

    # --- head-major views: pure sublane splits, no lane shuffles ------------
    def heads(t):                                        # (C, rows) -> (H, hd, rows)
        return t.reshape(num_heads, head_dim, rows)

    q_m = jnp.swapaxes(heads(qkv_t[:C]), 1, 2).astype(mxu_dtype)   # (H, rows, hd)
    k_t = heads(qkv_t[C:2 * C]).astype(mxu_dtype)                  # (H, hd, rows)
    v_t = heads(qkv_t[2 * C:]).astype(mxu_dtype)                   # (H, hd, rows)

    # --- all heads (and all packed batches) in one batched matmul -----------
    s = jnp.einsum("hqd,hdk->hqk", q_m, k_t,
                   preferred_element_type=jnp.float32)   # (H, rows, rows)

    if bb > 1:
        # Block-diagonal packing mask: tokens only attend within their own
        # batch element.
        bi = lax.broadcasted_iota(jnp.int32, (bb, seq, rows), 0).reshape(rows, rows)
        s = jnp.where(bi == bi.T, s, -1e30)

    # --- numerically stable softmax over keys (kept in f32) -----------------
    s = s - jnp.max(s, axis=-1, keepdims=True)
    p = jnp.exp(s)
    p = p * pl.reciprocal(jnp.sum(p, axis=-1, keepdims=True), approx=True)
    # attn_drop has rate 0.0 -> identity.

    # --- attn @ v, channel-major result: head concat is a free reshape ------
    ctx_t = jnp.einsum("hdk,hqk->hdq", v_t, p.astype(mxu_dtype),
                       preferred_element_type=jnp.float32)         # (H, hd, rows)
    ctx = ctx_t.reshape(C, rows).T.astype(mxu_dtype)               # (rows, C)

    # --- output projection (+ bias); proj_drop rate 0.0 -> identity ---------
    y = jnp.dot(ctx, wproj_ref[...], preferred_element_type=jnp.float32)
    o_ref[...] = (y + bproj_ref[...]).astype(o_ref.dtype)


def _pick_packed_batches(batch, seq, target_rows, row_multiple):
    """Largest bb dividing `batch` with bb*seq <= target_rows, a legal sublane
    multiple, and (when possible) >= 2 grid steps for pipelining / 2 TCs."""
    candidates = [bb for bb in range(1, batch + 1)
                  if batch % bb == 0 and (bb * seq) % row_multiple == 0]
    if not candidates:
        return batch                 # single step: full-extent block is always legal
    best = None
    for bb in candidates:            # ascending -> keep the largest valid one
        if bb * seq <= target_rows and batch // bb >= 2:
            best = bb
    if best is None:
        fitting = [bb for bb in candidates if bb * seq <= target_rows]
        best = fitting[-1] if fitting else candidates[0]
    return best


@functools.partial(jax.jit,
                   static_argnames=("num_heads", "mxu_dtype", "target_block_rows"))
def attention(x, w_qkv, w_proj, b_proj, *, num_heads,
              mxu_dtype=jnp.bfloat16, target_block_rows=128):
    """Fused multi-head self-attention (qkv_bias=False, dropout rate 0)."""
    B, N, C = x.shape
    assert C % num_heads == 0, "dim must be divisible by num_heads"
    head_dim = C // num_heads
    scale = float(head_dim) ** -0.5

    row_multiple = 8 if jnp.dtype(mxu_dtype).itemsize >= 4 else 16
    bb = _pick_packed_batches(B, N, target_block_rows, row_multiple)
    rows = bb * N
    grid = (B // bb,)

    # Weight prep (plain XLA, once per call, outside the kernel):
    #  * transpose Wqkv so the kernel's QKV matmul emits a channel-major tile,
    #  * fold the softmax scale into the Q rows,
    #  * cast matmul operands to the MXU dtype (halves weight DMA for bf16).
    w_qkv_t = w_qkv.T.at[:C].multiply(scale).astype(mxu_dtype)   # (3C, C)
    w_proj_m = w_proj.astype(mxu_dtype)                          # (C, C)
    b_proj_2d = b_proj.reshape(1, C).astype(jnp.float32)         # (1, C)
    x2d = x.reshape(B * N, C).astype(mxu_dtype)                  # (B*N, C)

    kernel = functools.partial(
        _attention_kernel, bb=bb, seq=N, num_heads=num_heads,
        head_dim=head_dim, mxu_dtype=mxu_dtype)

    out2d = pl.pallas_call(
        kernel,
        out_shape=jax.ShapeDtypeStruct((B * N, C), x.dtype),
        grid_spec=pltpu.PrefetchScalarGridSpec(
            num_scalar_prefetch=0,
            grid=grid,
            in_specs=[
                pl.BlockSpec((rows, C), lambda i: (i, 0)),       # packed token rows
                pl.BlockSpec((3 * C, C), lambda i: (0, 0)),      # Wqkv^T (resident)
                pl.BlockSpec((C, C), lambda i: (0, 0)),          # Wproj  (resident)
                pl.BlockSpec((1, C), lambda i: (0, 0)),          # proj bias
            ],
            out_specs=pl.BlockSpec((rows, C), lambda i: (i, 0)),
        ),
        compiler_params=pltpu.CompilerParams(
            dimension_semantics=("parallel",)),                  # shard across TCs
    )(x2d, w_qkv_t, w_proj_m, b_proj_2d)
    return out2d.reshape(B, N, C)


def reference(x, w_qkv, w_proj, b_proj, num_heads):
    """Pure-JAX mirror of the PyTorch Attention.forward (dropout rate 0)."""
    B, N, C = x.shape
    hd = C // num_heads
    scale = hd ** -0.5
    qkv = (x @ w_qkv).reshape(B, N, 3, num_heads, hd).transpose(2, 0, 3, 1, 4)
    q, k, v = qkv[0], qkv[1], qkv[2]                     # (B, H, N, hd)
    attn = jax.nn.softmax(jnp.einsum("bhqd,bhkd->bhqk", q, k) * scale, axis=-1)
    out = jnp.einsum("bhqk,bhkd->bhqd", attn, v)
    out = out.transpose(0, 2, 1, 3).reshape(B, N, C)
    return out @ w_proj + b_proj


if __name__ == "__main__":
    # Small shapes consistent with the module: dim=128, num_heads=8 (hd=16),
    # 16 tokens per element; B=16 exercises the batch-packing path (8 packed
    # batches -> 128-row tiles, grid of 2 parallel steps).
    B, N, C, H = 16, 16, 128, 8

    key = jax.random.PRNGKey(0)
    kx, kq, kp, kb = jax.random.split(key, 4)
    x = jax.random.normal(kx, (B, N, C), jnp.float32)
    w_qkv = jax.random.normal(kq, (C, 3 * C), jnp.float32) / math.sqrt(C)
    w_proj = jax.random.normal(kp, (C, C), jnp.float32) / math.sqrt(C)
    b_proj = 0.01 * jax.random.normal(kb, (C,), jnp.float32)

    ref = reference(x, w_qkv, w_proj, b_proj, H)

    # Exact-semantics check: f32 MXU operands (only the approx softmax
    # reciprocal differs from the pure-f32 reference).
    out_f32 = attention(x, w_qkv, w_proj, b_proj, num_heads=H,
                        mxu_dtype=jnp.float32)
    jax.block_until_ready(out_f32)
    assert jnp.allclose(out_f32, ref, atol=1e-2, rtol=1e-2), "f32 path mismatch"

    # Default fast path: bf16 MXU operands, f32 softmax / accumulation.
    out_bf16 = attention(x, w_qkv, w_proj, b_proj, num_heads=H)
    jax.block_until_ready(out_bf16)
    assert jnp.allclose(out_bf16, ref, atol=1e-1, rtol=1e-1), "bf16 path mismatch"

    # Un-packed path (one batch element per grid step, no packing mask).
    out_small = attention(x[:2], w_qkv, w_proj, b_proj, num_heads=H)
    jax.block_until_ready(out_small)
    assert jnp.allclose(out_small, ref[:2], atol=1e-1, rtol=1e-1), "bb=1 path mismatch"

    print("KERNEL_OK")
</pallas_src>

<mosaic_0001>
module attributes {stable_mosaic.version = 11 : i64} {
  func.func @_attention_kernel(%arg0: i32, %arg1: memref<128x128xf32, #tpu.memory_space<vmem>>, %arg2: memref<384x128xf32, #tpu.memory_space<vmem>>, %arg3: memref<128x128xf32, #tpu.memory_space<vmem>>, %arg4: memref<1x128xf32, #tpu.memory_space<vmem>>, %arg5: memref<128x128xf32, #tpu.memory_space<vmem>>) attributes {dimension_semantics = [#tpu.dimension_semantics<parallel>], iteration_bounds = array<i64: 2>, scalar_prefetch = 0 : i64, scratch_operands = 0 : i64, tpu.core_type = #tpu.core_type<tc>, window_params = [{transform_indices = @transform_0, window_bounds = array<i64: 128, 128>}, {pipeline_mode = #tpu.pipeline_mode<synchronous>, transform_indices = @transform_1, window_bounds = array<i64: 384, 128>}, {pipeline_mode = #tpu.pipeline_mode<synchronous>, transform_indices = @transform_2, window_bounds = array<i64: 128, 128>}, {pipeline_mode = #tpu.pipeline_mode<synchronous>, transform_indices = @transform_3, window_bounds = array<i64: 1, 128>}, {transform_indices = @transform_4, window_bounds = array<i64: 128, 128>}]} {
    %c0 = arith.constant 0 : index
    %c0_0 = arith.constant 0 : index
    %0 = vector.load %arg2[%c0, %c0_0] : memref<384x128xf32, #tpu.memory_space<vmem>>, vector<384x128xf32>
    %c0_1 = arith.constant 0 : index
    %c0_2 = arith.constant 0 : index
    %1 = vector.load %arg1[%c0_1, %c0_2] : memref<128x128xf32, #tpu.memory_space<vmem>>, vector<128x128xf32>
    %cst = arith.constant dense<0.000000e+00> : vector<384x128xf32>
    %2 = tpu.matmul %0, %1, %cst {dimension_numbers = #tpu.dot_dimension_numbers<[1], [1], [0], [0], [0, 0, 1, 0], [], []>} : vector<384x128xf32>, vector<128x128xf32>, vector<384x128xf32> -> vector<384x128xf32>
    %3 = vector.extract_strided_slice %2 {offsets = [0, 0], sizes = [128, 128], strides = [1, 1]} : vector<384x128xf32> to vector<128x128xf32>
    %4 = vector.shape_cast %3 : vector<128x128xf32> to vector<8x16x128xf32>
    %5 = tpu.transpose %4, [0, 2, 1] : vector<8x16x128xf32> -> vector<8x128x16xf32>
    %6 = vector.extract_strided_slice %2 {offsets = [128, 0], sizes = [128, 128], strides = [1, 1]} : vector<384x128xf32> to vector<128x128xf32>
    %7 = vector.shape_cast %6 : vector<128x128xf32> to vector<8x16x128xf32>
    %8 = vector.extract_strided_slice %2 {offsets = [256, 0], sizes = [128, 128], strides = [1, 1]} : vector<384x128xf32> to vector<128x128xf32>
    %9 = vector.shape_cast %8 : vector<128x128xf32> to vector<8x16x128xf32>
    "tpu.trace_start"() <{level = 10 : i32, message = "hqd,hdk->hqk"}> : () -> ()
    %cst_3 = arith.constant dense<0.000000e+00> : vector<8x128x128xf32>
    %10 = tpu.matmul %5, %7, %cst_3 {dimension_numbers = #tpu.dot_dimension_numbers<[2], [1], [1], [2], [0, 0, 0, 1, 1, 2], [0], [0]>} : vector<8x128x16xf32>, vector<8x16x128xf32>, vector<8x128x128xf32> -> vector<8x128x128xf32>
    "tpu.trace_stop"() : () -> ()
    %11 = tpu.iota {dimensions = array<i32: 0>} : vector<8x16x128xi32>
    %12 = vector.shape_cast %11 : vector<8x16x128xi32> to vector<128x128xi32>
    %13 = tpu.transpose %12, [1, 0] : vector<128x128xi32> -> vector<128x128xi32>
    %14 = arith.cmpi eq, %12, %13 : vector<128x128xi32>
    %cst_4 = arith.constant -1.000000e+30 : f32
    %15 = vector.shape_cast %14 : vector<128x128xi1> to vector<1x128x128xi1>
    %16 = vector.broadcast %15 : vector<1x128x128xi1> to vector<8x128x128xi1>
    %17 = vector.broadcast %cst_4 : f32 to vector<8x128x128xf32>
    %18 = arith.select %16, %10, %17 : vector<8x128x128xi1>, vector<8x128x128xf32>
    %cst_5 = arith.constant dense<0xFF800000> : vector<8x128xf32>
    %19 = vector.multi_reduction <maximumf>, %18, %cst_5 [2] : vector<8x128x128xf32> to vector<8x128xf32>
    %20 = vector.shape_cast %19 : vector<8x128xf32> to vector<8x128x1xf32>
    %21 = vector.broadcast %20 : vector<8x128x1xf32> to vector<8x128x128xf32>
    %22 = arith.subf %18, %21 : vector<8x128x128xf32>
    %23 = math.exp %22 : vector<8x128x128xf32>
    %cst_6 = arith.constant dense<0.000000e+00> : vector<8x128xf32>
    %24 = vector.multi_reduction <add>, %23, %cst_6 [2] : vector<8x128x128xf32> to vector<8x128xf32>
    %25 = vector.shape_cast %24 : vector<8x128xf32> to vector<8x128x1xf32>
    %26 = tpu.reciprocal %25 {approx = true} : vector<8x128x1xf32> -> vector<8x128x1xf32>
    %27 = vector.broadcast %26 : vector<8x128x1xf32> to vector<8x128x128xf32>
    %28 = arith.mulf %23, %27 : vector<8x128x128xf32>
    "tpu.trace_start"() <{level = 10 : i32, message = "hdk,hqk->hdq"}> : () -> ()
    %cst_7 = arith.constant dense<0.000000e+00> : vector<8x16x128xf32>
    %29 = tpu.matmul %9, %28, %cst_7 {dimension_numbers = #tpu.dot_dimension_numbers<[2], [2], [1], [1], [0, 0, 0, 1, 1, 1], [0], [0]>} : vector<8x16x128xf32>, vector<8x128x128xf32>, vector<8x16x128xf32> -> vector<8x16x128xf32>
    "tpu.trace_stop"() : () -> ()
    %30 = vector.shape_cast %29 : vector<8x16x128xf32> to vector<128x128xf32>
    %31 = tpu.transpose %30, [1, 0] : vector<128x128xf32> -> vector<128x128xf32>
    %c0_8 = arith.constant 0 : index
    %c0_9 = arith.constant 0 : index
    %32 = vector.load %arg3[%c0_8, %c0_9] : memref<128x128xf32, #tpu.memory_space<vmem>>, vector<128x128xf32>
    %cst_10 = arith.constant dense<0.000000e+00> : vector<128x128xf32>
    %33 = tpu.matmul %31, %32, %cst_10 {dimension_numbers = #tpu.dot_dimension_numbers<[1], [0], [0], [1], [0, 0, 1, 1], [], []>} : vector<128x128xf32>, vector<128x128xf32>, vector<128x128xf32> -> vector<128x128xf32>
    %c0_11 = arith.constant 0 : index
    %c0_12 = arith.constant 0 : index
    %34 = vector.load %arg4[%c0_11, %c0_12] : memref<1x128xf32, #tpu.memory_space<vmem>>, vector<1x128xf32>
    %35 = vector.broadcast %34 : vector<1x128xf32> to vector<128x128xf32>
    %36 = arith.addf %33, %35 : vector<128x128xf32>
    %c0_13 = arith.constant 0 : index
    %c0_14 = arith.constant 0 : index
    %37 = vector.load %arg5[%c0_13, %c0_14] : memref<128x128xf32, #tpu.memory_space<vmem>>, vector<128x128xf32>
    tpu.vector_store %arg5[%c0_13, %c0_14], %36 {strides = array<i32>} : memref<128x128xf32, #tpu.memory_space<vmem>>, vector<128x128xf32>,
    return
  }
  func.func @transform_0(%arg0: i32) -> (i32, i32) {
    %c0_i32 = arith.constant 0 : i32
    %c0_i32_0 = arith.constant 0 : i32
    return %arg0, %c0_i32 : i32, i32
  }
  func.func @transform_1(%arg0: i32) -> (i32, i32) {
    %c0_i32 = arith.constant 0 : i32
    %c0_i32_0 = arith.constant 0 : i32
    %c0_i32_1 = arith.constant 0 : i32
    return %c0_i32, %c0_i32_0 : i32, i32
  }
  func.func @transform_2(%arg0: i32) -> (i32, i32) {
    %c0_i32 = arith.constant 0 : i32
    %c0_i32_0 = arith.constant 0 : i32
    %c0_i32_1 = arith.constant 0 : i32
    return %c0_i32, %c0_i32_0 : i32, i32
  }
  func.func @transform_3(%arg0: i32) -> (i32, i32) {
    %c0_i32 = arith.constant 0 : i32
    %c0_i32_0 = arith.constant 0 : i32
    %c0_i32_1 = arith.constant 0 : i32
    return %c0_i32, %c0_i32_0 : i32, i32
  }
  func.func @transform_4(%arg0: i32) -> (i32, i32) {
    %c0_i32 = arith.constant 0 : i32
    %c0_i32_0 = arith.constant 0 : i32
    return %arg0, %c0_i32 : i32, i32
  }
}

</mosaic_0001>

<bundles_post_ra>
// kernel: attention.1
= control target key start
LH: loop header
LB: loop body
LE: loop exit
PB: predicated region body
PF: predicated region fallthrough
CT: control target
= control target key end

     0   :  { %9 = vsyncpa [#allocation3], 0  ;;  %s6723_s0 = inlined_call_operand.vmem [shape: f32[256,128], index: 0, kind: input, shape index: {}]   ;;  %s6724_s1 = inlined_call_operand.vmem [shape: f32[384,128], index: 1, kind: input, shape index: {}]   ;;  %s6725_s2 = inlined_call_operand.vmem [shape: f32[128,128], index: 2, kind: input, shape index: {}]   ;;  %s6726_s3 = inlined_call_operand.vmem [shape: f32[1,128], index: 3, kind: input, shape index: {}]   ;;  %s6727_s4 = inlined_call_operand.hbm [shape: f32[256,128], index: 4, kind: output, shape index: {}]  }
   0x1   :  { %11 = vsyncpa [#allocation3 + $0x1], 0  ;;  %s4182_s15 = smov 0   ;;  %s4184_s16 = smov 0  }
   0x2   :  { %s4186_s17 = smov 0   ;;  %s4188_s18 = smov 0  }
   0x3 LB: > { %s4203_s19 = sadd.s32 4294967295, %s4144_s18   ;;  %s3340_s20 = sadd.s32 4294967294, %s4144_s18   ;;  %s4144_s18 = sphi %s4188_s18, %s7325_s18   ;;  %s4140_s17 = sphi %s4186_s17, %s7324_s17   ;;  %s4136_s16 = sphi %s4184_s16, %s7323_s16   ;;  %s4132_s15 = sphi %s4182_s15, %s7322_s15  }
   0x4   : > { %s4207_s21 = sadd.s32 1, %s4144_s18   ;;  %s113_s22 = sadd.s32 1, %s4140_s17 }
   0x5   : > { %s110_s23 = ssub.s32 %s4144_s18, %s4207_s21  ;;  %p123_p0 = scmp.ne.s32.totalorder %s4140_s17, %s4136_s16 }
   0x6   : > { %p111_p1 = scmp.eq.s32.totalorder %s110_s23, 0  ;;  %p124_p2 = scmp.eq.s32.totalorder %s4203_s19, 1 }
   0x7   : > { %p129_p3 = scmp.ne.s32.totalorder %s4136_s16, %s4132_s15  ;;  %p130_p4 = scmp.eq.s32.totalorder %s3340_s20, 1 }
   0x8   : > { %s4218_s24 = scalar_select %p111_p1, %s4140_s17, %s113_s22  }
   0x9   : > { %p4220_p5 = por %p124_p2, %p123_p0  ;;  %p4224_p6 = por %p130_p4, %p129_p3 }
   0xa   : > { %p3343_p7 = scmp.ge.s32.totalorder %s4144_s18, 1  ;;  %p166_p8 = scmp.lt.s32.totalorder %s4144_s18, 3 }
   0xc   : > { %p167_p9 = pnand %p3343_p7, %p166_p8 }
   0xe   : > { %170 = sbr.rel (%p167_p9) target bundleno = 2071 (0x817), region = 36 }
  0x13   : > { %s3345_s27 = sshll.u32 %s4203_s19, 4  ;;  %v199_v16 = vld [vmem:[%s6724_s1] sm:$0xff]  ;;  %v200_v17 = vld [vmem:[%s6724_s1 + $0x8] sm:$0xff]  ;;  %v201_v18 = vld [vmem:[%s6724_s1 + $0x10] sm:$0xff]  ;;  %vm680_vm0 = vcmask 130048   ;;  %s189_s20 = sand.u32 1, %s4136_s16  }
  0x14   : > { %p193_p10 = scmp.lt.s32.totalorder %s3345_s27, 31  ;;  %v202_v19 = vld [vmem:[%s6724_s1 + $0x18] sm:$0xff]  ;;  %v203_v20 = vld [vmem:[%s6724_s1 + $0x20] sm:$0xff]  ;;  %v204_v21 = vld [vmem:[%s6724_s1 + $0x28] sm:$0xff]  ;;  %s3344_s22 = sshll.u32 %s189_s20, 7 }
  0x15   : > { %v205_v22 = vld [vmem:[%s6724_s1 + $0x30] sm:$0xff]  ;;  %v206_v23 = vld [vmem:[%s6724_s1 + $0x38] sm:$0xff]  ;;  %v207_v24 = vld [vmem:[%s6724_s1 + $0x40] sm:$0xff]  ;;  %s3480_s29 = sshll.u32 %s4203_s19, 7  ;;  %s3263_s9 = scalar_lea.sflag [#allocation3], %s189_s20 }
  0x16   : > { %s7327_s27 = smov (!%p193_p10, %s3345_s27), 31  ;;  %v208_v25 = vld [vmem:[%s6724_s1 + $0x48] sm:$0xff]  ;;  %v209_v26 = vld [vmem:[%s6724_s1 + $0x50] sm:$0xff]  ;;  %v210_v27 = vld [vmem:[%s6724_s1 + $0x58] sm:$0xff]  ;;  %s3274_s6 = scalar_lea.hbm %s6727_s4, %s3480_s29 }
  0x17   : > { %s3346_s28 = sshll.u32 %s7327_s27, 3  ;;  %v211_v28 = vld [vmem:[%s6724_s1 + $0x60] sm:$0xff]  ;;  %v212_v29 = vld [vmem:[%s6724_s1 + $0x68] sm:$0xff]  ;;  %v213_v30 = vld [vmem:[%s6724_s1 + $0x70] sm:$0xff]  ;;  %s3277_s8 = sshll.u32 %s3274_s6, 4  ;;  %s3278_s8 = int_to_ptr.hbm [resolvable:$true] %s3277_s8 }
  0x18   : > { %s4234_s5 = scalar_lea.vmem %s6723_s0, %s3346_s28  ;;  %v214_v31 = vld [vmem:[%s6724_s1 + $0x78] sm:$0xff]  ;;  %v215_v33 = vld [vmem:[%s6724_s1 + $0x80] sm:$0xff]  ;;  %v216_v35 = vld [vmem:[%s6724_s1 + $0x88] sm:$0xff]  ;;  %s6671_s28 = scalar_lea.vmem [#allocation2], %s3344_s22 }
  0x19   : > { %v262_v0 = vld [vmem:[%s4234_s5 + $0x78] sm:$0xff]  ;;  %v261_v1 = vld [vmem:[%s4234_s5 + $0x70] sm:$0xff]  ;;  %v260_v2 = vld [vmem:[%s4234_s5 + $0x68] sm:$0xff]  ;;  %s3275_s7 = sshll.u32 %s6671_s28, 4  ;;  %s4096_s10 = sshra.s32 %s3278_s8, 4  ;;  %s3276_s7 = int_to_ptr.vmem [resolvable:$true] %s3275_s7  ;;  %s4097_s10 = int_to_ptr.hbm [resolvable:$true] %s4096_s10 }
  0x1a   : > { %263 = vmatpush.xpose.msra.mxu0 %v262_v0  ;;  %v259_v3 = vld [vmem:[%s4234_s5 + $0x60] sm:$0xff]  ;;  %v258_v4 = vld [vmem:[%s4234_s5 + $0x58] sm:$0xff]  ;;  %v257_v5 = vld [vmem:[%s4234_s5 + $0x50] sm:$0xff]  ;;  %s4098_s19 = scalar_lea.hbm %s4097_s10, 128  ;;  %s4102_s13 = scalar_lea.hbm %s6727_s4, 256 }
  0x1b   : > { %v256_v6 = vld [vmem:[%s4234_s5 + $0x48] sm:$0xff]  ;;  %v255_v7 = vld [vmem:[%s4234_s5 + $0x40] sm:$0xff]  ;;  %v254_v8 = vld [vmem:[%s4234_s5 + $0x38] sm:$0xff]  ;;  %p4099_p11 = scmp.ne.s32.totalorder %s4097_s10, %s4098_s19  ;;  %p4103_p0 = scmp.lt.s32.totalorder %s4097_s10, %s6727_s4 }
  0x1c   : > { %v253_v9 = vld [vmem:[%s4234_s5 + $0x30] sm:$0xff]  ;;  %v252_v10 = vld [vmem:[%s4234_s5 + $0x28] sm:$0xff]  ;;  %v251_v11 = vld [vmem:[%s4234_s5 + $0x20] sm:$0xff]  ;;  %p4104_p1 = scmp.lt.s32.totalorder %s4102_s13, %s4098_s19 }
  0x1d   : > { %v250_v12 = vld [vmem:[%s4234_s5 + $0x18] sm:$0xff]  ;;  %v249_v13 = vld [vmem:[%s4234_s5 + $0x10] sm:$0xff]  ;;  %v248_v14 = vld [vmem:[%s4234_s5 + $0x8] sm:$0xff]  ;;  %p4100_p12 = pnand %p4099_p11, %p4220_p5 }
  0x1e   : > { %264 = vmatpush.xpose.msra.mxu0 %v261_v1  ;;  %v247_v15 = vld [vmem:[%s4234_s5] sm:$0xff]  ;;  %v217_v37 = vld [vmem:[%s6724_s1 + $0x90] sm:$0xff]  ;;  %v218_v39 = vld [vmem:[%s6724_s1 + $0x98] sm:$0xff]  ;;  %p4105_p2 = por %p4104_p1, %p4103_p0 }
  0x1f   : > { %v219_v42 = vld [vmem:[%s6724_s1 + $0xa0] sm:$0xff]  ;;  %v220_v44 = vld [vmem:[%s6724_s1 + $0xa8] sm:$0xff]  ;;  %v221_v46 = vld [vmem:[%s6724_s1 + $0xb0] sm:$0xff]  ;;  %p4101_p13 = pneg %p4100_p12 }
  0x20   : > { %v222_v48 = vld [vmem:[%s6724_s1 + $0xb8] sm:$0xff]  ;;  %v223_v53 = vld [vmem:[%s6724_s1 + $0xc0] sm:$0xff]  ;;  %v224_v55 = vld [vmem:[%s6724_s1 + $0xc8] sm:$0xff] }
  0x21   : > { %v225_v57 = vld [vmem:[%s6724_s1 + $0xd0] sm:$0xff]  ;;  %v226_v59 = vld [vmem:[%s6724_s1 + $0xd8] sm:$0xff]  ;;  %p4106_p3 = pnand %p4105_p2, %p4101_p13 }
  0x22   : > { %265 = vmatpush.xpose.msra.mxu0 %v260_v2  ;;  %v227_v2 = vld [vmem:[%s6724_s1 + $0xe0] sm:$0xff] }
  0x26   : > { %266 = vmatpush.xpose.msra.mxu0 %v259_v3 }
  0x2a   : > { %267 = vmatpush.xpose.msra.mxu0 %v258_v4 }
  0x2e   : > { %268 = vmatpush.xpose.msra.mxu0 %v257_v5  ;;  %v228_v5 = vld [vmem:[%s6724_s1 + $0xe8] sm:$0xff] }
  0x32   : > { %269 = vmatpush.xpose.msra.mxu0 %v256_v6 }
  0x36   : > { %270 = vmatpush.xpose.msra.mxu0 %v255_v7 }
  0x3a   : > { %271 = vmatpush.xpose.msra.mxu0 %v254_v8 }
  0x3e   : > { %272 = vmatpush.xpose.msra.mxu0 %v253_v9 }
  0x42   : > { %273 = vmatpush.xpose.msra.mxu0 %v252_v10  ;;  %v229_v10 = vld [vmem:[%s6724_s1 + $0xf0] sm:$0xff] }
  0x46   : > { %274 = vmatpush.xpose.msra.mxu0 %v251_v11 }
  0x4a   : > { %275 = vmatpush.xpose.msra.mxu0 %v250_v12 }
  0x4e   : > { %276 = vmatpush.xpose.msra.mxu0 %v249_v13 }
  0x52   : > { %277 = vmatpush.xpose.msra.mxu0 %v248_v14 }
  0x56   : > { %278 = vmatpush.xpose.msra.mxu0 %v247_v15  ;;  %v230_v15 = vld [vmem:[%s6724_s1 + $0xf8] sm:$0xff] }
  0x59   : > { %279 = vmatmul.f32.vlgmr.msra.gmra.mxu0 %v199_v16 }
  0x61   : > { %282 = vmatmul.f32.gmra.mxu0 %v200_v17 }
  0x69   : > { %285 = vmatmul.f32.gmra.mxu0 %v201_v18 }
  0x71   : > { %288 = vmatmul.f32.gmra.mxu0 %v202_v19 }
  0x79   : > { %291 = vmatmul.f32.gmra.mxu0 %v203_v20  ;;  %v231_v20 = vld [vmem:[%s6724_s1 + $0x100] sm:$0xff] }
  0x81   : > { %294 = vmatmul.f32.gmra.mxu0 %v204_v21 }
  0x89   : > { %297 = vmatmul.f32.gmra.mxu0 %v205_v22 }
  0x91   : > { %300 = vmatmul.f32.gmra.mxu0 %v206_v23 }
  0x99   : > { %303 = vmatmul.f32.gmra.mxu0 %v207_v24 }
  0xa1   : > { %306 = vmatmul.f32.gmra.mxu0 %v208_v25  ;;  %v232_v25 = vld [vmem:[%s6724_s1 + $0x108] sm:$0xff] }
  0xa9   : > { %309 = vmatmul.f32.gmra.mxu0 %v209_v26 }
  0xb1   : > { %312 = vmatmul.f32.gmra.mxu0 %v210_v27 }
  0xb9   : > { %315 = vmatmul.f32.gmra.mxu0 %v211_v28 }
  0xc1   : > { %318 = vmatmul.f32.gmra.mxu0 %v212_v29  ;;  %v233_v29 = vld [vmem:[%s6724_s1 + $0x110] sm:$0xff] }
  0xc9   : > { %321 = vmatmul.f32.gmra.mxu0 %v213_v30 }
  0xd1   : > { %324 = vmatmul.f32.gmra.mxu0 %v214_v31 }
  0xd6   : > { %v280_v32 = vpop.f32.mrf.mxu0 }
  0xd7   : > { %424 = vxpose.xlu0.b32.start [1/2] (short) %v280_v32, 128 }
  0xd9   : > { %327 = vmatmul.f32.gmra.mxu0 %v215_v33 }
  0xde   : > { %v283_v34 = vpop.f32.mrf.mxu0 }
  0xdf   : > { %425 = vxpose.xlu0.b32.end [2/2] (short) %v283_v34, 128  ;;  %v234_v34 = vld [vmem:[%s6724_s1 + $0x118] sm:$0xff] }
  0xe1   : > { %330 = vmatmul.f32.gmra.mxu0 %v216_v35 }
  0xe6   : > { %v286_v36 = vpop.f32.mrf.mxu0 }
  0xe7   : > { %456 = vxpose.xlu1.b32.start [1/2] (short) %v286_v36, 128 }
  0xe9   : > { %333 = vmatmul.f32.gmra.mxu0 %v217_v37 }
  0xee   : > { %v289_v38 = vpop.f32.mrf.mxu0 }
  0xef   : > { %457 = vxpose.xlu1.b32.end [2/2] (short) %v289_v38, 128 }
  0xf1   : > { %336 = vmatmul.f32.gmra.mxu0 %v218_v39  ;;  %v235_v39 = vld [vmem:[%s6724_s1 + $0x120] sm:$0xff] }
  0xf6   : > { %v292_v40 = vpop.f32.mrf.mxu0 }
  0xf7   : > { %488 = vxpose.xlu2.b32.start [1/2] (short) %v292_v40, 128 }
  0xf9   : > { %339 = vmatmul.f32.gmra.mxu0 %v219_v42 }
  0xfe   : > { %v295_v41 = vpop.f32.mrf.mxu0 }
  0xff   : > { %489 = vxpose.xlu2.b32.end [2/2] (short) %v295_v41, 128 }
 0x101   : > { %342 = vmatmul.f32.gmra.mxu0 %v220_v44  ;;  %v236_v44 = vld [vmem:[%s6724_s1 + $0x128] sm:$0xff] }
 0x106   : > { %v298_v43 = vpop.f32.mrf.mxu0 }
 0x109   : > { %345 = vmatmul.f32.gmra.mxu0 %v221_v46 }
 0x10e   : > { %v301_v45 = vpop.f32.mrf.mxu0 }
 0x111   : > { %348 = vmatmul.f32.gmra.mxu0 %v222_v48 }
 0x116   : > { %v304_v47 = vpop.f32.mrf.mxu0 }
 0x119   : > { %351 = vmatmul.f32.gmra.mxu0 %v223_v53 }
 0x11e   : > { %v307_v49 = vpop.f32.mrf.mxu0 }
 0x121   : > { %354 = vmatmul.f32.gmra.mxu0 %v224_v55  ;;  %v238_v55 = vld [vmem:[%s6724_s1 + $0x138] sm:$0xff] }
 0x126   : > { %v310_v50 = vpop.f32.mrf.mxu0 }
 0x129   : > { %357 = vmatmul.f32.gmra.mxu0 %v225_v57 }
 0x12e   : > { %v313_v51 = vpop.f32.mrf.mxu0 }
 0x131   : > { %360 = vmatmul.f32.gmra.mxu0 %v226_v59 }
 0x136   : > { %v4324_v52 = vpop.f32.mrf.mxu0 }
 0x139   : > { %363 = vmatmul.f32.gmra.mxu0 %v227_v2  ;;  %v241_v2 = vld [vmem:[%s6724_s1 + $0x150] sm:$0xff] }
 0x13e   : > { %v4329_v54 = vpop.f32.mrf.mxu0 }
 0x141   : > { %366 = vmatmul.f32.gmra.mxu0 %v228_v5 }
 0x146   : > { %v4334_v56 = vpop.f32.mrf.mxu0 }
 0x149   : > { %369 = vmatmul.f32.gmra.mxu0 %v229_v10 }
 0x14e   : > { %v4339_v58 = vpop.f32.mrf.mxu0 }
 0x151   : > { %372 = vmatmul.f32.gmra.mxu0 %v230_v15 }
 0x156   : > { %v328_v60 = vpop.f32.mrf.mxu0 }
 0x157   : > { %520 = vxpose.xlu0.b32.start [1/2] (short) %v298_v43, 128 }
 0x159   : > { %375 = vmatmul.f32.gmra.mxu0 %v231_v20 }
 0x15e   : > { %v331_v61 = vpop.f32.mrf.mxu0 }
 0x15f   : > { %521 = vxpose.xlu0.b32.end [2/2] (short) %v301_v45, 128  ;;  %743 = vmatpush.msra.mxu1 %v331_v61 }
 0x161   : > { %744 = vmatpush.msra.mxu1 %v328_v60  ;;  %378 = vmatmul.f32.gmra.mxu0 %v232_v25  ;;  %v239_v60 = vld [vmem:[%s6724_s1 + $0x140] sm:$0xff] }
 0x166   : > { %v334_v62 = vpop.f32.mrf.mxu0 }
 0x167   : > { %552 = vxpose.xlu1.b32.start [1/2] (short) %v304_v47, 128 }
 0x169   : > { %381 = vmatmul.f32.gmra.mxu0 %v233_v29 }
 0x16e   : > { %v337_v63 = vpop.f32.mrf.mxu0 }
 0x16f   : > { %553 = vxpose.xlu1.b32.end [2/2] (short) %v307_v49, 128  ;;  %856 = vmatpush.msra.mxu2 %v337_v63  ;;  %v237_v49 = vld [vmem:[%s6724_s1 + $0x130] sm:$0xff]  ;;  %v240_v63 = vld [vmem:[%s6724_s1 + $0x148] sm:$0xff] }
 0x171   : > { %857 = vmatpush.msra.mxu2 %v334_v62  ;;  %384 = vmatmul.f32.gmra.mxu0 %v234_v34 }
 0x176   : > { %v340_v9 = vpop.f32.mrf.mxu0 }
 0x177   : > { %584 = vxpose.xlu2.b32.start [1/2] (short) %v310_v50, 128 }
 0x179   : > { %387 = vmatmul.f32.gmra.mxu0 %v235_v39 }
 0x17b   : > { %v440_v0 = vpop.trf.xlu0 }
 0x17c   : > { %3347 = vmatmul.msk.f32.vlgmr.msra.gmra.mxu1 %vm680_vm0, %v440_v0 }
 0x17e   : > { %v343_v14 = vpop.f32.mrf.mxu0 }
 0x17f   : > { %585 = vxpose.xlu2.b32.end [2/2] (short) %v313_v51, 128  ;;  %969 = vmatpush.msra.mxu3 %v343_v14 }
 0x181   : > { %970 = vmatpush.msra.mxu3 %v340_v9  ;;  %390 = vmatmul.f32.gmra.mxu0 %v236_v44 }
 0x183   : > { %v441_v1 = vpop.trf.xlu0 }
 0x184   : > { %3348 = vmatmul.msk.f32.gmra.mxu1 %vm680_vm0, %v441_v1 }
 0x186   : > { %v346_v19 = vpop.f32.mrf.mxu0 }
 0x189   : > { %393 = vmatmul.f32.gmra.mxu0 %v237_v49 }
 0x18b   : > { %v442_v3 = vpop.trf.xlu0  ;;  %v472_v4 = vpop.trf.xlu1 }
 0x18c   : > { %3349 = vmatmul.msk.f32.gmra.mxu1 %vm680_vm0, %v442_v3  ;;  %3363 = vmatmul.msk.f32.vlgmr.msra.gmra.mxu2 %vm680_vm0, %v472_v4  ;;  %v4146_v3 = vmov 0  }
 0x18e   : > { %v349_v24 = vpop.f32.mrf.mxu0 }
 0x18f   : > { %1082 = vmatpush.msrb.mxu1 %v349_v24  ;;  %v4148_v24 = vmov 2  }
 0x190   : > { %v504_v6 = vpop.trf.xlu2 }
 0x191   : > { %3379 = vmatmul.msk.f32.vlgmr.msra.gmra.mxu3 %vm680_vm0, %v504_v6  ;;  %1083 = vmatpush.msrb.mxu1 %v346_v19  ;;  %v242_v6 = vld [vmem:[%s6724_s1 + $0x158] sm:$0xff] }
 0x192   : > { %396 = vmatmul.f32.gmra.mxu0 %v238_v55 }
 0x193   : > { %v443_v7 = vpop.trf.xlu0  ;;  %v473_v8 = vpop.trf.xlu1 }
 0x194   : > { %3350 = vmatmul.msk.f32.gmra.mxu1 %vm680_vm0, %v443_v7  ;;  %3364 = vmatmul.msk.f32.gmra.mxu2 %vm680_vm0, %v473_v8 }
 0x196   : > { %v352_v30 = vpop.f32.mrf.mxu0 }
 0x198   : > { %v505_v11 = vpop.trf.xlu2 }
 0x199   : > { %3380 = vmatmul.msk.f32.gmra.mxu3 %vm680_vm0, %v505_v11  ;;  %v243_v11 = vld [vmem:[%s6724_s1 + $0x160] sm:$0xff] }
 0x19a   : > { %399 = vmatmul.f32.gmra.mxu0 %v239_v60  ;;  %v4151_v60 = vmov 5  }
 0x19b   : > { %v444_v12 = vpop.trf.xlu0  ;;  %v474_v13 = vpop.trf.xlu1 }
 0x19c   : > { %3351 = vmatmul.msk.f32.gmra.mxu1 %vm680_vm0, %v444_v12  ;;  %3365 = vmatmul.msk.f32.gmra.mxu2 %vm680_vm0, %v474_v13  ;;  %v4147_v12 = vmov 1  }
 0x19e   : > { %v355_v35 = vpop.f32.mrf.mxu0 }
 0x19f   : > { %1195 = vmatpush.msrb.mxu2 %v355_v35 }
 0x1a0   : > { %v506_v16 = vpop.trf.xlu2 }
 0x1a1   : > { %3381 = vmatmul.msk.f32.gmra.mxu3 %vm680_vm0, %v506_v16  ;;  %1196 = vmatpush.msrb.mxu2 %v352_v30  ;;  %v246_v30 = vld [vmem:[%s6724_s1 + $0x178] sm:$0xff] }
 0x1a2   : > { %402 = vmatmul.f32.gmra.mxu0 %v240_v63 }
 0x1a3   : > { %v445_v17 = vpop.trf.xlu0  ;;  %v475_v18 = vpop.trf.xlu1 }
 0x1a4   : > { %3352 = vmatmul.msk.f32.gmra.mxu1 %vm680_vm0, %v445_v17  ;;  %3366 = vmatmul.msk.f32.gmra.mxu2 %vm680_vm0, %v475_v18  ;;  %v244_v17 = vld [vmem:[%s6724_s1 + $0x168] sm:$0xff] }
 0x1a6   : > { %v358_v40 = vpop.f32.mrf.mxu0 }
 0x1a8   : > { %v507_v21 = vpop.trf.xlu2 }
 0x1a9   : > { %3382 = vmatmul.msk.f32.gmra.mxu3 %vm680_vm0, %v507_v21 }
 0x1aa   : > { %405 = vmatmul.f32.gmra.mxu0 %v241_v2 }
 0x1ab   : > { %v446_v22 = vpop.trf.xlu0  ;;  %v476_v23 = vpop.trf.xlu1 }
 0x1ac   : > { %3353 = vmatmul.msk.f32.gmra.mxu1 %vm680_vm0, %v446_v22  ;;  %3367 = vmatmul.msk.f32.gmra.mxu2 %vm680_vm0, %v476_v23  ;;  %v245_v23 = vld [vmem:[%s6724_s1 + $0x170] sm:$0xff] }
 0x1ae   : > { %v361_v45 = vpop.f32.mrf.mxu0 }
 0x1af   : > { %1308 = vmatpush.msrb.mxu0 %v361_v45  ;;  %3481 = vmatpush.msra.mxu3 %v361_v45 }
 0x1b0   : > { %v508_v26 = vpop.trf.xlu2 }
 0x1b1   : > { %3383 = vmatmul.msk.f32.gmra.mxu3 %vm680_vm0, %v508_v26  ;;  %1309 = vmatpush.msrb.mxu0 %v358_v40 }
 0x1b2   : > { %3482 = vmatpush.msra.mxu3 %v358_v40  ;;  %408 = vmatmul.f32.gmra.mxu0 %v242_v6 }
 0x1b3   : > { %v447_v27 = vpop.trf.xlu0  ;;  %v477_v28 = vpop.trf.xlu1 }
 0x1b4   : > { %3354 = vmatmul.msk.f32.gmra.mxu1 %vm680_vm0, %v447_v27  ;;  %3368 = vmatmul.msk.f32.gmra.mxu2 %vm680_vm0, %v477_v28 }
 0x1b6   : > { %v364_v10 = vpop.f32.mrf.mxu0 }
 0x1b8   : > { %v509_v31 = vpop.trf.xlu2 }
 0x1b9   : > { %3384 = vmatmul.msk.f32.gmra.mxu3 %vm680_vm0, %v509_v31 }
 0x1ba   : > { %411 = vmatmul.f32.gmra.mxu0 %v243_v11 }
 0x1bb   : > { %v448_v32 = vpop.trf.xlu0  ;;  %v478_v33 = vpop.trf.xlu1 }
 0x1bc   : > { %3355 = vmatmul.msk.f32.gmra.mxu1 %vm680_vm0, %v448_v32  ;;  %3369 = vmatmul.msk.f32.gmra.mxu2 %vm680_vm0, %v478_v33 }
 0x1be   : > { %v367_v16 = vpop.f32.mrf.mxu0 }
 0x1bf   : > { %1421 = vmatpush.msra.mxu1 %v367_v16 }
 0x1c0   : > { %v510_v36 = vpop.trf.xlu2 }
 0x1c1   : > { %3385 = vmatmul.msk.f32.gmra.mxu3 %vm680_vm0, %v510_v36  ;;  %1422 = vmatpush.msra.mxu1 %v364_v10  ;;  %v4149_v36 = vmov 3  }
 0x1c2   : > { %414 = vmatmul.f32.gmra.mxu0 %v244_v17 }
 0x1c3   : > { %v449_v37 = vpop.trf.xlu0  ;;  %v479_v38 = vpop.trf.xlu1 }
 0x1c4   : > { %3356 = vmatmul.msk.f32.gmra.mxu1 %vm680_vm0, %v449_v37  ;;  %3370 = vmatmul.msk.f32.gmra.mxu2 %vm680_vm0, %v479_v38 }
 0x1c6   : > { %v370_v22 = vpop.f32.mrf.mxu0 }
 0x1c8   : > { %v511_v41 = vpop.trf.xlu2 }
 0x1c9   : > { %3386 = vmatmul.msk.f32.gmra.mxu3 %vm680_vm0, %v511_v41 }
 0x1ca   : > { %417 = vmatmul.f32.gmra.mxu0 %v245_v23 }
 0x1cb   : > { %v450_v42 = vpop.trf.xlu0  ;;  %v480_v43 = vpop.trf.xlu1 }
 0x1cc   : > { %3357 = vmatmul.msk.f32.gmra.mxu1 %vm680_vm0, %v450_v42  ;;  %3371 = vmatmul.msk.f32.gmra.mxu2 %vm680_vm0, %v480_v43 }
 0x1ce   : > { %v373_v29 = vpop.f32.mrf.mxu0 }
 0x1cf   : > { %1534 = vmatpush.msra.mxu2 %v373_v29 }
 0x1d0   : > { %v512_v46 = vpop.trf.xlu2 }
 0x1d1   : > { %3387 = vmatmul.msk.f32.gmra.mxu3 %vm680_vm0, %v512_v46  ;;  %1535 = vmatpush.msra.mxu2 %v370_v22 }
 0x1d2   : > { %420 = vmatmul.f32.gmra.mxu0 %v246_v30 }
 0x1d3   : > { %v451_v47 = vpop.trf.xlu0  ;;  %v481_v48 = vpop.trf.xlu1 }
 0x1d4   : > { %3358 = vmatmul.msk.f32.gmra.mxu1 %vm680_vm0, %v451_v47  ;;  %3372 = vmatmul.msk.f32.gmra.mxu2 %vm680_vm0, %v481_v48  ;;  %v4150_v47 = vmov 4  }
 0x1d7   : > { %616 = vxpose.xlu0.b32.start [1/2] (short) %v4324_v52, 128 }
 0x1d8   : > { %v513_v50 = vpop.trf.xlu2 }
 0x1d9   : > { %3388 = vmatmul.msk.f32.gmra.mxu3 %vm680_vm0, %v513_v50 }
 0x1db   : > { %v452_v51 = vpop.trf.xlu0  ;;  %v482_v53 = vpop.trf.xlu1 }
 0x1dc   : > { %3359 = vmatmul.msk.f32.gmra.mxu1 %vm680_vm0, %v452_v51  ;;  %3373 = vmatmul.msk.f32.gmra.mxu2 %vm680_vm0, %v482_v53 }
 0x1df   : > { %617 = vxpose.xlu0.b32.end [2/2] (short) %v4329_v54, 128 }
 0x1e0   : > { %v514_v57 = vpop.trf.xlu2 }
 0x1e1   : > { %3389 = vmatmul.msk.f32.gmra.mxu3 %vm680_vm0, %v514_v57 }
 0x1e3   : > { %v453_v52 = vpop.trf.xlu0  ;;  %v483_v59 = vpop.trf.xlu1 }
 0x1e4   : > { %3360 = vmatmul.msk.f32.gmra.mxu1 %vm680_vm0, %v453_v52  ;;  %3374 = vmatmul.msk.f32.gmra.mxu2 %vm680_vm0, %v483_v59 }
 0x1e7   : > { %648 = vxpose.xlu1.b32.start [1/2] (short) %v4334_v56, 128 }
 0x1e8   : > { %v515_v61 = vpop.trf.xlu2 }
 0x1e9   : > { %3390 = vmatmul.msk.f32.gmra.mxu3 %vm680_vm0, %v515_v61 }
 0x1eb   : > { %v454_v54 = vpop.trf.xlu0  ;;  %v484_v62 = vpop.trf.xlu1 }
 0x1ec   : > { %3361 = vmatmul.msk.f32.gmra.mxu1 %vm680_vm0, %v454_v54  ;;  %3375 = vmatmul.msk.f32.gmra.mxu2 %vm680_vm0, %v484_v62 }
 0x1ef   : > { %649 = vxpose.xlu1.b32.end [2/2] (short) %v4339_v58, 128 }
 0x1f0   : > { %v516_v0 = vpop.trf.xlu2 }
 0x1f1   : > { %3391 = vmatmul.msk.f32.gmra.mxu3 %vm680_vm0, %v516_v0 }
 0x1f3   : > { %v455_v56 = vpop.trf.xlu0  ;;  %v485_v1 = vpop.trf.xlu1 }
 0x1f4   : > { %3362 = vmatmul.msk.f32.gmra.mxu1 %vm680_vm0, %v455_v56  ;;  %3376 = vmatmul.msk.f32.gmra.mxu2 %vm680_vm0, %v485_v1 }
 0x1f7   : > { %1585 = vxpose.xlu2.b32.start [1/16] %v4146_v3, 128 }
 0x1f8   : > { %v517_v4 = vpop.trf.xlu2 }
 0x1f9   : > { %3392 = vmatmul.msk.f32.gmra.mxu3 %vm680_vm0, %v517_v4  ;;  %v4452_v18 = vpop.f32.mrf.mxu1  ;;  %v4152_v4 = vmov 6  }
 0x1fb   : > { %v486_v58 = vpop.trf.xlu1  ;;  %v536_v5 = vpop.trf.xlu0 }
 0x1fc   : > { %3377 = vmatmul.msk.f32.gmra.mxu2 %vm680_vm0, %v486_v58  ;;  %3395 = vmatmul.msk.f32.vlgmr.msrb.gmra.mxu1 %vm680_vm0, %v536_v5 }
 0x1ff   : > { %1586 = vxpose.xlu2.b32.cont [2/16] %v4146_v3, 128 }
 0x200   : > { %v518_v7 = vpop.trf.xlu2 }
 0x201   : > { %3393 = vmatmul.msk.f32.gmra.mxu3 %vm680_vm0, %v518_v7  ;;  %v4460_v25 = vpop.f32.mrf.mxu1 }
 0x203   : > { %v487_v8 = vpop.trf.xlu1  ;;  %v537_v9 = vpop.trf.xlu0 }
 0x204   : > { %3378 = vmatmul.msk.f32.gmra.mxu2 %vm680_vm0, %v487_v8  ;;  %3396 = vmatmul.msk.f32.gmra.mxu1 %vm680_vm0, %v537_v9 }
 0x207   : > { %1587 = vxpose.xlu2.b32.cont [3/16] %v4147_v12, 128 }
 0x208   : > { %v519_v13 = vpop.trf.xlu2 }
 0x209   : > { %3394 = vmatmul.msk.f32.gmra.mxu3 %vm680_vm0, %v519_v13  ;;  %v4470_v33 = vpop.f32.mrf.mxu1  ;;  %v4153_v13 = vmov 7  }
 0x20b   : > { %v538_v14 = vpop.trf.xlu0  ;;  %v568_v15 = vpop.trf.xlu1 }
 0x20c   : > { %3397 = vmatmul.msk.f32.gmra.mxu1 %vm680_vm0, %v538_v14  ;;  %3411 = vmatmul.msk.f32.vlgmr.msrb.gmra.mxu2 %vm680_vm0, %v568_v15 }
 0x20f   : > { %1588 = vxpose.xlu2.b32.cont [4/16] %v4147_v12, 128  ;;  %v4468_v31 = vpop.f32.mrf.mxu2 }
 0x210   : > { %v600_v19 = vpop.trf.xlu2 }
 0x211   : > { %3427 = vmatmul.msk.f32.vlgmr.msrb.gmra.mxu0 %vm680_vm0, %v600_v19  ;;  %v4477_v41 = vpop.f32.mrf.mxu1 }
 0x213   : > { %v539_v20 = vpop.trf.xlu0  ;;  %v569_v21 = vpop.trf.xlu1 }
 0x214   : > { %3398 = vmatmul.msk.f32.gmra.mxu1 %vm680_vm0, %v539_v20  ;;  %3412 = vmatmul.msk.f32.gmra.mxu2 %vm680_vm0, %v569_v21 }
 0x217   : > { %1589 = vxpose.xlu2.b32.cont [5/16] %v4148_v24, 128  ;;  %v4475_v37 = vpop.f32.mrf.mxu2 }
 0x218   : > { %v601_v26 = vpop.trf.xlu2 }
 0x219   : > { %3428 = vmatmul.msk.f32.gmra.mxu0 %vm680_vm0, %v601_v26  ;;  %v4487_v46 = vpop.f32.mrf.mxu1 }
 0x21b   : > { %v540_v27 = vpop.trf.xlu0  ;;  %v570_v28 = vpop.trf.xlu1 }
 0x21c   : > { %3399 = vmatmul.msk.f32.gmra.mxu1 %vm680_vm0, %v540_v27  ;;  %3413 = vmatmul.msk.f32.gmra.mxu2 %vm680_vm0, %v570_v28 }
 0x21f   : > { %1590 = vxpose.xlu2.b32.cont [6/16] %v4148_v24, 128  ;;  %v4482_v43 = vpop.f32.mrf.mxu2 }
 0x220   : > { %v602_v32 = vpop.trf.xlu2 }
 0x221   : > { %3429 = vmatmul.msk.f32.gmra.mxu0 %vm680_vm0, %v602_v32  ;;  %v4494_v53 = vpop.f32.mrf.mxu1 }
 0x223   : > { %v541_v34 = vpop.trf.xlu0  ;;  %v571_v35 = vpop.trf.xlu1 }
 0x224   : > { %3400 = vmatmul.msk.f32.gmra.mxu1 %vm680_vm0, %v541_v34  ;;  %3414 = vmatmul.msk.f32.gmra.mxu2 %vm680_vm0, %v571_v35 }
 0x227   : > { %1591 = vxpose.xlu2.b32.cont [7/16] %v4149_v36, 128  ;;  %v4489_v51 = vpop.f32.mrf.mxu2 }
 0x228   : > { %v603_v38 = vpop.trf.xlu2 }
 0x229   : > { %3430 = vmatmul.msk.f32.gmra.mxu0 %vm680_vm0, %v603_v38  ;;  %v4501_v54 = vpop.f32.mrf.mxu1 }
 0x22b   : > { %v542_v39 = vpop.trf.xlu0  ;;  %v572_v40 = vpop.trf.xlu1 }
 0x22c   : > { %3401 = vmatmul.msk.f32.gmra.mxu1 %vm680_vm0, %v542_v39  ;;  %3415 = vmatmul.msk.f32.gmra.mxu2 %vm680_vm0, %v572_v40 }
 0x22f   : > { %1592 = vxpose.xlu2.b32.cont [8/16] %v4149_v36, 128  ;;  %v4499_v59 = vpop.f32.mrf.mxu2 }
 0x230   : > { %v604_v42 = vpop.trf.xlu2 }
 0x231   : > { %3431 = vmatmul.msk.f32.gmra.mxu0 %vm680_vm0, %v604_v42  ;;  %v4509_v3 = vpop.f32.mrf.mxu1 }
 0x233   : > { %v543_v44 = vpop.trf.xlu0  ;;  %v573_v45 = vpop.trf.xlu1 }
 0x234   : > { %3402 = vmatmul.msk.f32.gmra.mxu1 %vm680_vm0, %v543_v44  ;;  %3416 = vmatmul.msk.f32.gmra.mxu2 %vm680_vm0, %v573_v45 }
 0x237   : > { %1593 = vxpose.xlu2.b32.cont [9/16] %v4150_v47, 128  ;;  %v4506_v0 = vpop.f32.mrf.mxu2 }
 0x238   : > { %v605_v48 = vpop.trf.xlu2 }
 0x239   : > { %3432 = vmatmul.msk.f32.gmra.mxu0 %vm680_vm0, %v605_v48  ;;  %v4520_v8 = vpop.f32.mrf.mxu1 }
 0x23b   : > { %v544_v49 = vpop.trf.xlu0  ;;  %v574_v50 = vpop.trf.xlu1 }
 0x23c   : > { %3403 = vmatmul.msk.f32.gmra.mxu1 %vm680_vm0, %v544_v49  ;;  %3417 = vmatmul.msk.f32.gmra.mxu2 %vm680_vm0, %v574_v50 }
 0x23f   : > { %1594 = vxpose.xlu2.b32.cont [10/16] %v4150_v47, 128  ;;  %v4515_v5 = vpop.f32.mrf.mxu2 }
 0x240   : > { %v606_v55 = vpop.trf.xlu2 }
 0x241   : > { %3433 = vmatmul.msk.f32.gmra.mxu0 %vm680_vm0, %v606_v55  ;;  %v4527_v14 = vpop.f32.mrf.mxu1 }
 0x243   : > { %v545_v57 = vpop.trf.xlu0  ;;  %v575_v52 = vpop.trf.xlu1 }
 0x244   : > { %3404 = vmatmul.msk.f32.gmra.mxu1 %vm680_vm0, %v545_v57  ;;  %3418 = vmatmul.msk.f32.gmra.mxu2 %vm680_vm0, %v575_v52 }
 0x247   : > { %1595 = vxpose.xlu2.b32.cont [11/16] %v4151_v60, 128  ;;  %v4523_v12 = vpop.f32.mrf.mxu2 }
 0x248   : > { %v607_v61 = vpop.trf.xlu2 }
 0x249   : > { %3434 = vmatmul.msk.f32.gmra.mxu0 %vm680_vm0, %v607_v61  ;;  %v4535_v21 = vpop.f32.mrf.mxu1 }
 0x24b   : > { %v546_v62 = vpop.trf.xlu0  ;;  %v576_v63 = vpop.trf.xlu1 }
 0x24c   : > { %3405 = vmatmul.msk.f32.gmra.mxu1 %vm680_vm0, %v546_v62  ;;  %3419 = vmatmul.msk.f32.gmra.mxu2 %vm680_vm0, %v576_v63 }
 0x24f   : > { %1596 = vxpose.xlu2.b32.cont [12/16] %v4151_v60, 128  ;;  %v4532_v19 = vpop.f32.mrf.mxu2  ;;  %v4570_v60 = vpop.f32.mrf.mxu3 }
 0x250   : > { %v608_v56 = vpop.trf.xlu2  ;;  %6870 = vst [vmem:[#allocation6_spill] sm:$0xff] %v4570_v60 }
 0x251   : > { %3435 = vmatmul.msk.f32.vlgmr.msra.gmra.mxu3 %vm680_vm0, %v608_v56  ;;  %v4542_v29 = vpop.f32.mrf.mxu1 }
 0x253   : > { %v547_v1 = vpop.trf.xlu0  ;;  %v577_v2 = vpop.trf.xlu1 }
 0x254   : > { %3406 = vmatmul.msk.f32.gmra.mxu1 %vm680_vm0, %v547_v1  ;;  %3420 = vmatmul.msk.f32.gmra.mxu2 %vm680_vm0, %v577_v2 }
 0x257   : > { %1597 = vxpose.xlu2.b32.cont [13/16] %v4152_v4, 128  ;;  %v4539_v24 = vpop.f32.mrf.mxu2  ;;  %v4582_v2 = vpop.f32.mrf.mxu3 }
 0x258   : > { %v609_v58 = vpop.trf.xlu2  ;;  %6871 = vst [vmem:[#allocation7_spill] sm:$0xff] %v4582_v2 }
 0x259   : > { %3436 = vmatmul.msk.f32.gmra.mxu3 %vm680_vm0, %v609_v58  ;;  %v4551_v36 = vpop.f32.mrf.mxu1 }
 0x25b   : > { %v548_v6 = vpop.trf.xlu0  ;;  %v578_v7 = vpop.trf.xlu1 }
 0x25c   : > { %3407 = vmatmul.msk.f32.gmra.mxu1 %vm680_vm0, %v548_v6  ;;  %3421 = vmatmul.msk.f32.gmra.mxu2 %vm680_vm0, %v578_v7 }
 0x25f   : > { %1598 = vxpose.xlu2.b32.cont [14/16] %v4152_v4, 128  ;;  %v4547_v32 = vpop.f32.mrf.mxu2 }
 0x260   : > { %v610_v9 = vpop.trf.xlu2 }
 0x261   : > { %3437 = vmatmul.msk.f32.gmra.mxu3 %vm680_vm0, %v610_v9  ;;  %v4558_v44 = vpop.f32.mrf.mxu1 }
 0x263   : > { %v549_v10 = vpop.trf.xlu0  ;;  %v579_v11 = vpop.trf.xlu1 }
 0x264   : > { %3408 = vmatmul.msk.f32.gmra.mxu1 %vm680_vm0, %v549_v10  ;;  %3422 = vmatmul.msk.f32.gmra.mxu2 %vm680_vm0, %v579_v11  ;;  %v4592_v10 = vpop.f32.mrf.mxu3 }
 0x265   : > { %6873 = vst [vmem:[#allocation9_spill] sm:$0xff] %v4592_v10 }
 0x267   : > { %1599 = vxpose.xlu2.b32.cont [15/16] %v4153_v13, 128  ;;  %v4554_v42 = vpop.f32.mrf.mxu2 }
 0x268   : > { %v611_v15 = vpop.trf.xlu2 }
 0x269   : > { %3438 = vmatmul.msk.f32.gmra.mxu3 %vm680_vm0, %v611_v15  ;;  %v4568_v55 = vpop.f32.mrf.mxu1 }
 0x26b   : > { %v550_v16 = vpop.trf.xlu0  ;;  %v580_v17 = vpop.trf.xlu1 }
 0x26c   : > { %3409 = vmatmul.msk.f32.gmra.mxu1 %vm680_vm0, %v550_v16  ;;  %3423 = vmatmul.msk.f32.gmra.mxu2 %vm680_vm0, %v580_v17 }
 0x26f   : > { %1600 = vxpose.xlu2.b32.end [16/16] %v4153_v13, 128  ;;  %v4564_v49 = vpop.f32.mrf.mxu2 }
 0x270   : > { %v612_v20 = vpop.trf.xlu2 }
 0x271   : > { %3439 = vmatmul.msk.f32.gmra.mxu3 %vm680_vm0, %v612_v20  ;;  %v4578_v1 = vpop.f32.mrf.mxu1 }
 0x273   : > { %v551_v22 = vpop.trf.xlu0  ;;  %v581_v23 = vpop.trf.xlu1 }
 0x274   : > { %3410 = vmatmul.msk.f32.gmra.mxu1 %vm680_vm0, %v551_v22  ;;  %3424 = vmatmul.msk.f32.gmra.mxu2 %vm680_vm0, %v581_v23  ;;  %v4604_v22 = vpop.f32.mrf.mxu3 }
 0x275   : > { %6875 = vst [vmem:[#allocation11_spill] sm:$0xff] %v4604_v22 }
 0x277   : > { %v4574_v61 = vpop.f32.mrf.mxu2 }
 0x278   : > { %v613_v26 = vpop.trf.xlu2 }
 0x279   : > { %3440 = vmatmul.msk.f32.gmra.mxu3 %vm680_vm0, %v613_v26  ;;  %v4590_v9 = vpop.f32.mrf.mxu1 }
 0x27a   : > { %6872 = vst [vmem:[#allocation8_spill] sm:$0xff] %v4590_v9 }
 0x27b   : > { %v582_v27 = vpop.trf.xlu1  ;;  %v632_v28 = vpop.trf.xlu0 }
 0x27c   : > { %3425 = vmatmul.msk.f32.gmra.mxu2 %vm680_vm0, %v582_v27  ;;  %3443 = vmatmul.msk.f32.vlgmr.msra.gmra.mxu1 %vm680_vm0, %v632_v28 }
 0x27f   : > { %v4586_v58 = vpop.f32.mrf.mxu2 }
 0x280   : > { %v614_v30 = vpop.trf.xlu2 }
 0x281   : > { %3441 = vmatmul.msk.f32.gmra.mxu3 %vm680_vm0, %v614_v30  ;;  %v4600_v17 = vpop.f32.mrf.mxu1 }
 0x283   : > { %v583_v34 = vpop.trf.xlu1  ;;  %v633_v35 = vpop.trf.xlu0 }
 0x284   : > { %3426 = vmatmul.msk.f32.gmra.mxu2 %vm680_vm0, %v583_v34  ;;  %3444 = vmatmul.msk.f32.gmra.mxu1 %vm680_vm0, %v633_v35 }
 0x287   : > { %v4596_v16 = vpop.f32.mrf.mxu2 }
 0x288   : > { %v615_v38 = vpop.trf.xlu2 }
 0x289   : > { %3442 = vmatmul.msk.f32.gmra.mxu3 %vm680_vm0, %v615_v38  ;;  %v4626_v35 = vpop.f32.mrf.mxu1 }
 0x28b   : > { %v634_v39 = vpop.trf.xlu0  ;;  %v664_v40 = vpop.trf.xlu1 }
 0x28c   : > { %3445 = vmatmul.msk.f32.gmra.mxu1 %vm680_vm0, %v634_v39  ;;  %3459 = vmatmul.msk.f32.vlgmr.msra.gmra.mxu2 %vm680_vm0, %v664_v40  ;;  %v4629_v40 = vpop.f32.mrf.mxu3 }
 0x28d   : > { %6877 = vst [vmem:[#allocation13_spill] sm:$0xff] %v4629_v40 }
 0x28f   : > { %v4610_v27 = vpop.f32.mrf.mxu2 }
 0x290   : > { %v4560_v45 = vpop.trf.xlu2  ;;  %6876 = vst [vmem:[#allocation12_spill] sm:$0xff] %v4610_v27 }
 0x291   : > { %6869 = vst [vmem:[#allocation5_spill] sm:$0xff] %v4560_v45  ;;  %vm1617_vm2 = vcmp.eq.s32.totalorder %v4560_v45, 0 }
 0x292   : > { %v4621_v30 = vsel %vm1617_vm2, %v4452_v18, -1e+30 }
 0x293   : > { %v635_v47 = vpop.trf.xlu0  ;;  %v665_v48 = vpop.trf.xlu1 }
 0x294   : > { %3446 = vmatmul.msk.f32.gmra.mxu1 %vm680_vm0, %v635_v47  ;;  %3460 = vmatmul.msk.f32.gmra.mxu2 %vm680_vm0, %v665_v48 }
 0x297   : > { %v4645_v47 = vpop.f32.mrf.mxu2 }
 0x298   : > { %v4566_v50 = vpop.trf.xlu2  ;;  %6879 = vst [vmem:[#allocation15_spill] sm:$0xff] %v4645_v47  ;;  %v4734_v47 = vsel %vm1617_vm2, %v4468_v31, -1e+30 }
 0x299   : > { %vm1618_vm1 = vcmp.eq.s32.totalorder %v4566_v50, 0  ;;  %6884 = vst [vmem:[#allocation20_spill] sm:$0xff] %v4734_v47 }
 0x29a   : > { %v4615_v28 = vsel %vm1618_vm1, %v4460_v25, -1e+30 }
 0x29b   : > { %v636_v57 = vpop.trf.xlu0  ;;  %v666_v52 = vpop.trf.xlu1 }
 0x29c   : > { %3447 = vmatmul.msk.f32.gmra.mxu1 %vm680_vm0, %v636_v57  ;;  %3461 = vmatmul.msk.f32.gmra.mxu2 %vm680_vm0, %v666_v52 }
 0x2a0   : > { %v4576_v62 = vpop.trf.xlu2 }
 0x2a1   : > { %vm1619_vm4 = vcmp.eq.s32.totalorder %v4576_v62, 1 }
 0x2a2   : > { %v4643_v25 = vsel %vm1619_vm4, %v4482_v43, -1e+30 }
 0x2a3   : > { %v637_v63 = vpop.trf.xlu0  ;;  %v667_v56 = vpop.trf.xlu1  ;;  %6878 = vst [vmem:[#allocation14_spill] sm:$0xff] %v4643_v25 }
 0x2a4   : > { %3448 = vmatmul.msk.f32.gmra.mxu1 %vm680_vm0, %v637_v63  ;;  %3462 = vmatmul.msk.f32.gmra.mxu2 %vm680_vm0, %v667_v56  ;;  %v4651_v63 = vpop.f32.mrf.mxu1 }
 0x2a8   : > { %v4584_v4 = vpop.trf.xlu2 }
 0x2a9   : > { %vm1620_vm3 = vcmp.eq.s32.totalorder %v4584_v4, 1 }
 0x2aa   : > { %v4637_v18 = vsel %vm1620_vm3, %v4477_v41, -1e+30  ;;  %v4656_v41 = vpop.f32.mrf.mxu3 }
 0x2ab   : > { %v638_v6 = vpop.trf.xlu0  ;;  %v668_v7 = vpop.trf.xlu1 }
 0x2ac   : > { %3449 = vmatmul.msk.f32.gmra.mxu1 %vm680_vm0, %v638_v6  ;;  %3463 = vmatmul.msk.f32.gmra.mxu2 %vm680_vm0, %v668_v7  ;;  %v4672_v7 = vpop.f32.mrf.mxu2 }
 0x2ad   : > { %6880 = vst [vmem:[#allocation16_spill] sm:$0xff] %v4672_v7 }
 0x2b0   : > { %v4594_v11 = vpop.trf.xlu2 }
 0x2b1   : > { %6874 = vst [vmem:[#allocation10_spill] sm:$0xff] %v4594_v11  ;;  %vm1621_vm5 = vcmp.eq.s32.totalorder %v4594_v11, 2 }
 0x2b2   : > { %v4661_v43 = vsel %vm1621_vm5, %v4487_v46, -1e+30  ;;  %v4677_v46 = vpop.f32.mrf.mxu1 }
 0x2b3   : > { %v639_v13 = vpop.trf.xlu0  ;;  %v669_v15 = vpop.trf.xlu1 }
 0x2b4   : > { %3450 = vmatmul.msk.f32.gmra.mxu1 %vm680_vm0, %v639_v13  ;;  %3464 = vmatmul.msk.f32.gmra.mxu2 %vm680_vm0, %v669_v15 }
 0x2b8   : > { %v4602_v20 = vpop.trf.xlu2 }
 0x2b9   : > { %vm1622_vm7 = vcmp.eq.s32.totalorder %v4602_v20, 2 }
 0x2bb   : > { %v640_v23 = vpop.trf.xlu0  ;;  %v670_v26 = vpop.trf.xlu1 }
 0x2bc   : > { %3451 = vmatmul.msk.f32.gmra.mxu1 %vm680_vm0, %v640_v23  ;;  %3465 = vmatmul.msk.f32.gmra.mxu2 %vm680_vm0, %v670_v26  ;;  %v4688_v23 = vsel %vm1622_vm7, %v4506_v0, -1e+30  ;;  %v990_v26 = vpop.f32.mrf.mxu3  ;;  %v4707_v0 = vsel %vm1619_vm4, %v4470_v33, -1e+30 }
 0x2bf   : > { %1795 = vmax.xlane.f32.xlu1 %v4615_v28 }
 0x2c0   : > { %v4623_v34 = vpop.trf.xlu2  ;;  %1793 = vmax.xlane.f32.xlu0 %v4621_v30 }
 0x2c1   : > { %vm1623_vm6 = vcmp.eq.s32.totalorder %v4623_v34, 3 }
 0x2c2   : > { %v4667_v56 = vsel %vm1623_vm6, %v4501_v54, -1e+30  ;;  %v4682_v54 = vsel %vm1622_vm7, %v4494_v53, -1e+30  ;;  %v4701_v53 = vsel %vm1618_vm1, %v4475_v37, -1e+30 }
 0x2c3   : > { %v641_v38 = vpop.trf.xlu0  ;;  %v671_v39 = vpop.trf.xlu1  ;;  %6882 = vst [vmem:[#allocation18_spill] sm:$0xff] %v4701_v53  ;;  %v4762_v60 = vsel %vm1623_vm6, %v990_v26, -1e+30 }
 0x2c4   : > { %3452 = vmatmul.msk.f32.gmra.mxu1 %vm680_vm0, %v641_v38  ;;  %3466 = vmatmul.msk.f32.gmra.mxu2 %vm680_vm0, %v671_v39  ;;  %v993_v37 = vpop.f32.mrf.mxu3  ;;  %6886 = vst [vmem:[#allocation22_spill] sm:$0xff] %v4762_v60 }
 0x2c7   : > { %1799 = vmax.xlane.f32.xlu1 %v4637_v18 }
 0x2c8   : > { %v4647_v48 = vpop.trf.xlu2  ;;  %1829 = vmax.xlane.f32.xlu0 %v4643_v25 }
 0x2c9   : > { %vm1624_vm10 = vcmp.eq.s32.totalorder %v4647_v48, 3 }
 0x2ca   : > { %v4779_v26 = vsel %vm1624_vm10, %v4523_v12, -1e+30 }
 0x2cb   : > { %v642_v57 = vpop.trf.xlu0  ;;  %v672_v52 = vpop.trf.xlu1 }
 0x2cc   : > { %3453 = vmatmul.msk.f32.gmra.mxu1 %vm680_vm0, %v642_v57  ;;  %3467 = vmatmul.msk.f32.gmra.mxu2 %vm680_vm0, %v672_v52  ;;  %v4693_v52 = vpop.f32.mrf.mxu2 }
 0x2cd   : > { %6881 = vst [vmem:[#allocation17_spill] sm:$0xff] %v4693_v52  ;;  %v996_v52 = vpop.f32.mrf.mxu3 }
 0x2cf   : > { %1801 = vmax.xlane.f32.xlu1 %v4661_v43 }
 0x2d0   : > { %v4669_v6 = vpop.trf.xlu2  ;;  %1805 = vmax.xlane.f32.xlu0 %v4667_v56 }
 0x2d1   : > { %vm1625_vm9 = vcmp.eq.s32.totalorder %v4669_v6, 4 }
 0x2d2   : > { %v4752_v31 = vsel %vm1625_vm9, %v4520_v8, -1e+30 }
 0x2d3   : > { %v643_v13 = vpop.trf.xlu0  ;;  %v673_v15 = vpop.trf.xlu1 }
 0x2d4   : > { %3454 = vmatmul.msk.f32.gmra.mxu1 %vm680_vm0, %v643_v13  ;;  %3468 = vmatmul.msk.f32.gmra.mxu2 %vm680_vm0, %v673_v15  ;;  %v4714_v15 = vpop.f32.mrf.mxu1  ;;  %v4723_v33 = vpop.f32.mrf.mxu2 }
 0x2d5   : > { %6883 = vst [vmem:[#allocation19_spill] sm:$0xff] %v4723_v33 }
 0x2d7   : > { %1803 = vmax.xlane.f32.xlu1 %v4682_v54 }
 0x2d8   : > { %v4690_v38 = vpop.trf.xlu2  ;;  %1835 = vmax.xlane.f32.xlu0 %v4688_v23 }
 0x2d9   : > { %vm1626_vm8 = vcmp.eq.s32.totalorder %v4690_v38, 4 }
 0x2da   : > { %v4712_v13 = vsel %vm1626_vm8, %v4527_v14, -1e+30  ;;  %v4728_v14 = vsel %vm1621_vm5, %v4499_v59, -1e+30 }
 0x2db   : > { %v644_v39 = vpop.trf.xlu0  ;;  %v674_v57 = vpop.trf.xlu1 }
 0x2dc   : > { %3455 = vmatmul.msk.f32.gmra.mxu1 %vm680_vm0, %v644_v39  ;;  %3469 = vmatmul.msk.f32.gmra.mxu2 %vm680_vm0, %v674_v57  ;;  %v4745_v59 = vpop.f32.mrf.mxu1 }
 0x2df   : > { %1827 = vmax.xlane.f32.xlu1 %v4701_v53 }
 0x2e0   : > { %v4716_v39 = vpop.trf.xlu2  ;;  %1797 = vmax.xlane.f32.xlu2 %v4707_v0  ;;  %1811 = vmax.xlane.f32.xlu0 %v4712_v13 }
 0x2e1   : > { %vm1627_vm12 = vcmp.eq.s32.totalorder %v4716_v39, 5 }
 0x2e3   : > { %v645_v57 = vpop.trf.xlu0  ;;  %v675_v27 = vpop.trf.xlu1 }
 0x2e4   : > { %3456 = vmatmul.msk.f32.gmra.mxu1 %vm680_vm0, %v645_v57  ;;  %3470 = vmatmul.msk.f32.gmra.mxu2 %vm680_vm0, %v675_v27  ;;  %v4739_v57 = vsel %vm1625_vm9, %v4532_v19, -1e+30  ;;  %v4758_v19 = vsel %vm1620_vm3, %v4489_v51, -1e+30  ;;  %v4771_v53 = vpop.f32.mrf.mxu1  ;;  %v999_v51 = vpop.f32.mrf.mxu3 }
 0x2e5   : > { %6885 = vst [vmem:[#allocation21_spill] sm:$0xff] %v4758_v19  ;;  %v4813_v2 = vsel %vm1626_vm8, %v999_v51, -1e+30  ;;  %v4831_v51 = vsel %vm1626_vm8, %v4539_v24, -1e+30 }
 0x2e6   : > { %6890 = vst [vmem:[#allocation26_spill] sm:$0xff] %v4813_v2  ;;  %v4850_v24 = vsel %vm1625_vm9, %v996_v52, -1e+30 }
 0x2e7   : > { %1833 = vmax.xlane.f32.xlu1 %v4728_v14  ;;  %6893 = vst [vmem:[#allocation29_spill] sm:$0xff] %v4850_v24 }
 0x2e8   : > { %v4741_v27 = vpop.trf.xlu2  ;;  %1825 = vmax.xlane.f32.xlu2 %v4734_v47  ;;  %1841 = vmax.xlane.f32.xlu0 %v4739_v57  ;;  %v4764_v47 = vpop.f32.mrf.mxu2 }
 0x2e9   : > { %6887 = vst [vmem:[#allocation23_spill] sm:$0xff] %v4764_v47  ;;  %vm1628_vm11 = vcmp.eq.s32.totalorder %v4741_v27, 5 }
 0x2ea   : > { %v4790_v47 = vsel %vm1628_vm11, %v4542_v29, -1e+30  ;;  %v4809_v29 = vsel %vm1623_vm6, %v4515_v5, -1e+30  ;;  %v4825_v5 = vsel %vm1624_vm10, %v993_v37, -1e+30 }
 0x2eb   : > { %v646_v7 = vpop.trf.xlu0  ;;  %v676_v33 = vpop.trf.xlu1  ;;  %6889 = vst [vmem:[#allocation25_spill] sm:$0xff] %v4809_v29 }
 0x2ec   : > { %3457 = vmatmul.msk.f32.gmra.mxu1 %vm680_vm0, %v646_v7  ;;  %3471 = vmatmul.msk.f32.gmra.mxu2 %vm680_vm0, %v676_v33  ;;  %v1002_v25 = vpop.f32.mrf.mxu3  ;;  %6892 = vst [vmem:[#allocation28_spill] sm:$0xff] %v4825_v5 }
 0x2ed   : > { %v4892_v45 = vsel %vm1627_vm12, %v1002_v25, -1e+30 }
 0x2ee   : > { %6896 = vst [vmem:[#allocation32_spill] sm:$0xff] %v4892_v45 }
 0x2ef   : > { %1809 = vmax.xlane.f32.xlu1 %v4752_v31 }
 0x2f0   : > { %v4766_v7 = vpop.trf.xlu2  ;;  %1831 = vmax.xlane.f32.xlu2 %v4758_v19  ;;  %1869 = vmax.xlane.f32.xlu0 %v4762_v60  ;;  %v4785_v60 = vsel %vm1624_vm10, %v4509_v3, -1e+30  ;;  %v4796_v12 = vpop.f32.mrf.mxu2  ;;  %v4803_v3 = vsel %vm1627_vm12, %v4535_v21, -1e+30 }
 0x2f1   : > { %6888 = vst [vmem:[#allocation24_spill] sm:$0xff] %v4796_v12  ;;  %vm1629_vm14 = vcmp.eq.s32.totalorder %v4766_v7, 6 }
 0x2f2   : > { %v4845_v37 = vsel %vm1629_vm14, %v4551_v36, -1e+30  ;;  %v4862_v36 = vsel %vm1627_vm12, %v4547_v32, -1e+30  ;;  %v4876_v19 = vsel %vm1629_vm14, %v4564_v49, -1e+30 }
 0x2f3   : > { %v647_v8 = vpop.trf.xlu0  ;;  %v677_v33 = vpop.trf.xlu1  ;;  %v4882_v32 = vsel %vm1628_vm11, %v4554_v42, -1e+30 }
 0x2f4   : > { %3458 = vmatmul.msk.f32.gmra.mxu1 %vm680_vm0, %v647_v8  ;;  %3472 = vmatmul.msk.f32.gmra.mxu2 %vm680_vm0, %v677_v33 }
 0x2f7   : > { %1839 = vmax.xlane.f32.xlu1 %v4779_v26 }
 0x2f8   : > { %v4792_v8 = vpop.trf.xlu2  ;;  %1807 = vmax.xlane.f32.xlu2 %v4785_v60  ;;  %1815 = vmax.xlane.f32.xlu0 %v4790_v47  ;;  %v4819_v12 = vpop.f32.mrf.mxu2 }
 0x2f9   : > { %6891 = vst [vmem:[#allocation27_spill] sm:$0xff] %v4819_v12  ;;  %vm1630_vm15 = vcmp.eq.s32.totalorder %v4792_v8, 6 }
 0x2fa   : > { %v4868_v52 = vsel %vm1630_vm15, %v4558_v44, -1e+30 }
 0x2fb   : > { %v678_v33 = vpop.trf.xlu1 }
 0x2fc   : > { %3473 = vmatmul.msk.f32.gmra.mxu2 %vm680_vm0, %v678_v33 }
 0x2ff   : > { %1813 = vmax.xlane.f32.xlu1 %v4803_v3 }
 0x300   : > { %1837 = vmax.xlane.f32.xlu2 %v4809_v29  ;;  %1875 = vmax.xlane.f32.xlu0 %v4813_v2  ;;  %v4817_v33 = vpop.trf.xlu2 }
 0x301   : > { %vm1631_vm13 = vcmp.eq.s32.totalorder %v4817_v33, 7 }
 0x302   : > { %v4836_v2 = vsel %vm1631_vm13, %v4568_v55, -1e+30  ;;  %v4855_v55 = vsel %vm1630_vm15, %v4574_v61, -1e+30  ;;  %v4871_v61 = vpop.f32.mrf.mxu0  ;;  %v4911_v25 = vsel %vm1631_vm13, %v4586_v58, -1e+30 }
 0x303   : > { %v679_v21 = vpop.trf.xlu1  ;;  %6894 = vst [vmem:[#allocation30_spill] sm:$0xff] %v4871_v61 }
 0x304   : > { %3474 = vmatmul.msk.f32.gmra.mxu2 %vm680_vm0, %v679_v21  ;;  %v1005_v21 = vpop.f32.mrf.mxu3 }
 0x305   : > { %v4903_v9 = vsel %vm1628_vm11, %v1005_v21, -1e+30 }
 0x306   : > { %6897 = vst [vmem:[#allocation33_spill] sm:$0xff] %v4903_v9 }
 0x307   : > { %1871 = vmax.xlane.f32.xlu1 %v4825_v5 }
 0x308   : > { %1843 = vmax.xlane.f32.xlu2 %v4831_v51  ;;  %1821 = vmax.xlane.f32.xlu0 %v4836_v2  ;;  %v4885_v44 = vpop.trf.xlu2 }
 0x309   : > { %vm1632_vm0 = vcmp.eq.s32.totalorder %v4885_v44, 7 }
 0x30a   : > { %v4888_v61 = vpop.f32.mrf.mxu0  ;;  %v4898_v49 = vsel %vm1632_vm0, %v4578_v1, -1e+30  ;;  %v4918_v21 = vsel %vm1632_vm0, %v4596_v16, -1e+30 }
 0x30b   : > { %6895 = vst [vmem:[#allocation31_spill] sm:$0xff] %v4888_v61 }
 0x30c   : > { %v1008_v5 = vpop.f32.mrf.mxu3 }
 0x30f   : > { %1817 = vmax.xlane.f32.xlu1 %v4845_v37 }
 0x310   : > { %1873 = vmax.xlane.f32.xlu2 %v4850_v24  ;;  %1851 = vmax.xlane.f32.xlu0 %v4855_v55 }
 0x312   : > { %v4905_v10 = vpop.f32.mrf.mxu0 }
 0x313   : > { %6898 = vst [vmem:[#allocation34_spill] sm:$0xff] %v4905_v10  ;;  %v4923_v10 = vsel %vm1629_vm14, %v1008_v5, -1e+30 }
 0x314   : > { %v1011_v24 = vpop.f32.mrf.mxu3  ;;  %6899 = vst [vmem:[#allocation35_spill] sm:$0xff] %v4923_v10 }
 0x317   : > { %1845 = vmax.xlane.f32.xlu1 %v4862_v36 }
 0x318   : > { %1819 = vmax.xlane.f32.xlu2 %v4868_v52 }
 0x31c   : > { %v1014_v42 = vpop.f32.mrf.mxu3 }
 0x31d   : > { %v4936_v5 = vsel %vm1631_vm13, %v1014_v42, -1e+30 }
 0x31e   : > { %6902 = vst [vmem:[#allocation38_spill] sm:$0xff] %v4936_v5 }
 0x31f   : > { %1849 = vmax.xlane.f32.xlu1 %v4876_v19 }
 0x320   : > { %1847 = vmax.xlane.f32.xlu2 %v4882_v32 }
 0x324   : > { %v1017_v1 = vpop.f32.mrf.mxu3 }
 0x327   : > { %1877 = vmax.xlane.f32.xlu1 %v4892_v45 }
 0x328   : > { %1823 = vmax.xlane.f32.xlu2 %v4898_v49 }
 0x32f   : > { %1879 = vmax.xlane.f32.xlu1 %v4903_v9  ;;  %v4927_v9 = vpop.f32.mrf.mxu0 }
 0x330   : > { %1853 = vmax.xlane.f32.xlu2 %v4911_v25  ;;  %6900 = vst [vmem:[#allocation36_spill] sm:$0xff] %v4927_v9  ;;  %v4958_v9 = vsel %vm1630_vm15, %v1011_v24, -1e+30 }
 0x331   : > { %6909 = vst [vmem:[#allocation45_spill] sm:$0xff] %v4958_v9 }
 0x332   : > { %v1796_v45 = vpop.xlane.xlu1 %1795 }
 0x333   : > { %v1794_v61 = vpop.xlane.xlu0 %1793  ;;  %v2050_v58 = vsub.f32 %v4615_v28, %v1796_v45 }
 0x334   : > { %v2049_v12 = vsub.f32 %v4621_v30, %v1794_v61  ;;  %v4929_v30 = vpop.f32.mrf.mxu3 }
 0x335   : > { %v2179_v16 = vmul.f32 1.442695, %v2050_v58 }
 0x336   : > { %v2177_v29 = vmul.f32 1.442695, %v2049_v12 }
 0x337   : > { %1855 = vmax.xlane.f32.xlu1 %v4918_v21 }
 0x338   : > { %3570 = vpow2.f32 %v2177_v29  ;;  %1881 = vmax.xlane.f32.xlu2 %v4923_v10  ;;  %v4942_v29 = vpop.f32.mrf.mxu0 }
 0x339   : > { %6904 = vst [vmem:[#allocation40_spill] sm:$0xff] %v4942_v29  ;;  %v4962_v29 = vsel %vm1632_vm0, %v1017_v1, -1e+30 }
 0x33a   : > { %v1800_v12 = vpop.xlane.xlu1 %1799 }
 0x33b   : > { %v2052_v61 = vsub.f32 %v4637_v18, %v1800_v12  ;;  %v4940_v45 = vpop.xlane.xlu0 %1829 }
 0x33c   : > { %6903 = vst [vmem:[#allocation39_spill] sm:$0xff] %v4940_v45  ;;  %v4944_v18 = vpop.f32.mrf.mxu3 }
 0x33d   : > { %v2183_v40 = vmul.f32 1.442695, %v2052_v61  ;;  %6905 = vst [vmem:[#allocation41_spill] sm:$0xff] %v4944_v18 }
 0x33e   : > { %v4932_v22 = vpop.eup %3570 }
 0x33f   : > { %6901 = vst [vmem:[#allocation37_spill] sm:$0xff] %v4932_v22  ;;  %3572 = vpow2.f32 %v2183_v40  ;;  %2433 = vadd.xlane.f32.xlu0 %v4932_v22  ;;  %1885 = vmax.xlane.f32.xlu1 %v4936_v5  ;;  %v1109_v22 = vpop.f32.mrf.mxu1 }
 0x340   : > { %3574 = vpow2.f32 %v2179_v16  ;;  %v4952_v61 = vpop.f32.mrf.mxu0 }
 0x341   : > { %6908 = vst [vmem:[#allocation44_spill] sm:$0xff] %v4952_v61 }
 0x342   : > { %v1802_v28 = vpop.xlane.xlu1 %1801 }
 0x343   : > { %v1806_v42 = vpop.xlane.xlu0 %1805 }
 0x344   : > { %v4954_v16 = vpop.f32.mrf.mxu3 }
 0x345   : > { %v4946_v58 = vpop.eup %3572 }
 0x346   : > { %6906 = vst [vmem:[#allocation42_spill] sm:$0xff] %v4946_v58  ;;  %v4948_v12 = vpop.eup %3574 }
 0x347   : > { %6907 = vst [vmem:[#allocation43_spill] sm:$0xff] %v4948_v12  ;;  %2435 = vadd.xlane.f32.xlu0 %v4948_v12  ;;  %2439 = vadd.xlane.f32.xlu1 %v4946_v58  ;;  %v2055_v12 = vsub.f32 %v4667_v56, %v1806_v42 }
 0x348   : > { %v4983_v56 = vpop.f32.mrf.mxu0 }
 0x349   : > { %v2189_v5 = vmul.f32 1.442695, %v2055_v12  ;;  %6913 = vst [vmem:[#allocation49_spill] sm:$0xff] %v4983_v56 }
 0x34a   : > { %v1804_v40 = vpop.xlane.xlu1 %1803 }
 0x34b   : > { %v2054_v10 = vsub.f32 %v4682_v54, %v1804_v40  ;;  %v4971_v18 = vpop.xlane.xlu0 %1835  ;;  %v4976_v54 = vsel %vm1621_vm5, %v4677_v46, -1e+30  ;;  %v4981_v40 = vsel %vm1622_vm7, %v4714_v15, -1e+30  ;;  %v4991_v46 = vpop.f32.mrf.mxu1 }
 0x34c   : > { %6911 = vst [vmem:[#allocation47_spill] sm:$0xff] %v4976_v54 }
 0x34d   : > { %v2187_v58 = vmul.f32 1.442695, %v2054_v10  ;;  %6912 = vst [vmem:[#allocation48_spill] sm:$0xff] %v4981_v40  ;;  %v4987_v10 = vpop.f32.mrf.mxu3 }
 0x34f   : > { %1883 = vmax.xlane.f32.xlu0 %v4958_v9  ;;  %1887 = vmax.xlane.f32.xlu1 %v4962_v29  ;;  %3576 = vpow2.f32 %v2187_v58 }
 0x352   : > { %v4968_v61 = vpop.xlane.xlu1 %1827 }
 0x353   : > { %6910 = vst [vmem:[#allocation46_spill] sm:$0xff] %v4968_v61  ;;  %v1798_v45 = vpop.xlane.xlu2 %1797  ;;  %v5001_v58 = vpop.xlane.xlu0 %1811 }
 0x354   : > { %v2051_v24 = vsub.f32 %v4707_v0, %v1798_v45  ;;  %v1115_v61 = vpop.f32.mrf.mxu1 }
 0x355   : > { %v4995_v12 = vpop.eup %3576 }
 0x356   : > { %v2181_v1 = vmul.f32 1.442695, %v2051_v24  ;;  %6915 = vst [vmem:[#allocation51_spill] sm:$0xff] %v4995_v12  ;;  %v5007_v24 = vpop.f32.mrf.mxu0 }
 0x357   : > { %1897 = vmax.xlane.f32.xlu0 %v4976_v54  ;;  %1899 = vmax.xlane.f32.xlu1 %v4981_v40  ;;  %6918 = vst [vmem:[#allocation54_spill] sm:$0xff] %v5007_v24 }
 0x358   : > { %3578 = vpow2.f32 %v2181_v1  ;;  %v1347_v1 = vpop.f32.mrf.mxu3 }
 0x359   : > { %3580 = vpow2.f32 %v2189_v5  ;;  %v2053_v5 = vsub.f32 %v4661_v43, %v1802_v28  ;;  %v5020_v43 = vsel %vm1624_vm10, %v4771_v53, -1e+30 }
 0x35a   : > { %v4989_v0 = vpop.xlane.xlu1 %1833  ;;  %6921 = vst [vmem:[#allocation57_spill] sm:$0xff] %v5020_v43 }
 0x35b   : > { %v4993_v45 = vpop.xlane.xlu2 %1825  ;;  %v1842_v28 = vpop.xlane.xlu0 %1841 }
 0x35c   : > { %6914 = vst [vmem:[#allocation50_spill] sm:$0xff] %v4993_v45  ;;  %v2185_v45 = vmul.f32 1.442695, %v2053_v5  ;;  %v5031_v5 = vpop.f32.mrf.mxu2 }
 0x35e   : > { %v4997_v15 = vpop.eup %3578 }
 0x35f   : > { %6916 = vst [vmem:[#allocation52_spill] sm:$0xff] %v4997_v15  ;;  %v4999_v42 = vpop.eup %3580  ;;  %2437 = vadd.xlane.f32.xlu2 %v4997_v15  ;;  %2443 = vadd.xlane.f32.xlu0 %v4995_v12  ;;  %v5015_v15 = vsel %vm1620_vm3, %v4651_v63, -1e+30 }
 0x360   : > { %6917 = vst [vmem:[#allocation53_spill] sm:$0xff] %v4999_v42  ;;  %2445 = vadd.xlane.f32.xlu1 %v4999_v42  ;;  %v1350_v53 = vpop.f32.mrf.mxu3 }
 0x361   : > { %6920 = vst [vmem:[#allocation56_spill] sm:$0xff] %v5015_v15 }
 0x362   : > { %v1810_v56 = vpop.xlane.xlu1 %1809 }
 0x363   : > { %v2057_v54 = vsub.f32 %v4752_v31, %v1810_v56  ;;  %v5010_v40 = vpop.xlane.xlu2 %1831  ;;  %v5026_v31 = vsel %vm1625_vm9, %v1109_v22, -1e+30  ;;  %v5043_v22 = vsel %vm1630_vm15, %v1350_v53, -1e+30  ;;  %v5059_v53 = vsel %vm1623_vm6, %v4745_v59, -1e+30 }
 0x364   : > { %6919 = vst [vmem:[#allocation55_spill] sm:$0xff] %v5010_v40 }
 0x365   : > { %v2193_v9 = vmul.f32 1.442695, %v2057_v54  ;;  %6922 = vst [vmem:[#allocation58_spill] sm:$0xff] %v5026_v31  ;;  %v5029_v54 = vpop.f32.mrf.mxu0 }
 0x366   : > { %6923 = vst [vmem:[#allocation59_spill] sm:$0xff] %v5029_v54 }
 0x367   : > { %3582 = vpow2.f32 %v2193_v9  ;;  %1895 = vmax.xlane.f32.xlu2 %v5015_v15  ;;  %1903 = vmax.xlane.f32.xlu0 %v5020_v43  ;;  %v5037_v15 = vpop.f32.mrf.mxu1  ;;  %6926 = vst [vmem:[#allocation62_spill] sm:$0xff] %v5043_v22  ;;  %v5047_v43 = vpop.xlane.xlu0 %1869 }
 0x368   : > { %3584 = vpow2.f32 %v2185_v45  ;;  %1905 = vmax.xlane.f32.xlu1 %v5026_v31  ;;  %6927 = vst [vmem:[#allocation63_spill] sm:$0xff] %v5047_v43 }
 0x369   : > { %6929 = vst [vmem:[#allocation65_spill] sm:$0xff] %v5059_v53 }
 0x36a   : > { %v1840_v63 = vpop.xlane.xlu1 %1839 }
 0x36b   : > { %v1808_v56 = vpop.xlane.xlu2 %1807 }
 0x36c   : > { %v2056_v45 = vsub.f32 %v4785_v60, %v1808_v56  ;;  %v5063_v60 = vsel %vm1629_vm14, %v1347_v1, -1e+30 }
 0x36d   : > { %v5033_v9 = vpop.eup %3582  ;;  %v5052_v40 = vpop.f32.mrf.mxu0  ;;  %6930 = vst [vmem:[#allocation66_spill] sm:$0xff] %v5063_v60 }
 0x36e   : > { %6924 = vst [vmem:[#allocation60_spill] sm:$0xff] %v5033_v9  ;;  %v5035_v24 = vpop.eup %3584  ;;  %v2191_v42 = vmul.f32 1.442695, %v2056_v45 }
 0x36f   : > { %6925 = vst [vmem:[#allocation61_spill] sm:$0xff] %v5035_v24  ;;  %2441 = vadd.xlane.f32.xlu2 %v5035_v24  ;;  %2449 = vadd.xlane.f32.xlu0 %v5033_v9  ;;  %v5054_v9 = vpop.f32.mrf.mxu2 }
 0x370   : > { %1979 = vmax.xlane.f32.xlu1 %v5043_v22  ;;  %6928 = vst [vmem:[#allocation64_spill] sm:$0xff] %v5052_v40  ;;  %v1816_v40 = vpop.xlane.xlu0 %1815 }
 0x372   : > { %v1814_v54 = vpop.xlane.xlu1 %1813 }
 0x373   : > { %v2059_v31 = vsub.f32 %v4803_v3, %v1814_v54  ;;  %v5050_v12 = vpop.xlane.xlu2 %1837  ;;  %v2072_v3 = vsub.f32 %v4779_v26, %v1840_v63  ;;  %v5084_v26 = vsel %vm1626_vm8, %v4991_v46, -1e+30  ;;  %v2073_v63 = vsub.f32 %v4739_v57, %v1842_v28 }
 0x374   : > { %6933 = vst [vmem:[#allocation69_spill] sm:$0xff] %v5084_v26  ;;  %v5102_v57 = vsel %vm1627_vm12, %v1115_v61, -1e+30  ;;  %v1353_v61 = vpop.f32.mrf.mxu3 }
 0x375   : > { %v2197_v24 = vmul.f32 1.442695, %v2059_v31  ;;  %v5068_v31 = vpop.f32.mrf.mxu1  ;;  %v2223_v59 = vmul.f32 1.442695, %v2072_v3  ;;  %v2225_v46 = vmul.f32 1.442695, %v2073_v63 }
 0x376   : > { %6936 = vst [vmem:[#allocation72_spill] sm:$0xff] %v5102_v57 }
 0x377   : > { %3586 = vpow2.f32 %v2197_v24  ;;  %1901 = vmax.xlane.f32.xlu2 %v5059_v53  ;;  %1977 = vmax.xlane.f32.xlu0 %v5063_v60  ;;  %v2058_v24 = vsub.f32 %v4712_v13, %v5001_v58  ;;  %v5091_v3 = vpop.f32.mrf.mxu2  ;;  %v2060_v13 = vsub.f32 %v4790_v47, %v1816_v40  ;;  %v5110_v47 = vsel %vm1628_vm11, %v4987_v10, -1e+30 }
 0x378   : > { %3588 = vpow2.f32 %v2191_v42  ;;  %v5086_v42 = vpop.f32.mrf.mxu0  ;;  %6938 = vst [vmem:[#allocation74_spill] sm:$0xff] %v5110_v47  ;;  %v5118_v63 = vpop.xlane.xlu0 %1875 }
 0x379   : > { %6934 = vst [vmem:[#allocation70_spill] sm:$0xff] %v5086_v42  ;;  %3590 = vpow2.f32 %v2223_v59  ;;  %v2195_v58 = vmul.f32 1.442695, %v2058_v24  ;;  %v2199_v42 = vmul.f32 1.442695, %v2060_v13 }
 0x37a   : > { %v5070_v54 = vpop.xlane.xlu1 %1871  ;;  %6940 = vst [vmem:[#allocation76_spill] sm:$0xff] %v5118_v63 }
 0x37b   : > { %6931 = vst [vmem:[#allocation67_spill] sm:$0xff] %v5070_v54  ;;  %v5072_v56 = vpop.xlane.xlu2 %1843  ;;  %3592 = vpow2.f32 %v2195_v58 }
 0x37c   : > { %3594 = vpow2.f32 %v2225_v46 }
 0x37d   : > { %v5074_v45 = vpop.eup %3586  ;;  %v5096_v60 = vpop.f32.mrf.mxu1  ;;  %3596 = vpow2.f32 %v2199_v42 }
 0x37e   : > { %v5076_v1 = vpop.eup %3588  ;;  %2453 = vadd.xlane.f32.xlu1 %v5074_v45 }
 0x37f   : > { %6932 = vst [vmem:[#allocation68_spill] sm:$0xff] %v5076_v1  ;;  %2447 = vadd.xlane.f32.xlu2 %v5076_v1  ;;  %1907 = vmax.xlane.f32.xlu0 %v5084_v26  ;;  %v5104_v28 = vpop.eup %3590  ;;  %v5116_v59 = vpop.f32.mrf.mxu2 }
 0x380   : > { %6937 = vst [vmem:[#allocation73_spill] sm:$0xff] %v5104_v28  ;;  %v5114_v40 = vpop.f32.mrf.mxu0  ;;  %v1822_v26 = vpop.xlane.xlu0 %1821 }
 0x381   : > { %6939 = vst [vmem:[#allocation75_spill] sm:$0xff] %v5114_v40  ;;  %v5120_v58 = vpop.eup %3592 }
 0x382   : > { %v5094_v43 = vpop.xlane.xlu1 %1817  ;;  %6941 = vst [vmem:[#allocation77_spill] sm:$0xff] %v5120_v58  ;;  %v5122_v22 = vpop.eup %3594 }
 0x383   : > { %v5098_v54 = vpop.xlane.xlu2 %1873  ;;  %6942 = vst [vmem:[#allocation78_spill] sm:$0xff] %v5122_v22  ;;  %v5124_v46 = vpop.eup %3596 }
 0x384   : > { %6935 = vst [vmem:[#allocation71_spill] sm:$0xff] %v5098_v54 }
 0x385   : > { %v1127_v10 = vpop.f32.mrf.mxu1 }
 0x386   : > { %1909 = vmax.xlane.f32.xlu1 %v5102_v57 }
 0x387   : > { %1975 = vmax.xlane.f32.xlu2 %v5110_v47  ;;  %2479 = vadd.xlane.f32.xlu0 %v5104_v28  ;;  %v1356_v47 = vpop.f32.mrf.mxu3  ;;  %v1234_v28 = vpop.f32.mrf.mxu2 }
 0x388   : > { %v5132_v53 = vpop.f32.mrf.mxu0  ;;  %v5141_v1 = vsel %vm1632_vm0, %v1356_v47, -1e+30 }
 0x389   : > { %6943 = vst [vmem:[#allocation79_spill] sm:$0xff] %v5132_v53 }
 0x38a   : > { %v1846_v24 = vpop.xlane.xlu1 %1845  ;;  %6945 = vst [vmem:[#allocation81_spill] sm:$0xff] %v5141_v1 }
 0x38b   : > { %v1820_v13 = vpop.xlane.xlu2 %1819  ;;  %v2075_v42 = vsub.f32 %v4862_v36, %v1846_v24 }
 0x38d   : > { %v2229_v57 = vmul.f32 1.442695, %v2075_v42  ;;  %v5143_v24 = vpop.f32.mrf.mxu1 }
 0x38e   : > { %2481 = vadd.xlane.f32.xlu1 %v5122_v22  ;;  %v5137_v22 = vsel %vm1631_vm13, %v1353_v61, -1e+30 }
 0x38f   : > { %2451 = vadd.xlane.f32.xlu2 %v5120_v58  ;;  %2455 = vadd.xlane.f32.xlu0 %v5124_v46  ;;  %6944 = vst [vmem:[#allocation80_spill] sm:$0xff] %v5137_v22  ;;  %v2074_v58 = vsub.f32 %v4831_v51, %v5072_v56  ;;  %v5158_v51 = vsel %vm1628_vm11, %v5037_v15, -1e+30 }
 0x391   : > { %v2227_v47 = vmul.f32 1.442695, %v2074_v58  ;;  %v1852_v58 = vpop.xlane.xlu0 %1851 }
 0x392   : > { %v5130_v40 = vpop.xlane.xlu1 %1849 }
 0x393   : > { %v1848_v54 = vpop.xlane.xlu2 %1847 }
 0x394   : > { %v2076_v63 = vsub.f32 %v4882_v32, %v1848_v54  ;;  %v2063_v32 = vsub.f32 %v4836_v2, %v1822_v26  ;;  %v2062_v54 = vsub.f32 %v4868_v52, %v1820_v13  ;;  %v1237_v2 = vpop.f32.mrf.mxu2  ;;  %v2061_v52 = vsub.f32 %v4845_v37, %v5094_v43 }
 0x395   : > { %v5169_v26 = vpop.f32.mrf.mxu1  ;;  %v2078_v37 = vsub.f32 %v4855_v55, %v1852_v58  ;;  %v5200_v55 = vsel %vm1629_vm14, %v1234_v28, -1e+30  ;;  %v5216_v28 = vsel %vm1629_vm14, %v5068_v31, -1e+30  ;;  %v5233_v31 = vsel %vm1630_vm15, %v1237_v2, -1e+30 }
 0x396   : > { %v2231_v36 = vmul.f32 1.442695, %v2076_v63  ;;  %v2205_v42 = vmul.f32 1.442695, %v2063_v32  ;;  %v2203_v63 = vmul.f32 1.442695, %v2062_v54  ;;  %v2077_v2 = vsub.f32 %v4876_v19, %v5130_v40 }
 0x397   : > { %1981 = vmax.xlane.f32.xlu2 %v5137_v22  ;;  %1983 = vmax.xlane.f32.xlu0 %v5141_v1  ;;  %v5162_v22 = vpop.f32.mrf.mxu0  ;;  %6950 = vst [vmem:[#allocation86_spill] sm:$0xff] %v5169_v26  ;;  %v5265_v19 = vsel %vm1628_vm11, %v5116_v59, -1e+30 }
 0x398   : > { %3598 = vpow2.f32 %v2231_v36  ;;  %6949 = vst [vmem:[#allocation85_spill] sm:$0xff] %v5162_v22  ;;  %v2235_v22 = vmul.f32 1.442695, %v2078_v37 }
 0x399   : > { %3600 = vpow2.f32 %v2229_v57  ;;  %v2201_v57 = vmul.f32 1.442695, %v2061_v52  ;;  %6955 = vst [vmem:[#allocation91_spill] sm:$0xff] %v5200_v55 }
 0x39a   : > { %v5151_v61 = vpop.xlane.xlu1 %1877  ;;  %3602 = vpow2.f32 %v2227_v47  ;;  %6961 = vst [vmem:[#allocation97_spill] sm:$0xff] %v5233_v31 }
 0x39b   : > { %6946 = vst [vmem:[#allocation82_spill] sm:$0xff] %v5151_v61  ;;  %3604 = vpow2.f32 %v2205_v42  ;;  %v1824_v32 = vpop.xlane.xlu2 %1823 }
 0x39c   : > { %3606 = vpow2.f32 %v2203_v63  ;;  %v5185_v47 = vpop.f32.mrf.mxu2  ;;  %v2064_v42 = vsub.f32 %v4898_v49, %v1824_v32  ;;  %6964 = vst [vmem:[#allocation100_spill] sm:$0xff] %v5265_v19 }
 0x39d   : > { %3608 = vpow2.f32 %v2201_v57  ;;  %v5188_v52 = vpop.f32.mrf.mxu1  ;;  %v5194_v57 = vsel %vm1631_vm13, %v1127_v10, -1e+30 }
 0x39e   : > { %v5153_v53 = vpop.eup %3598  ;;  %6954 = vst [vmem:[#allocation90_spill] sm:$0xff] %v5188_v52  ;;  %v2207_v26 = vmul.f32 1.442695, %v2064_v42  ;;  %3610 = vpow2.f32 %v2235_v22  ;;  %v5238_v52 = vsel %vm1630_vm15, %v5096_v60, -1e+30 }
 0x39f   : > { %6947 = vst [vmem:[#allocation83_spill] sm:$0xff] %v5153_v53  ;;  %v5160_v56 = vpop.eup %3600  ;;  %2487 = vadd.xlane.f32.xlu1 %v5153_v53  ;;  %1911 = vmax.xlane.f32.xlu2 %v5158_v51  ;;  %v5183_v43 = vpop.f32.mrf.mxu0 }
 0x3a0   : > { %6948 = vst [vmem:[#allocation84_spill] sm:$0xff] %v5160_v56  ;;  %2485 = vadd.xlane.f32.xlu0 %v5160_v56  ;;  %v5173_v13 = vpop.eup %3602  ;;  %3612 = vpow2.f32 %v2207_v26 }
 0x3a1   : > { %6952 = vst [vmem:[#allocation88_spill] sm:$0xff] %v5173_v13  ;;  %v5175_v36 = vpop.eup %3604 }
 0x3a2   : > { %v5171_v15 = vpop.xlane.xlu1 %1879  ;;  %v5177_v54 = vpop.eup %3606  ;;  %6953 = vst [vmem:[#allocation89_spill] sm:$0xff] %v5183_v43 }
 0x3a3   : > { %6951 = vst [vmem:[#allocation87_spill] sm:$0xff] %v5171_v15  ;;  %v5190_v61 = vpop.eup %3608 }
 0x3a4   : > { %v1243_v10 = vpop.f32.mrf.mxu2  ;;  %v5211_v42 = vpop.eup %3610 }
 0x3a5   : > { %v5209_v37 = vpop.f32.mrf.mxu1  ;;  %6958 = vst [vmem:[#allocation94_spill] sm:$0xff] %v5211_v42 }
 0x3a6   : > { %6957 = vst [vmem:[#allocation93_spill] sm:$0xff] %v5209_v37  ;;  %v5218_v22 = vpop.eup %3612 }
 0x3a7   : > { %2461 = vadd.xlane.f32.xlu1 %v5175_v36  ;;  %2483 = vadd.xlane.f32.xlu2 %v5173_v13  ;;  %v5207_v32 = vpop.f32.mrf.mxu0  ;;  %v2233_v13 = vmul.f32 1.442695, %v2077_v2 }
 0x3a8   : > { %2459 = vadd.xlane.f32.xlu0 %v5177_v54  ;;  %6956 = vst [vmem:[#allocation92_spill] sm:$0xff] %v5207_v32 }
 0x3a9   : > { %3614 = vpow2.f32 %v2233_v13 }
 0x3aa   : > { %v1856_v63 = vpop.xlane.xlu1 %1855 }
 0x3ab   : > { %v2080_v60 = vsub.f32 %v4918_v21, %v1856_v63  ;;  %v5276_v21 = vsel %vm1619_vm4, %v4626_v35, -1e+30 }
 0x3ac   : > { %6967 = vst [vmem:[#allocation103_spill] sm:$0xff] %v5276_v21 }
 0x3ad   : > { %v5240_v37 = vpop.f32.mrf.mxu1  ;;  %v2239_v56 = vmul.f32 1.442695, %v2080_v60  ;;  %v5290_v60 = vsel %vm1627_vm12, %v4954_v16, -1e+30 }
 0x3ae   : > { %6962 = vst [vmem:[#allocation98_spill] sm:$0xff] %v5240_v37  ;;  %v5260_v37 = vsel %vm1627_vm12, %v5091_v3, -1e+30 }
 0x3af   : > { %1917 = vmax.xlane.f32.xlu1 %v5194_v57  ;;  %2457 = vadd.xlane.f32.xlu2 %v5190_v61  ;;  %v5227_v43 = vpop.f32.mrf.mxu0  ;;  %6963 = vst [vmem:[#allocation99_spill] sm:$0xff] %v5260_v37  ;;  %3616 = vpow2.f32 %v2239_v56  ;;  %v5285_v2 = vpop.eup %3614 }
 0x3b0   : > { %1945 = vmax.xlane.f32.xlu0 %v5200_v55  ;;  %6959 = vst [vmem:[#allocation95_spill] sm:$0xff] %v5227_v43  ;;  %v5229_v55 = vpop.f32.mrf.mxu2  ;;  %v5247_v43 = vsel %vm1632_vm0, %v5143_v24, -1e+30 }
 0x3b1   : > { %6960 = vst [vmem:[#allocation96_spill] sm:$0xff] %v5229_v55  ;;  %v1854_v55 = vpop.xlane.xlu2 %1853 }
 0x3b2   : > { %v5203_v49 = vpop.xlane.xlu0 %2433  ;;  %v5205_v58 = vpop.xlane.xlu1 %1885  ;;  %6970 = vst [vmem:[#allocation106_spill] sm:$0xff] %v5285_v2  ;;  %v2079_v56 = vsub.f32 %v4911_v25, %v1854_v55  ;;  %v5318_v25 = vsel %vm1622_vm7, %v4656_v41, -1e+30  ;;  %v5324_v55 = vsel %vm1632_vm0, %v1243_v10, -1e+30 }
 0x3b3   : > { %6971 = vst [vmem:[#allocation107_spill] sm:$0xff] %v5290_v60 }
 0x3b4   : > { %6975 = vst [vmem:[#allocation111_spill] sm:$0xff] %v5318_v25 }
 0x3b5   : > { %v5279_v3 = vpop.f32.mrf.mxu1  ;;  %6976 = vst [vmem:[#allocation112_spill] sm:$0xff] %v5324_v55 }
 0x3b6   : > { %6968 = vst [vmem:[#allocation104_spill] sm:$0xff] %v5279_v3 }
 0x3b7   : > { %2491 = vadd.xlane.f32.xlu1 %v5211_v42  ;;  %1913 = vmax.xlane.f32.xlu2 %v5216_v28  ;;  %v5267_v40 = vpop.f32.mrf.mxu0 }
 0x3b8   : > { %2463 = vadd.xlane.f32.xlu0 %v5218_v22  ;;  %6965 = vst [vmem:[#allocation101_spill] sm:$0xff] %v5267_v40  ;;  %v5269_v24 = vpop.f32.mrf.mxu2  ;;  %v2237_v40 = vmul.f32 1.442695, %v2079_v56  ;;  %v2069_v56 = vsub.f32 %v4728_v14, %v4989_v0 }
 0x3b9   : > { %6966 = vst [vmem:[#allocation102_spill] sm:$0xff] %v5269_v24  ;;  %v5281_v59 = vpop.xlane.xlu2 %1881 }
 0x3ba   : > { %v5223_v26 = vpop.xlane.xlu0 %2435  ;;  %v5225_v32 = vpop.xlane.xlu1 %2439  ;;  %3618 = vpow2.f32 %v2237_v40  ;;  %v2217_v10 = vmul.f32 1.442695, %v2069_v56  ;;  %v6981_v40 = vld [vmem:[#allocation11_spill] sm:$0xff]  ;;  %v6985_v56 = vld [vmem:[#allocation25_spill] sm:$0xff] }
 0x3bc   : > { %3620 = vpow2.f32 %v2217_v10  ;;  %v5373_v10 = vsel %vm1631_vm13, %v5185_v47, -1e+30  ;;  %v6995_v47 = vld [vmem:[#allocation27_spill] sm:$0xff] }
 0x3bd   : > { %6989 = vst [vmem:[#allocation119_spill] sm:$0xff] %v5373_v10 }
 0x3bf   : > { %1947 = vmax.xlane.f32.xlu1 %v5233_v31  ;;  %1915 = vmax.xlane.f32.xlu2 %v5238_v52  ;;  %v5300_v13 = vpop.f32.mrf.mxu0 }
 0x3c0   : > { %1919 = vmax.xlane.f32.xlu0 %v5247_v43  ;;  %6973 = vst [vmem:[#allocation109_spill] sm:$0xff] %v5300_v13 }
 0x3c2   : > { %v5253_v1 = vpop.xlane.xlu0 %1883  ;;  %v5255_v31 = vpop.xlane.xlu1 %1887 }
 0x3c7   : > { %1941 = vmax.xlane.f32.xlu1 %v5260_v37  ;;  %1943 = vmax.xlane.f32.xlu2 %v5265_v19  ;;  %v5292_v37 = vpop.eup %3616 }
 0x3c8   : > { %1893 = vmax.xlane.f32.xlu0 %v5276_v21  ;;  %v5302_v21 = vpop.f32.mrf.mxu2  ;;  %v5343_v0 = vpop.eup %3618 }
 0x3c9   : > { %6980 = vst [vmem:[#allocation116_spill] sm:$0xff] %v5343_v0 }
 0x3ca   : > { %v5283_v63 = vpop.xlane.xlu0 %1897  ;;  %v5294_v35 = vpop.xlane.xlu1 %1899 }
 0x3cb   : > { %6969 = vst [vmem:[#allocation105_spill] sm:$0xff] %v5283_v63  ;;  %v5308_v63 = vpop.f32.mrf.mxu1 }
 0x3cc   : > { %6972 = vst [vmem:[#allocation108_spill] sm:$0xff] %v5294_v35 }
 0x3cf   : > { %1973 = vmax.xlane.f32.xlu1 %v5290_v60  ;;  %2489 = vadd.xlane.f32.xlu2 %v5285_v2  ;;  %v5313_v60 = vsel %vm1618_vm1, %v4600_v17, -1e+30  ;;  %v2070_v17 = vsub.f32 %v4688_v23, %v4971_v18  ;;  %v5348_v23 = vsel %vm1620_vm3, %v6981_v40, -1e+30  ;;  %v6983_v18 = vld [vmem:[#allocation13_spill] sm:$0xff]  ;;  %v5368_v2 = vpop.eup %3620 }
 0x3d0   : > { %2495 = vadd.xlane.f32.xlu0 %v5292_v37  ;;  %6974 = vst [vmem:[#allocation110_spill] sm:$0xff] %v5313_v60  ;;  %v5339_v13 = vpop.f32.mrf.mxu2 }
 0x3d1   : > { %v2219_v14 = vmul.f32 1.442695, %v2070_v17  ;;  %6982 = vst [vmem:[#allocation11_spill] sm:$0xff] %v5348_v23  ;;  %v2071_v17 = vsub.f32 %v6985_v56, %v5050_v12 }
 0x3d2   : > { %v5304_v19 = vpop.xlane.xlu2 %2437  ;;  %v5306_v16 = vpop.xlane.xlu0 %2443  ;;  %6988 = vst [vmem:[#allocation118_spill] sm:$0xff] %v5368_v2 }
 0x3d3   : > { %v5331_v35 = vpop.xlane.xlu1 %2445  ;;  %v5341_v53 = vpop.f32.mrf.mxu1  ;;  %3622 = vpow2.f32 %v2219_v14 }
 0x3d7   : > { %1891 = vmax.xlane.f32.xlu1 %v5313_v60  ;;  %1867 = vmax.xlane.f32.xlu2 %v5318_v25  ;;  %v5337_v25 = vpop.f32.mrf.mxu0 }
 0x3d8   : > { %1951 = vmax.xlane.f32.xlu0 %v5324_v55  ;;  %6979 = vst [vmem:[#allocation115_spill] sm:$0xff] %v5337_v25  ;;  %v1549_v15 = vpop.f32.mrf.mxu2 }
 0x3d9   : > { %v5375_v12 = vpop.eup %3622 }
 0x3da   : > { %v5333_v41 = vpop.xlane.xlu2 %1895  ;;  %v5335_v60 = vpop.xlane.xlu0 %1903  ;;  %6990 = vst [vmem:[#allocation120_spill] sm:$0xff] %v5375_v12 }
 0x3db   : > { %6977 = vst [vmem:[#allocation113_spill] sm:$0xff] %v5333_v41  ;;  %v5355_v41 = vsel %vm1621_vm5, %v6983_v18, -1e+30  ;;  %v5364_v55 = vpop.xlane.xlu1 %1905  ;;  %v5377_v14 = vpop.f32.mrf.mxu1 }
 0x3dc   : > { %6978 = vst [vmem:[#allocation114_spill] sm:$0xff] %v5335_v60 }
 0x3dd   : > { %6984 = vst [vmem:[#allocation13_spill] sm:$0xff] %v5355_v41 }
 0x3de   : > { %6986 = vst [vmem:[#allocation25_spill] sm:$0xff] %v5364_v55 }
 0x3df   : > { %1863 = vmax.xlane.f32.xlu1 %v5348_v23  ;;  %2493 = vadd.xlane.f32.xlu2 %v5343_v0  ;;  %v2221_v23 = vmul.f32 1.442695, %v2071_v17  ;;  %v5366_v60 = vpop.f32.mrf.mxu0 }
 0x3e0   : > { %1865 = vmax.xlane.f32.xlu0 %v5355_v41  ;;  %6987 = vst [vmem:[#allocation117_spill] sm:$0xff] %v5366_v60  ;;  %v5393_v60 = vsel %vm1624_vm10, %v6995_v47, -1e+30 }
 0x3e1   : > { %3624 = vpow2.f32 %v2221_v23  ;;  %6996 = vst [vmem:[#allocation27_spill] sm:$0xff] %v5393_v60  ;;  %v5404_v23 = vsel %vm1625_vm9, %v5031_v5, -1e+30  ;;  %v5428_v5 = vsel %vm1625_vm9, %v4929_v30, -1e+30 }
 0x3e2   : > { %v5360_v25 = vpop.xlane.xlu2 %2441  ;;  %v5362_v40 = vpop.xlane.xlu0 %2449  ;;  %6997 = vst [vmem:[#allocation125_spill] sm:$0xff] %v5404_v23  ;;  %v5448_v30 = vsel %vm1621_vm5, %v1549_v15, -1e+30 }
 0x3e3   : > { %v5386_v17 = vpop.xlane.xlu1 %1979  ;;  %7002 = vst [vmem:[#allocation128_spill] sm:$0xff] %v5428_v5 }
 0x3e4   : > { %6993 = vst [vmem:[#allocation123_spill] sm:$0xff] %v5386_v17 }
 0x3e5   : > { %7008 = vst [vmem:[#allocation132_spill] sm:$0xff] %v5448_v30 }
 0x3e7   : > { %2473 = vadd.xlane.f32.xlu1 %v5368_v2  ;;  %1949 = vmax.xlane.f32.xlu2 %v5373_v10  ;;  %v5388_v41 = vpop.eup %3624  ;;  %v5395_v55 = vpop.f32.mrf.mxu0  ;;  %v6999_v10 = vld [vmem:[#allocation9_spill] sm:$0xff] }
 0x3e8   : > { %2475 = vadd.xlane.f32.xlu0 %v5375_v12  ;;  %6994 = vst [vmem:[#allocation124_spill] sm:$0xff] %v5388_v41  ;;  %v5397_v2 = vpop.f32.mrf.mxu2  ;;  %v5421_v12 = vsel %vm1626_vm8, %v5054_v9, -1e+30 }
 0x3e9   : > { %7001 = vst [vmem:[#allocation127_spill] sm:$0xff] %v5421_v12  ;;  %v5527_v48 = vsel %vm1622_vm7, %v5397_v2, -1e+30  ;;  %v5541_v2 = vsel %vm1623_vm6, %v5341_v53, -1e+30 }
 0x3ea   : > { %v5382_v18 = vpop.xlane.xlu2 %1901  ;;  %v5384_v56 = vpop.xlane.xlu0 %1977  ;;  %7027 = vst [vmem:[#allocation144_spill] sm:$0xff] %v5527_v48 }
 0x3eb   : > { %6991 = vst [vmem:[#allocation121_spill] sm:$0xff] %v5382_v18 }
 0x3ec   : > { %6992 = vst [vmem:[#allocation122_spill] sm:$0xff] %v5384_v56  ;;  %v1448_v56 = vpop.f32.mrf.mxu1 }
 0x3ed   : > { %7030 = vst [vmem:[#allocation147_spill] sm:$0xff] %v5541_v2 }
 0x3ef   : > { %1935 = vmax.xlane.f32.xlu1 %v5393_v60  ;;  %2477 = vadd.xlane.f32.xlu2 %v5388_v41  ;;  %v5416_v60 = vsel %vm1619_vm4, %v6999_v10, -1e+30 }
 0x3f0   : > { %1937 = vmax.xlane.f32.xlu0 %v5404_v23  ;;  %7000 = vst [vmem:[#allocation9_spill] sm:$0xff] %v5416_v60  ;;  %v5431_v23 = vpop.f32.mrf.mxu0  ;;  %v1555_v10 = vpop.f32.mrf.mxu2 }
 0x3f1   : > { %v5411_v18 = vpop.xlane.xlu1 %2453  ;;  %v5463_v11 = vsel %vm1623_vm6, %v1555_v10, -1e+30 }
 0x3f2   : > { %v5407_v17 = vpop.xlane.xlu2 %2447  ;;  %v5409_v47 = vpop.xlane.xlu0 %1907  ;;  %7009 = vst [vmem:[#allocation133_spill] sm:$0xff] %v5463_v11 }
 0x3f3   : > { %6998 = vst [vmem:[#allocation126_spill] sm:$0xff] %v5409_v47 }
 0x3f4   : > { %v1451_v9 = vpop.f32.mrf.mxu1 }
 0x3f7   : > { %1861 = vmax.xlane.f32.xlu1 %v5416_v60  ;;  %1939 = vmax.xlane.f32.xlu2 %v5421_v12  ;;  %v5439_v60 = vsel %vm1625_vm9, %v1448_v56, -1e+30  ;;  %v7006_v12 = vld [vmem:[#allocation41_spill] sm:$0xff] }
 0x3f8   : > { %1969 = vmax.xlane.f32.xlu0 %v5428_v5  ;;  %7005 = vst [vmem:[#allocation131_spill] sm:$0xff] %v5439_v60  ;;  %v5444_v24 = vsel %vm1626_vm8, %v7006_v12, -1e+30  ;;  %v1558_v12 = vpop.f32.mrf.mxu2  ;;  %v1332_v42 = vpop.f32.mrf.mxu0 }
 0x3f9   : > { %7007 = vst [vmem:[#allocation41_spill] sm:$0xff] %v5444_v24  ;;  %v5450_v5 = vpop.xlane.xlu1 %1909 }
 0x3fa   : > { %v5433_v41 = vpop.xlane.xlu2 %1975  ;;  %v5435_v47 = vpop.xlane.xlu0 %2479 }
 0x3fb   : > { %7003 = vst [vmem:[#allocation129_spill] sm:$0xff] %v5433_v41  ;;  %v2096_v41 = vsub.f32 %v4962_v29, %v5255_v31  ;;  %v5472_v29 = vsel %vm1624_vm10, %v1332_v42, -1e+30 }
 0x3fc   : > { %7004 = vst [vmem:[#allocation130_spill] sm:$0xff] %v5435_v47  ;;  %v1454_v15 = vpop.f32.mrf.mxu1 }
 0x3fd   : > { %v2271_v0 = vmul.f32 1.442695, %v2096_v41  ;;  %7013 = vst [vmem:[#allocation134_spill] sm:$0xff] %v5472_v29  ;;  %v5487_v42 = vsel %vm1627_vm12, %v1454_v15, -1e+30 }
 0x3fe   : > { %7018 = vst [vmem:[#allocation139_spill] sm:$0xff] %v5487_v42 }
 0x3ff   : > { %1971 = vmax.xlane.f32.xlu2 %v5444_v24  ;;  %2001 = vmax.xlane.f32.xlu1 %v5439_v60  ;;  %v7010_v24 = vld [vmem:[#allocation8_spill] sm:$0xff]  ;;  %3626 = vpow2.f32 %v2271_v0 }
 0x400   : > { %2025 = vmax.xlane.f32.xlu0 %v5448_v30  ;;  %v5468_v60 = vsel %vm1617_vm2, %v7010_v24, -1e+30  ;;  %v1561_v30 = vpop.f32.mrf.mxu2 }
 0x401   : > { %7012 = vst [vmem:[#allocation8_spill] sm:$0xff] %v5468_v60  ;;  %v5477_v31 = vpop.xlane.xlu1 %2481 }
 0x402   : > { %v5457_v56 = vpop.xlane.xlu2 %2451  ;;  %v5459_v47 = vpop.xlane.xlu0 %2455  ;;  %7014 = vst [vmem:[#allocation135_spill] sm:$0xff] %v5477_v31 }
 0x404   : > { %v1457_v0 = vpop.f32.mrf.mxu1 }
 0x405   : > { %v5483_v24 = vpop.eup %3626 }
 0x406   : > { %7017 = vst [vmem:[#allocation138_spill] sm:$0xff] %v5483_v24 }
 0x407   : > { %1889 = vmax.xlane.f32.xlu2 %v5468_v60  ;;  %2029 = vmax.xlane.f32.xlu1 %v5463_v11  ;;  %v5491_v60 = vsel %vm1626_vm8, %v1451_v9, -1e+30  ;;  %v7021_v11 = vld [vmem:[#allocation21_spill] sm:$0xff]  ;;  %v5507_v9 = vsel %vm1624_vm10, %v5377_v14, -1e+30 }
 0x408   : > { %1967 = vmax.xlane.f32.xlu0 %v5472_v29  ;;  %7019 = vst [vmem:[#allocation140_spill] sm:$0xff] %v5491_v60  ;;  %v7020_v29 = vld [vmem:[#allocation55_spill] sm:$0xff] }
 0x409   : > { %7022 = vst [vmem:[#allocation55_spill] sm:$0xff] %v5507_v9 }
 0x40a   : > { %v5479_v41 = vpop.xlane.xlu2 %1981  ;;  %v5481_v10 = vpop.xlane.xlu0 %1983 }
 0x40b   : > { %7015 = vst [vmem:[#allocation136_spill] sm:$0xff] %v5479_v41  ;;  %v2068_v41 = vsub.f32 %v7021_v11, %v7020_v29  ;;  %v5515_v11 = vsel %vm1624_vm10, %v1558_v12, -1e+30  ;;  %v1564_v29 = vpop.f32.mrf.mxu2 }
 0x40c   : > { %7016 = vst [vmem:[#allocation137_spill] sm:$0xff] %v5481_v10 }
 0x40d   : > { %v2215_v3 = vmul.f32 1.442695, %v2068_v41  ;;  %7024 = vst [vmem:[#allocation141_spill] sm:$0xff] %v5515_v11  ;;  %v1460_v41 = vpop.f32.mrf.mxu1 }
 0x40f   : > { %2527 = vadd.xlane.f32.xlu2 %v5483_v24  ;;  %2005 = vmax.xlane.f32.xlu1 %v5487_v42  ;;  %v5511_v42 = vsel %vm1625_vm9, %v1561_v30, -1e+30  ;;  %3628 = vpow2.f32 %v2215_v3  ;;  %v5531_v30 = vsel %vm1629_vm14, %v1460_v41, -1e+30 }
 0x410   : > { %2003 = vmax.xlane.f32.xlu0 %v5491_v60  ;;  %7023 = vst [vmem:[#allocation21_spill] sm:$0xff] %v5511_v42 }
 0x411   : > { %7028 = vst [vmem:[#allocation145_spill] sm:$0xff] %v5531_v30 }
 0x412   : > { %v5498_v10 = vpop.xlane.xlu1 %2487  ;;  %v5500_v31 = vpop.xlane.xlu2 %1911 }
 0x413   : > { %v5502_v15 = vpop.xlane.xlu0 %2485  ;;  %v1567_v3 = vpop.f32.mrf.mxu2 }
 0x415   : > { %v5522_v6 = vpop.eup %3628 }
 0x416   : > { %7026 = vst [vmem:[#allocation143_spill] sm:$0xff] %v5522_v6 }
 0x417   : > { %1999 = vmax.xlane.f32.xlu2 %v5507_v9  ;;  %2033 = vmax.xlane.f32.xlu1 %v5511_v42 }
 0x418   : > { %2031 = vmax.xlane.f32.xlu0 %v5515_v11  ;;  %v1463_v11 = vpop.f32.mrf.mxu1 }
 0x419   : > { %v5545_v41 = vsel %vm1630_vm15, %v1463_v11, -1e+30  ;;  %v5558_v11 = vsel %vm1628_vm11, %v1457_v0, -1e+30 }
 0x41a   : > { %v2462_v60 = vpop.xlane.xlu1 %2461  ;;  %v5520_v14 = vpop.xlane.xlu2 %2483  ;;  %7031 = vst [vmem:[#allocation148_spill] sm:$0xff] %v5545_v41 }
 0x41b   : > { %7025 = vst [vmem:[#allocation142_spill] sm:$0xff] %v5520_v14  ;;  %v2460_v24 = vpop.xlane.xlu0 %2459 }
 0x41c   : > { %7033 = vst [vmem:[#allocation150_spill] sm:$0xff] %v5558_v11 }
 0x41f   : > { %2027 = vmax.xlane.f32.xlu2 %v5527_v48  ;;  %2471 = vadd.xlane.f32.xlu1 %v5522_v6  ;;  %v5549_v48 = vsel %vm1627_vm12, %v1567_v3, -1e+30  ;;  %v1570_v6 = vpop.f32.mrf.mxu2 }
 0x420   : > { %2009 = vmax.xlane.f32.xlu0 %v5531_v30  ;;  %7032 = vst [vmem:[#allocation149_spill] sm:$0xff] %v5549_v48  ;;  %v5562_v39 = vsel %vm1628_vm11, %v1570_v6, -1e+30 }
 0x422   : > { %v1918_v12 = vpop.xlane.xlu1 %1917  ;;  %v2458_v9 = vpop.xlane.xlu2 %2457 }
 0x423   : > { %v5536_v42 = vpop.xlane.xlu0 %1945 }
 0x424   : > { %7029 = vst [vmem:[#allocation146_spill] sm:$0xff] %v5536_v42 }
 0x427   : > { %1997 = vmax.xlane.f32.xlu2 %v5541_v2  ;;  %2011 = vmax.xlane.f32.xlu1 %v5545_v41  ;;  %v5571_v6 = vpop.f32.mrf.mxu2 }
 0x428   : > { %2037 = vmax.xlane.f32.xlu0 %v5549_v48 }
 0x42a   : > { %v5554_v42 = vpop.xlane.xlu1 %2491  ;;  %v1914_v30 = vpop.xlane.xlu2 %1913 }
 0x42b   : > { %v2464_v53 = vpop.xlane.xlu0 %2463 }
 0x42c   : > { %3630 = vrcp.f32 %v2464_v53 }
 0x42d   : > { %3632 = vrcp.f32 %v2462_v60 }
 0x42e   : > { %3634 = vrcp.f32 %v2460_v24 }
 0x42f   : > { %2007 = vmax.xlane.f32.xlu2 %v5558_v11  ;;  %2039 = vmax.xlane.f32.xlu1 %v5562_v39  ;;  %v5575_v11 = vsel %vm1626_vm8, %v1564_v29, -1e+30  ;;  %3636 = vrcp.f32 %v2458_v9 }
 0x432   : > { %v3631_v3 = vpop.eup %3630  ;;  %v5566_v2 = vpop.xlane.xlu1 %1947 }
 0x433   : > { %7034 = vst [vmem:[#allocation151_spill] sm:$0xff] %v5566_v2  ;;  %v1916_v48 = vpop.xlane.xlu2 %1915  ;;  %v1920_v41 = vpop.xlane.xlu0 %1919  ;;  %v2832_v0 = vmul.f32 %v3631_v3, %v5218_v22  ;;  %v2111_v2 = vsub.f32 %v5194_v57, %v1918_v12 }
 0x434   : > { %v2110_v53 = vsub.f32 %v5238_v52, %v1916_v48  ;;  %v3633_v14 = vpop.eup %3632  ;;  %v2112_v27 = vsub.f32 %v5247_v43, %v1920_v41  ;;  %v2109_v48 = vsub.f32 %v5216_v28, %v1914_v30  ;;  %v7035_v28 = vld [vmem:[#allocation24_spill] sm:$0xff]  ;;  %v5599_v30 = vpop.f32.mrf.mxu2 }
 0x435   : > { %2945 = vmatpush.xpose.msra.mxu3 %v2832_v0  ;;  %v2831_v52 = vmul.f32 %v3633_v14, %v5175_v36  ;;  %v3635_v22 = vpop.eup %3634  ;;  %v2301_v9 = vmul.f32 1.442695, %v2111_v2 }
 0x436   : > { %v2299_v60 = vmul.f32 1.442695, %v2110_v53  ;;  %v2303_v24 = vmul.f32 1.442695, %v2112_v27  ;;  %v2830_v57 = vmul.f32 %v3635_v22, %v5177_v54  ;;  %v3637_v12 = vpop.eup %3636  ;;  %v2297_v41 = vmul.f32 1.442695, %v2109_v48 }
 0x437   : > { %2035 = vmax.xlane.f32.xlu2 %v5575_v11  ;;  %v2829_v54 = vmul.f32 %v3637_v12, %v5190_v61  ;;  %v7038_v22 = vld [vmem:[#allocation38_spill] sm:$0xff] }
 0x438   : > { %3638 = vpow2.f32 %v2299_v60  ;;  %v2095_v48 = vsub.f32 %v7038_v22, %v5205_v58 }
 0x439   : > { %3640 = vpow2.f32 %v2303_v24  ;;  %2946 = vmatpush.xpose.msra.mxu3 %v2831_v52 }
 0x43a   : > { %3642 = vrcp.f32 %v5459_v47  ;;  %v5582_v43 = vpop.xlane.xlu1 %1941  ;;  %v5595_v47 = vsel %vm1623_vm6, %v7035_v28, -1e+30 }
 0x43b   : > { %v5584_v38 = vpop.xlane.xlu2 %1943  ;;  %v5586_v29 = vpop.xlane.xlu0 %1893  ;;  %3644 = vrcp.f32 %v5411_v18  ;;  %7036 = vst [vmem:[#allocation24_spill] sm:$0xff] %v5595_v47 }
 0x43c   : > { %3646 = vpow2.f32 %v2301_v9  ;;  %v1466_v18 = vpop.f32.mrf.mxu1  ;;  %v1579_v9 = vpop.f32.mrf.mxu2 }
 0x43d   : > { %2947 = vmatpush.xpose.msra.mxu3 %v2830_v57  ;;  %3648 = vpow2.f32 %v2297_v41  ;;  %v7039_v41 = vld [vmem:[#allocation77_spill] sm:$0xff]  ;;  %v5639_v58 = vsel %vm1631_vm13, %v1466_v18, -1e+30  ;;  %v2108_v18 = vsub.f32 %v5158_v51, %v5500_v31  ;;  %v5670_v51 = vsel %vm1629_vm14, %v5571_v6, -1e+30  ;;  %v7045_v6 = vld [vmem:[#allocation51_spill] sm:$0xff] }
 0x43e   : > { %v5589_v36 = vpop.eup %3638  ;;  %3650 = vrcp.f32 %v5457_v56  ;;  %v5621_v56 = vsel %vm1620_vm3, %v5339_v13, -1e+30  ;;  %v7044_v31 = vld [vmem:[#allocation53_spill] sm:$0xff] }
 0x43f   : > { %v5597_v14 = vpop.eup %3640  ;;  %2555 = vadd.xlane.f32.xlu0 %v5589_v36  ;;  %1933 = vmax.xlane.f32.xlu2 %v5595_v47  ;;  %3652 = vrcp.f32 %v5362_v40  ;;  %7037 = vst [vmem:[#allocation152_spill] sm:$0xff] %v5621_v56 }
 0x440   : > { %v3643_v2 = vpop.eup %3642  ;;  %2559 = vadd.xlane.f32.xlu1 %v5597_v14  ;;  %3654 = vrcp.f32 %v5407_v17  ;;  %v5649_v17 = vsel %vm1623_vm6, %v5431_v23, -1e+30 }
 0x441   : > { %2948 = vmatpush.xpose.msra.mxu3 %v2829_v54  ;;  %v2828_v27 = vmul.f32 %v3643_v2, %v5124_v46  ;;  %v3645_v60 = vpop.eup %3644  ;;  %v2269_v54 = vmul.f32 1.442695, %v2095_v48  ;;  %3656 = vrcp.f32 %v5331_v35  ;;  %7040 = vst [vmem:[#allocation38_spill] sm:$0xff] %v5649_v17 }
 0x442   : > { %v5606_v3 = vpop.xlane.xlu1 %1973  ;;  %v5613_v24 = vpop.eup %3646  ;;  %v2827_v52 = vmul.f32 %v3645_v60, %v5074_v45 }
 0x443   : > { %v5608_v53 = vpop.xlane.xlu2 %2489  ;;  %v5610_v0 = vpop.xlane.xlu0 %2495  ;;  %3658 = vpow2.f32 %v2269_v54 }
 0x444   : > { %v5615_v61 = vpop.eup %3648  ;;  %v1469_v57 = vpop.f32.mrf.mxu1  ;;  %3660 = vrcp.f32 %v5306_v16 }
 0x445   : > { %2949 = vmatpush.xpose.msra.mxu3 %v2828_v27  ;;  %v3651_v46 = vpop.eup %3650  ;;  %v5643_v2 = vsel %vm1632_vm0, %v1469_v57, -1e+30  ;;  %v7041_v27 = vld [vmem:[#allocation60_spill] sm:$0xff]  ;;  %v1582_v57 = vpop.f32.mrf.mxu2  ;;  %3662 = vrcp.f32 %v5360_v25 }
 0x446   : > { %v2826_v28 = vmul.f32 %v3651_v46, %v7039_v41  ;;  %v3653_v45 = vpop.eup %3652  ;;  %v7043_v46 = vld [vmem:[#allocation68_spill] sm:$0xff]  ;;  %v2295_v41 = vmul.f32 1.442695, %v2108_v18  ;;  %v5675_v16 = vsel %vm1632_vm0, %v1582_v57, -1e+30  ;;  %v7048_v57 = vld [vmem:[#allocation61_spill] sm:$0xff] }
 0x447   : > { %2553 = vadd.xlane.f32.xlu0 %v5615_v61  ;;  %2557 = vadd.xlane.f32.xlu2 %v5613_v24  ;;  %v2825_v60 = vmul.f32 %v3653_v45, %v7041_v27  ;;  %v5696_v18 = vsel %vm1631_vm13, %v1579_v9, -1e+30 }
 0x448   : > { %2023 = vmax.xlane.f32.xlu1 %v5621_v56  ;;  %3664 = vpow2.f32 %v2295_v41 }
 0x449   : > { %2950 = vmatpush.xpose.msra.mxu3 %v2827_v52  ;;  %v3655_v52 = vpop.eup %3654  ;;  %3666 = vrcp.f32 %v5225_v32 }
 0x44a   : > { %v5630_v40 = vpop.xlane.xlu1 %1891  ;;  %v2824_v22 = vmul.f32 %v3655_v52, %v7043_v46  ;;  %v3657_v48 = vpop.eup %3656  ;;  %v5692_v52 = vsel %vm1630_vm15, %v5599_v30, -1e+30  ;;  %3668 = vrcp.f32 %v5304_v19  ;;  %v7046_v46 = vld [vmem:[#allocation39_spill] sm:$0xff]  ;;  %v7049_v30 = vld [vmem:[#allocation45_spill] sm:$0xff] }
 0x44b   : > { %v5632_v13 = vpop.xlane.xlu2 %1867  ;;  %v5634_v12 = vpop.xlane.xlu0 %1951  ;;  %v2823_v45 = vmul.f32 %v3657_v48, %v7044_v31  ;;  %v2094_v31 = vsub.f32 %v7049_v30, %v5253_v1  ;;  %3670 = vrcp.f32 %v5223_v26  ;;  %v5720_v1 = vsel %vm1622_vm7, %v5308_v63, -1e+30  ;;  %v7054_v26 = vld [vmem:[#allocation7_spill] sm:$0xff] }
 0x44c   : > { %7053 = vst [vmem:[#allocation53_spill] sm:$0xff] %v5720_v1  ;;  %3672 = vrcp.f32 %v5203_v49  ;;  %v7058_v49 = vld [vmem:[#allocation72_spill] sm:$0xff]  ;;  %v7060_v30 = vld [vmem:[#allocation43_spill] sm:$0xff] }
 0x44d   : > { %2951 = vmatpush.xpose.msra.mxu3 %v2826_v28  ;;  %v5665_v28 = vpop.eup %3658 }
 0x44e   : > { %v3661_v54 = vpop.eup %3660 }
 0x44f   : > { %2015 = vmax.xlane.f32.xlu0 %v5643_v2  ;;  %2013 = vmax.xlane.f32.xlu2 %v5639_v58  ;;  %v2822_v27 = vmul.f32 %v3661_v54, %v7045_v6  ;;  %v7052_v54 = vld [vmem:[#allocation42_spill] sm:$0xff] }
 0x450   : > { %1965 = vmax.xlane.f32.xlu1 %v5649_v17 }
 0x451   : > { %2952 = vmatpush.xpose.msra.mxu3 %v2825_v60  ;;  %v3663_v60 = vpop.eup %3662 }
 0x452   : > { %v5658_v35 = vpop.xlane.xlu1 %1863  ;;  %v5699_v32 = vpop.eup %3664  ;;  %v2821_v41 = vmul.f32 %v3663_v60, %v7048_v57  ;;  %v2267_v60 = vmul.f32 1.442695, %v2094_v31 }
 0x453   : > { %7042 = vst [vmem:[#allocation77_spill] sm:$0xff] %v5658_v35  ;;  %v5660_v34 = vpop.xlane.xlu2 %2493  ;;  %v5662_v23 = vpop.xlane.xlu0 %1865 }
 0x454   : > { %v3667_v8 = vpop.eup %3666 }
 0x455   : > { %2953 = vmatpush.xpose.msra.mxu3 %v2824_v22  ;;  %v7047_v22 = vld [vmem:[#allocation14_spill] sm:$0xff]  ;;  %v2820_v6 = vmul.f32 %v3667_v8, %v7052_v54 }
 0x456   : > { %v2067_v48 = vsub.f32 %v7047_v22, %v7046_v46  ;;  %v5726_v46 = vsel %vm1618_vm1, %v7054_v26, -1e+30  ;;  %v5731_v22 = vsel %vm1619_vm4, %v5302_v21, -1e+30 }
 0x457   : > { %2525 = vadd.xlane.f32.xlu0 %v5665_v28  ;;  %2041 = vmax.xlane.f32.xlu2 %v5670_v51  ;;  %7055 = vst [vmem:[#allocation51_spill] sm:$0xff] %v5726_v46 }
 0x458   : > { %2047 = vmax.xlane.f32.xlu1 %v5675_v16  ;;  %v2213_v9 = vmul.f32 1.442695, %v2067_v48  ;;  %7056 = vst [vmem:[#allocation39_spill] sm:$0xff] %v5731_v22  ;;  %v7057_v48 = vld [vmem:[#allocation52_spill] sm:$0xff] }
 0x459   : > { %2954 = vmatpush.xpose.msra.mxu3 %v2823_v45 }
 0x45a   : > { %v5682_v7 = vpop.xlane.xlu1 %2473  ;;  %3674 = vpow2.f32 %v2213_v9 }
 0x45b   : > { %v5684_v25 = vpop.xlane.xlu2 %1949  ;;  %v5686_v44 = vpop.xlane.xlu0 %2475  ;;  %3676 = vpow2.f32 %v2267_v60 }
 0x45c   : > { %3678 = vrcp.f32 %v5610_v0  ;;  %v7063_v0 = vld [vmem:[#allocation37_spill] sm:$0xff] }
 0x45d   : > { %2955 = vmatpush.xpose.msra.mxu3 %v2822_v27  ;;  %v3669_v27 = vpop.eup %3668  ;;  %3680 = vrcp.f32 %v5660_v34 }
 0x45e   : > { %v2819_v63 = vmul.f32 %v3669_v27, %v7057_v48  ;;  %v3671_v57 = vpop.eup %3670 }
 0x45f   : > { %2045 = vmax.xlane.f32.xlu0 %v5696_v18  ;;  %2043 = vmax.xlane.f32.xlu2 %v5692_v52  ;;  %v2818_v31 = vmul.f32 %v3671_v57, %v7060_v30  ;;  %v3673_v9 = vpop.eup %3672 }
 0x460   : > { %2551 = vadd.xlane.f32.xlu1 %v5699_v32  ;;  %v5745_v54 = vpop.eup %3674  ;;  %v2817_v26 = vmul.f32 %v3673_v9, %v7063_v0  ;;  %v7067_v9 = vld [vmem:[#allocation104_spill] sm:$0xff]  ;;  %v7118_v0 = vld [vmem:[#allocation57_spill] sm:$0xff] }
 0x461   : > { %2956 = vmatpush.xpose.msra.mxu3 %v2821_v41  ;;  %v2107_v41 = vsub.f32 %v7058_v49, %v5450_v5  ;;  %v5749_v60 = vpop.eup %3676  ;;  %v5755_v5 = vsel %vm1622_vm7, %v5395_v55, -1e+30 }
 0x462   : > { %v5710_v33 = vpop.xlane.xlu1 %1935  ;;  %7062 = vst [vmem:[#allocation45_spill] sm:$0xff] %v5755_v5  ;;  %v3679_v48 = vpop.eup %3678 }
 0x463   : > { %7050 = vst [vmem:[#allocation60_spill] sm:$0xff] %v5710_v33  ;;  %v5712_v19 = vpop.xlane.xlu2 %2477  ;;  %v5714_v45 = vpop.xlane.xlu0 %1937  ;;  %v2848_v49 = vmul.f32 %v3679_v48, %v5292_v37  ;;  %v7072_v37 = vld [vmem:[#allocation46_spill] sm:$0xff]  ;;  %v7101_v33 = vld [vmem:[#allocation88_spill] sm:$0xff] }
 0x464   : > { %7051 = vst [vmem:[#allocation68_spill] sm:$0xff] %v5714_v45  ;;  %v7073_v48 = vld [vmem:[#allocation18_spill] sm:$0xff] }
 0x465   : > { %2957 = vmatpush.xpose.msra.mxu3 %v2820_v6  ;;  %v2293_v6 = vmul.f32 1.442695, %v2107_v41  ;;  %v3681_v41 = vpop.eup %3680 }
 0x467   : > { %1995 = vmax.xlane.f32.xlu0 %v5720_v1  ;;  %1859 = vmax.xlane.f32.xlu2 %v5726_v46  ;;  %3682 = vpow2.f32 %v2293_v6  ;;  %v7070_v6 = vld [vmem:[#allocation23_spill] sm:$0xff]  ;;  %v7077_v1 = vld [vmem:[#allocation20_spill] sm:$0xff]  ;;  %v7100_v46 = vld [vmem:[#allocation138_spill] sm:$0xff] }
 0x468   : > { %2021 = vmax.xlane.f32.xlu1 %v5731_v22  ;;  %3684 = vrcp.f32 %v5554_v42  ;;  %v5779_v42 = vsel %vm1622_vm7, %v7070_v6, -1e+30 }
 0x469   : > { %2958 = vmatpush.xpose.msra.mxu3 %v2819_v63  ;;  %v7064_v63 = vld [vmem:[#allocation35_spill] sm:$0xff]  ;;  %3686 = vrcp.f32 %v5608_v53  ;;  %7071 = vst [vmem:[#allocation52_spill] sm:$0xff] %v5779_v42  ;;  %v7076_v53 = vld [vmem:[#allocation50_spill] sm:$0xff] }
 0x46a   : > { %v5740_v8 = vpop.xlane.xlu1 %1861  ;;  %v2093_v57 = vsub.f32 %v7064_v63, %v5281_v59  ;;  %v5773_v59 = vsel %vm1621_vm5, %v7067_v9, -1e+30  ;;  %v2066_v63 = vsub.f32 %v7073_v48, %v7072_v37  ;;  %v7079_v48 = vld [vmem:[#allocation94_spill] sm:$0xff] }
 0x46b   : > { %7059 = vst [vmem:[#allocation14_spill] sm:$0xff] %v5740_v8  ;;  %v5742_v21 = vpop.xlane.xlu2 %1939  ;;  %v5747_v27 = vpop.xlane.xlu0 %1969 }
 0x46c   : > { %7061 = vst [vmem:[#allocation61_spill] sm:$0xff] %v5747_v27  ;;  %v2265_v30 = vmul.f32 1.442695, %v2093_v57  ;;  %v2211_v37 = vmul.f32 1.442695, %v2066_v63 }
 0x46d   : > { %2959 = vmatpush.xpose.msra.mxu3 %v2818_v31  ;;  %v7066_v31 = vld [vmem:[#allocation30_spill] sm:$0xff]  ;;  %7069 = vst [vmem:[#allocation7_spill] sm:$0xff] %v5773_v59 }
 0x46e   : > { %3688 = vpow2.f32 %v2265_v30  ;;  %v7175_v30 = vld [vmem:[#allocation146_spill] sm:$0xff] }
 0x46f   : > { %2523 = vadd.xlane.f32.xlu0 %v5749_v60  ;;  %2469 = vadd.xlane.f32.xlu2 %v5745_v54  ;;  %3690 = vrcp.f32 %v5498_v10 }
 0x470   : > { %1963 = vmax.xlane.f32.xlu1 %v5755_v5  ;;  %v2065_v5 = vsub.f32 %v7077_v1, %v7076_v53  ;;  %3692 = vrcp.f32 %v5502_v15  ;;  %v7081_v1 = vld [vmem:[#allocation6_spill] sm:$0xff]  ;;  %v7087_v15 = vld [vmem:[#allocation87_spill] sm:$0xff]  ;;  %v7088_v53 = vld [vmem:[#allocation33_spill] sm:$0xff] }
 0x471   : > { %2960 = vmatpush.xpose.msra.mxu3 %v2817_v26  ;;  %v5781_v26 = vpop.eup %3682  ;;  %v5806_v10 = vsel %vm1617_vm2, %v7081_v1, -1e+30  ;;  %3694 = vpow2.f32 %v2211_v37  ;;  %v7090_v1 = vld [vmem:[#allocation142_spill] sm:$0xff] }
 0x472   : > { %v5766_v55 = vpop.xlane.xlu1 %2001  ;;  %v3685_v9 = vpop.eup %3684  ;;  %v2209_v56 = vmul.f32 1.442695, %v2065_v5  ;;  %7083 = vst [vmem:[#allocation37_spill] sm:$0xff] %v5806_v10  ;;  %v7086_v5 = vld [vmem:[#allocation106_spill] sm:$0xff] }
 0x473   : > { %v5764_v34 = vpop.xlane.xlu2 %1971  ;;  %v5785_v57 = vpop.xlane.xlu0 %2025 }
 0x474   : > { %7065 = vst [vmem:[#allocation42_spill] sm:$0xff] %v5764_v34  ;;  %2961 = vmatmul.f32.vlgmr.msra.gmra.mxu3 %v7066_v31  ;;  %v3687_v22 = vpop.eup %3686  ;;  %3696 = vpow2.f32 %v2209_v56  ;;  %v7133_v34 = vld [vmem:[#allocation115_spill] sm:$0xff] }
 0x475   : > { %2968 = vmatpush.xpose.msra.mxu3 %v2848_v49  ;;  %7074 = vst [vmem:[#allocation72_spill] sm:$0xff] %v5785_v57  ;;  %v7075_v49 = vld [vmem:[#allocation116_spill] sm:$0xff]  ;;  %3698 = vrcp.f32 %v7090_v1  ;;  %v7096_v1 = vld [vmem:[#allocation25_spill] sm:$0xff] }
 0x476   : > { %v2847_v31 = vmul.f32 %v3681_v41, %v7075_v49  ;;  %v7080_v41 = vld [vmem:[#allocation31_spill] sm:$0xff]  ;;  %v5800_v49 = vpop.eup %3688 }
 0x477   : > { %1993 = vmax.xlane.f32.xlu0 %v5773_v59  ;;  %1931 = vmax.xlane.f32.xlu2 %v5779_v42  ;;  %v2846_v59 = vmul.f32 %v3685_v9, %v7079_v48  ;;  %v3691_v9 = vpop.eup %3690  ;;  %v2092_v48 = vsub.f32 %v7088_v53, %v7087_v15  ;;  %v7091_v42 = vld [vmem:[#allocation83_spill] sm:$0xff]  ;;  %v7093_v15 = vld [vmem:[#allocation98_spill] sm:$0xff]  ;;  %v7095_v53 = vld [vmem:[#allocation84_spill] sm:$0xff] }
 0x478   : > { %2549 = vadd.xlane.f32.xlu1 %v5781_v26  ;;  %v3693_v17 = vpop.eup %3692 }
 0x479   : > { %2969 = vmatpush.xpose.msra.mxu3 %v2847_v31  ;;  %v7084_v31 = vld [vmem:[#allocation102_spill] sm:$0xff]  ;;  %v2263_v56 = vmul.f32 1.442695, %v2092_v48 }
 0x47a   : > { %v5796_v6 = vpop.xlane.xlu1 %2029  ;;  %v5811_v63 = vsel %vm1618_vm1, %v7084_v31, -1e+30 }
 0x47b   : > { %v5794_v20 = vpop.xlane.xlu2 %1889  ;;  %7085 = vst [vmem:[#allocation35_spill] sm:$0xff] %v5811_v63 }
 0x47c   : > { %7078 = vst [vmem:[#allocation43_spill] sm:$0xff] %v5794_v20  ;;  %2964 = vmatmul.f32.gmra.mxu3 %v7080_v41  ;;  %v5819_v41 = vpop.xlane.xlu0 %1967 }
 0x47d   : > { %2970 = vmatpush.xpose.msra.mxu3 %v2846_v59  ;;  %v2845_v59 = vmul.f32 %v3687_v22, %v7086_v5  ;;  %7089 = vst [vmem:[#allocation30_spill] sm:$0xff] %v5819_v41  ;;  %v5825_v22 = vpop.eup %3694 }
 0x47e   : > { %v5827_v5 = vpop.eup %3696 }
 0x47f   : > { %2521 = vadd.xlane.f32.xlu0 %v5800_v49  ;;  %1857 = vmax.xlane.f32.xlu2 %v5806_v10  ;;  %v2844_v10 = vmul.f32 %v3691_v9, %v7091_v42  ;;  %v2843_v42 = vmul.f32 %v3693_v17, %v7095_v53  ;;  %v3699_v9 = vpop.eup %3698 }
 0x480   : > { %2019 = vmax.xlane.f32.xlu1 %v5811_v63  ;;  %v7092_v63 = vld [vmem:[#allocation135_spill] sm:$0xff]  ;;  %v2842_v8 = vmul.f32 %v3699_v9, %v7101_v33  ;;  %v7108_v9 = vld [vmem:[#allocation69_spill] sm:$0xff] }
 0x481   : > { %2971 = vmatpush.xpose.msra.mxu3 %v2845_v59  ;;  %v5833_v59 = vsel %vm1620_vm3, %v7093_v15, -1e+30 }
 0x482   : > { %v5822_v37 = vpop.xlane.xlu1 %2005  ;;  %7094 = vst [vmem:[#allocation104_spill] sm:$0xff] %v5833_v59 }
 0x483   : > { %v2528_v31 = vpop.xlane.xlu2 %2527 }
 0x484   : > { %3700 = vrcp.f32 %v2528_v31  ;;  %v7097_v31 = vld [vmem:[#allocation58_spill] sm:$0xff]  ;;  %v5848_v27 = vpop.xlane.xlu0 %2003 }
 0x485   : > { %2972 = vmatpush.xpose.msra.mxu3 %v2844_v10  ;;  %3702 = vrcp.f32 %v7092_v63  ;;  %v2105_v48 = vsub.f32 %v7097_v31, %v7096_v1  ;;  %v7098_v63 = vld [vmem:[#allocation130_spill] sm:$0xff]  ;;  %v7104_v1 = vld [vmem:[#allocation19_spill] sm:$0xff] }
 0x486   : > { %3704 = vpow2.f32 %v2263_v56  ;;  %v7102_v56 = vld [vmem:[#allocation17_spill] sm:$0xff]  ;;  %v5859_v31 = vsel %vm1621_vm5, %v7104_v1, -1e+30 }
 0x487   : > { %2465 = vadd.xlane.f32.xlu0 %v5827_v5  ;;  %2467 = vadd.xlane.f32.xlu2 %v5825_v22  ;;  %3706 = vrcp.f32 %v7098_v63  ;;  %v2289_v53 = vmul.f32 1.442695, %v2105_v48  ;;  %7105 = vst [vmem:[#allocation46_spill] sm:$0xff] %v5859_v31  ;;  %v7110_v63 = vld [vmem:[#allocation81_spill] sm:$0xff] }
 0x488   : > { %1991 = vmax.xlane.f32.xlu1 %v5833_v59  ;;  %3708 = vrcp.f32 %v5712_v19  ;;  %v7107_v19 = vld [vmem:[#allocation126_spill] sm:$0xff] }
 0x489   : > { %2973 = vmatpush.xpose.msra.mxu3 %v2843_v42  ;;  %v5854_v42 = vsel %vm1620_vm3, %v7102_v56, -1e+30  ;;  %3710 = vpow2.f32 %v2289_v53  ;;  %v2106_v48 = vsub.f32 %v7108_v9, %v7107_v19  ;;  %v7112_v19 = vld [vmem:[#allocation117_spill] sm:$0xff] }
 0x48a   : > { %v3701_v10 = vpop.eup %3700  ;;  %v5844_v15 = vpop.xlane.xlu1 %2033  ;;  %7103 = vst [vmem:[#allocation23_spill] sm:$0xff] %v5854_v42  ;;  %3712 = vrcp.f32 %v5686_v44  ;;  %v5880_v9 = vsel %vm1621_vm5, %v7112_v19, -1e+30  ;;  %v7114_v44 = vld [vmem:[#allocation93_spill] sm:$0xff] }
 0x48b   : > { %v5842_v41 = vpop.xlane.xlu2 %1999  ;;  %v2864_v47 = vmul.f32 %v3701_v10, %v7100_v46  ;;  %v3703_v17 = vpop.eup %3702  ;;  %v7109_v10 = vld [vmem:[#allocation137_spill] sm:$0xff]  ;;  %7113 = vst [vmem:[#allocation18_spill] sm:$0xff] %v5880_v9  ;;  %3714 = vrcp.f32 %v5682_v7 }
 0x48c   : > { %7099 = vst [vmem:[#allocation10_spill] sm:$0xff] %v5842_v41  ;;  %v5861_v46 = vpop.eup %3704  ;;  %v2144_v56 = vsub.f32 %v7110_v63, %v7109_v10  ;;  %v5888_v10 = vsel %vm1619_vm4, %v7114_v44, -1e+30 }
 0x48d   : > { %2991 = vmatpush.xpose.msrb.mxu1 %v2864_v47  ;;  %2974 = vmatpush.xpose.msra.mxu3 %v2842_v8  ;;  %v7106_v47 = vld [vmem:[#allocation78_spill] sm:$0xff]  ;;  %v3707_v8 = vpop.eup %3706  ;;  %7115 = vst [vmem:[#allocation116_spill] sm:$0xff] %v5888_v10 }
 0x48e   : > { %v2841_v33 = vmul.f32 %v3703_v17, %v7106_v47  ;;  %v3709_v20 = vpop.eup %3708  ;;  %v2291_v17 = vmul.f32 1.442695, %v2106_v48  ;;  %v2367_v47 = vmul.f32 1.442695, %v2144_v56  ;;  %v7117_v48 = vld [vmem:[#allocation114_spill] sm:$0xff]  ;;  %v7120_v56 = vld [vmem:[#allocation120_spill] sm:$0xff] }
 0x48f   : > { %1927 = vmax.xlane.f32.xlu0 %v5854_v42  ;;  %1929 = vmax.xlane.f32.xlu2 %v5859_v31  ;;  %v7111_v42 = vld [vmem:[#allocation73_spill] sm:$0xff]  ;;  %v5875_v53 = vpop.eup %3710  ;;  %v2104_v63 = vsub.f32 %v7118_v0, %v7117_v48  ;;  %v7124_v48 = vld [vmem:[#allocation136_spill] sm:$0xff] }
 0x490   : > { %2519 = vadd.xlane.f32.xlu1 %v5861_v46  ;;  %v2840_v31 = vmul.f32 %v3707_v8, %v7111_v42  ;;  %v7116_v42 = vld [vmem:[#allocation124_spill] sm:$0xff]  ;;  %v3713_v8 = vpop.eup %3712  ;;  %3716 = vpow2.f32 %v2291_v17 }
 0x491   : > { %2975 = vmatpush.xpose.msra.mxu3 %v2841_v33  ;;  %v5883_v33 = vpop.xlane.xlu0 %2031  ;;  %3718 = vpow2.f32 %v2367_v47  ;;  %v2838_v19 = vmul.f32 %v3713_v8, %v7120_v56  ;;  %v3715_v44 = vpop.eup %3714  ;;  %v2287_v57 = vmul.f32 1.442695, %v2104_v63  ;;  %v7125_v0 = vld [vmem:[#allocation80_spill] sm:$0xff] }
 0x492   : > { %v2472_v59 = vpop.xlane.xlu1 %2471  ;;  %v2143_v63 = vsub.f32 %v7125_v0, %v7124_v48 }
 0x493   : > { %v5872_v1 = vpop.xlane.xlu2 %2027  ;;  %3720 = vrcp.f32 %v2472_v59  ;;  %v7123_v59 = vld [vmem:[#allocation118_spill] sm:$0xff] }
 0x494   : > { %v2837_v47 = vmul.f32 %v3715_v44, %v7123_v59  ;;  %3722 = vpow2.f32 %v2287_v57  ;;  %v7129_v59 = vld [vmem:[#allocation90_spill] sm:$0xff] }
 0x495   : > { %2976 = vmatpush.xpose.msra.mxu3 %v2840_v31  ;;  %v2839_v31 = vmul.f32 %v3709_v20, %v7116_v42  ;;  %v7121_v20 = vld [vmem:[#allocation16_spill] sm:$0xff]  ;;  %v5929_v41 = vsel %vm1618_vm1, %v7129_v59, -1e+30 }
 0x496   : > { %v5904_v42 = vsel %vm1619_vm4, %v7121_v20, -1e+30  ;;  %7130 = vst [vmem:[#allocation31_spill] sm:$0xff] %v5929_v41 }
 0x497   : > { %2545 = vadd.xlane.f32.xlu0 %v5875_v53  ;;  %1961 = vmax.xlane.f32.xlu2 %v5880_v9  ;;  %v5899_v9 = vpop.eup %3716  ;;  %7122 = vst [vmem:[#allocation20_spill] sm:$0xff] %v5904_v42 }
 0x498   : > { %1989 = vmax.xlane.f32.xlu1 %v5888_v10  ;;  %v5906_v17 = vpop.eup %3718  ;;  %v2365_v10 = vmul.f32 1.442695, %v2143_v63 }
 0x499   : > { %2977 = vmatpush.xpose.msra.mxu3 %v2839_v31  ;;  %v3721_v31 = vpop.eup %3720  ;;  %v5911_v8 = vpop.xlane.xlu0 %2009 }
 0x49a   : > { %v2012_v45 = vpop.xlane.xlu1 %2011  ;;  %3724 = vpow2.f32 %v2365_v10 }
 0x49b   : > { %v5896_v7 = vpop.xlane.xlu2 %1997 }
 0x49c   : > { %7119 = vst [vmem:[#allocation50_spill] sm:$0xff] %v5896_v7  ;;  %v7127_v7 = vld [vmem:[#allocation96_spill] sm:$0xff] }
 0x49d   : > { %2978 = vmatpush.xpose.msra.mxu3 %v2838_v19  ;;  %v7126_v19 = vld [vmem:[#allocation143_spill] sm:$0xff]  ;;  %v5924_v57 = vsel %vm1617_vm2, %v7127_v7, -1e+30 }
 0x49e   : > { %v2836_v20 = vmul.f32 %v3721_v31, %v7126_v19  ;;  %7128 = vst [vmem:[#allocation94_spill] sm:$0xff] %v5924_v57  ;;  %v7132_v31 = vld [vmem:[#allocation148_spill] sm:$0xff] }
 0x49f   : > { %1925 = vmax.xlane.f32.xlu0 %v5904_v42  ;;  %2547 = vadd.xlane.f32.xlu2 %v5899_v9  ;;  %v5919_v42 = vpop.eup %3722  ;;  %v2158_v0 = vsub.f32 %v7132_v31, %v2012_v45 }
 0x4a0   : > { %2623 = vadd.xlane.f32.xlu1 %v5906_v17  ;;  %v5952_v10 = vpop.eup %3724 }
 0x4a1   : > { %2979 = vmatpush.xpose.msra.mxu3 %v2837_v47  ;;  %v7131_v47 = vld [vmem:[#allocation112_spill] sm:$0xff]  ;;  %v5938_v63 = vpop.xlane.xlu0 %2037  ;;  %v2395_v59 = vmul.f32 1.442695, %v2158_v0 }
 0x4a2   : > { %v2040_v44 = vpop.xlane.xlu1 %2039  ;;  %v2128_v48 = vsub.f32 %v7131_v47, %v5634_v12  ;;  %v5945_v12 = vsel %vm1620_vm3, %v7133_v34, -1e+30  ;;  %v7135_v47 = vld [vmem:[#allocation15_spill] sm:$0xff] }
 0x4a3   : > { %v5916_v56 = vpop.xlane.xlu2 %2007  ;;  %v2172_v7 = vsub.f32 %v5562_v39, %v2040_v44  ;;  %7134 = vst [vmem:[#allocation6_spill] sm:$0xff] %v5945_v12  ;;  %v5950_v45 = vsel %vm1618_vm1, %v7135_v47, -1e+30  ;;  %v7137_v39 = vld [vmem:[#allocation82_spill] sm:$0xff]  ;;  %v7138_v44 = vld [vmem:[#allocation32_spill] sm:$0xff] }
 0x4a4   : > { %7136 = vst [vmem:[#allocation5_spill] sm:$0xff] %v5950_v45 }
 0x4a5   : > { %2980 = vmatpush.xpose.msra.mxu3 %v2836_v20  ;;  %v2335_v20 = vmul.f32 1.442695, %v2128_v48  ;;  %v2423_v35 = vmul.f32 1.442695, %v2172_v7  ;;  %v2091_v48 = vsub.f32 %v7138_v44, %v7137_v39 }
 0x4a7   : > { %2543 = vadd.xlane.f32.xlu0 %v5919_v42  ;;  %2017 = vmax.xlane.f32.xlu2 %v5924_v57  ;;  %3726 = vpow2.f32 %v2335_v20  ;;  %v2261_v0 = vmul.f32 1.442695, %v2091_v48 }
 0x4a8   : > { %1987 = vmax.xlane.f32.xlu1 %v5929_v41  ;;  %3728 = vpow2.f32 %v2395_v59 }
 0x4a9   : > { %3730 = vpow2.f32 %v2423_v35 }
 0x4ab   : > { %v5940_v19 = vpop.xlane.xlu2 %2035 }
 0x4ad   : > { %v5961_v7 = vpop.eup %3726 }
 0x4ae   : > { %v5963_v20 = vpop.eup %3728 }
 0x4af   : > { %1923 = vmax.xlane.f32.xlu0 %v5950_v45  ;;  %1959 = vmax.xlane.f32.xlu2 %v5945_v12  ;;  %7140 = vst [vmem:[#allocation106_spill] sm:$0xff] %v5963_v20  ;;  %v5965_v47 = vpop.eup %3730 }
 0x4b0   : > { %2621 = vadd.xlane.f32.xlu1 %v5952_v10  ;;  %7141 = vst [vmem:[#allocation87_spill] sm:$0xff] %v5965_v47 }
 0x4b2   : > { %v2556_v4 = vpop.xlane.xlu0 %2555 }
 0x4b3   : > { %v5959_v34 = vpop.xlane.xlu2 %1933  ;;  %v2560_v31 = vpop.xlane.xlu1 %2559 }
 0x4b4   : > { %7139 = vst [vmem:[#allocation102_spill] sm:$0xff] %v5959_v34  ;;  %3732 = vrcp.f32 %v2560_v31 }
 0x4b5   : > { %3734 = vpow2.f32 %v2261_v0 }
 0x4b7   : > { %2651 = vadd.xlane.f32.xlu0 %v5963_v20  ;;  %2591 = vadd.xlane.f32.xlu2 %v5961_v7  ;;  %v7143_v20 = vld [vmem:[#allocation119_spill] sm:$0xff] }
 0x4b8   : > { %2679 = vadd.xlane.f32.xlu1 %v5965_v47  ;;  %v2127_v45 = vsub.f32 %v7143_v20, %v5684_v25 }
 0x4ba   : > { %v3733_v35 = vpop.eup %3732  ;;  %v2554_v59 = vpop.xlane.xlu0 %2553 }
 0x4bb   : > { %v2558_v39 = vpop.xlane.xlu2 %2557  ;;  %v5970_v44 = vpop.xlane.xlu1 %2023  ;;  %v2880_v48 = vmul.f32 %v3733_v35, %v5597_v14 }
 0x4bc   : > { %7142 = vst [vmem:[#allocation33_spill] sm:$0xff] %v5970_v44  ;;  %3736 = vrcp.f32 %v2558_v39  ;;  %v5973_v31 = vpop.eup %3734  ;;  %v2333_v39 = vmul.f32 1.442695, %v2127_v45 }
 0x4bd   : > { %3014 = vmatpush.xpose.msrb.mxu2 %v2880_v48  ;;  %3738 = vrcp.f32 %v2556_v4  ;;  %v7145_v4 = vld [vmem:[#allocation109_spill] sm:$0xff] }
 0x4be   : > { %3740 = vrcp.f32 %v2554_v59  ;;  %v5985_v44 = vsel %vm1619_vm4, %v7145_v4, -1e+30  ;;  %v7146_v59 = vld [vmem:[#allocation76_spill] sm:$0xff] }
 0x4bf   : > { %2517 = vadd.xlane.f32.xlu2 %v5973_v31  ;;  %3742 = vpow2.f32 %v2333_v39  ;;  %v7150_v39 = vld [vmem:[#allocation65_spill] sm:$0xff] }
 0x4c2   : > { %v3737_v0 = vpop.eup %3736  ;;  %v2016_v47 = vpop.xlane.xlu0 %2015 }
 0x4c3   : > { %v2014_v12 = vpop.xlane.xlu2 %2013  ;;  %v5978_v41 = vpop.xlane.xlu1 %1965  ;;  %v2879_v14 = vmul.f32 %v3737_v0, %v5613_v24  ;;  %v2160_v24 = vsub.f32 %v5643_v2, %v2016_v47  ;;  %v7149_v47 = vld [vmem:[#allocation121_spill] sm:$0xff] }
 0x4c4   : > { %7144 = vst [vmem:[#allocation142_spill] sm:$0xff] %v5978_v41  ;;  %v2159_v57 = vsub.f32 %v5639_v58, %v2014_v12  ;;  %v3739_v35 = vpop.eup %3738  ;;  %v7147_v41 = vld [vmem:[#allocation26_spill] sm:$0xff] }
 0x4c5   : > { %3015 = vmatpush.xpose.msrb.mxu2 %v2879_v14  ;;  %v2878_v25 = vmul.f32 %v3739_v35, %v5589_v36  ;;  %v3741_v20 = vpop.eup %3740  ;;  %v2090_v34 = vsub.f32 %v7147_v41, %v7146_v59  ;;  %v2399_v36 = vmul.f32 1.442695, %v2160_v24 }
 0x4c6   : > { %v2397_v48 = vmul.f32 1.442695, %v2159_v57  ;;  %v2877_v45 = vmul.f32 %v3741_v20, %v5615_v61  ;;  %v5996_v35 = vpop.eup %3742 }
 0x4c7   : > { %1957 = vmax.xlane.f32.xlu2 %v5985_v44  ;;  %v2259_v0 = vmul.f32 1.442695, %v2090_v34 }
 0x4c8   : > { %3744 = vpow2.f32 %v2397_v48 }
 0x4c9   : > { %3016 = vmatpush.xpose.msrb.mxu2 %v2878_v25 }
 0x4ca   : > { %v2526_v58 = vpop.xlane.xlu0 %2525 }
 0x4cb   : > { %v2042_v57 = vpop.xlane.xlu2 %2041  ;;  %v5992_v12 = vpop.xlane.xlu1 %2047  ;;  %3746 = vrcp.f32 %v2526_v58 }
 0x4cc   : > { %v2173_v62 = vsub.f32 %v5670_v51, %v2042_v57  ;;  %v2103_v51 = vsub.f32 %v7150_v39, %v7149_v47 }
 0x4cd   : > { %3017 = vmatpush.xpose.msrb.mxu2 %v2877_v45  ;;  %v7154_v45 = vld [vmem:[#allocation97_spill] sm:$0xff] }
 0x4ce   : > { %v2425_v14 = vmul.f32 1.442695, %v2173_v62  ;;  %v5998_v41 = vpop.eup %3744  ;;  %v2285_v59 = vmul.f32 1.442695, %v2103_v51  ;;  %v7153_v62 = vld [vmem:[#allocation151_spill] sm:$0xff]  ;;  %v7156_v51 = vld [vmem:[#allocation101_spill] sm:$0xff] }
 0x4cf   : > { %7148 = vst [vmem:[#allocation83_spill] sm:$0xff] %v5998_v41  ;;  %2589 = vadd.xlane.f32.xlu2 %v5996_v35  ;;  %2653 = vadd.xlane.f32.xlu0 %v5998_v41 }
 0x4d0   : > { %3748 = vpow2.f32 %v2425_v14 }
 0x4d1   : > { %3750 = vpow2.f32 %v2259_v0  ;;  %v3747_v2 = vpop.eup %3746 }
 0x4d2   : > { %3752 = vpow2.f32 %v2399_v36  ;;  %v2046_v61 = vpop.xlane.xlu0 %2045  ;;  %v2863_v48 = vmul.f32 %v3747_v2, %v5665_v28  ;;  %v2126_v28 = vsub.f32 %v7154_v45, %v7153_v62 }
 0x4d3   : > { %v2044_v34 = vpop.xlane.xlu2 %2043  ;;  %v2552_v4 = vpop.xlane.xlu1 %2551  ;;  %v2175_v62 = vsub.f32 %v5696_v18, %v2046_v61  ;;  %v7161_v18 = vld [vmem:[#allocation12_spill] sm:$0xff]  ;;  %v7162_v61 = vld [vmem:[#allocation123_spill] sm:$0xff] }
 0x4d4   : > { %v2174_v25 = vsub.f32 %v5692_v52, %v2044_v34  ;;  %3754 = vrcp.f32 %v2552_v4  ;;  %2992 = vmatpush.xpose.msrb.mxu1 %v2863_v48  ;;  %v2331_v47 = vmul.f32 1.442695, %v2126_v28  ;;  %v6029_v34 = vsel %vm1618_vm1, %v7156_v51, -1e+30  ;;  %v7157_v4 = vld [vmem:[#allocation71_spill] sm:$0xff] }
 0x4d5   : > { %v2429_v51 = vmul.f32 1.442695, %v2175_v62  ;;  %v2176_v62 = vsub.f32 %v5675_v16, %v5992_v12  ;;  %v7166_v12 = vld [vmem:[#allocation108_spill] sm:$0xff] }
 0x4d6   : > { %v6006_v20 = vpop.eup %3748  ;;  %v2427_v24 = vmul.f32 1.442695, %v2174_v25  ;;  %v7158_v25 = vld [vmem:[#allocation29_spill] sm:$0xff] }
 0x4d7   : > { %7151 = vst [vmem:[#allocation135_spill] sm:$0xff] %v6006_v20  ;;  %v6008_v58 = vpop.eup %3750  ;;  %2681 = vadd.xlane.f32.xlu1 %v6006_v20 }
 0x4d8   : > { %v6011_v57 = vpop.eup %3752  ;;  %2515 = vadd.xlane.f32.xlu2 %v6008_v58  ;;  %3756 = vpow2.f32 %v2427_v24 }
 0x4d9   : > { %7152 = vst [vmem:[#allocation98_spill] sm:$0xff] %v6011_v57  ;;  %2655 = vadd.xlane.f32.xlu0 %v6011_v57  ;;  %3758 = vpow2.f32 %v2285_v59  ;;  %v2089_v59 = vsub.f32 %v7158_v25, %v7157_v4  ;;  %v7160_v25 = vld [vmem:[#allocation86_spill] sm:$0xff] }
 0x4da   : > { %v3755_v52 = vpop.eup %3754  ;;  %v6017_v0 = vpop.xlane.xlu0 %1995  ;;  %3760 = vpow2.f32 %v2331_v47  ;;  %v6048_v47 = vsel %vm1617_vm2, %v7160_v25, -1e+30 }
 0x4db   : > { %v6019_v36 = vpop.xlane.xlu2 %1859  ;;  %v6021_v14 = vpop.xlane.xlu1 %2021  ;;  %v2876_v2 = vmul.f32 %v3755_v52, %v5699_v32  ;;  %v7159_v32 = vld [vmem:[#allocation149_spill] sm:$0xff]  ;;  %v2257_v28 = vmul.f32 1.442695, %v2089_v59  ;;  %v7163_v59 = vld [vmem:[#allocation62_spill] sm:$0xff] }
 0x4dc   : > { %v2171_v24 = vsub.f32 %v7159_v32, %v5938_v63  ;;  %v6054_v63 = vsel %vm1617_vm2, %v7161_v18, -1e+30  ;;  %v2142_v32 = vsub.f32 %v7163_v59, %v7162_v61  ;;  %v2431_v61 = vmul.f32 1.442695, %v2176_v62 }
 0x4dd   : > { %3018 = vmatpush.xpose.msrb.mxu2 %v2876_v2 }
 0x4de   : > { %v6024_v39 = vpop.eup %3756  ;;  %v2421_v2 = vmul.f32 1.442695, %v2171_v24  ;;  %v2363_v57 = vmul.f32 1.442695, %v2142_v32 }
 0x4df   : > { %7155 = vst [vmem:[#allocation84_spill] sm:$0xff] %v6024_v39  ;;  %v6031_v48 = vpop.eup %3758  ;;  %2683 = vadd.xlane.f32.xlu1 %v6024_v39 }
 0x4e0   : > { %1955 = vmax.xlane.f32.xlu2 %v6029_v34  ;;  %v6043_v4 = vpop.eup %3760 }
 0x4e1   : > { %2541 = vadd.xlane.f32.xlu0 %v6031_v48 }
 0x4e2   : > { %v2524_v50 = vpop.xlane.xlu0 %2523 }
 0x4e3   : > { %v2470_v45 = vpop.xlane.xlu2 %2469  ;;  %v6041_v52 = vpop.xlane.xlu1 %1963  ;;  %3762 = vrcp.f32 %v2524_v50 }
 0x4e4   : > { %3764 = vrcp.f32 %v2470_v45 }
 0x4e5   : > { %3766 = vpow2.f32 %v2257_v28 }
 0x4e6   : > { %3768 = vpow2.f32 %v2421_v2 }
 0x4e7   : > { %1985 = vmax.xlane.f32.xlu1 %v6048_v47  ;;  %3770 = vpow2.f32 %v2429_v51  ;;  %v7167_v51 = vld [vmem:[#allocation48_spill] sm:$0xff] }
 0x4e8   : > { %2587 = vadd.xlane.f32.xlu2 %v6043_v4  ;;  %v2102_v20 = vsub.f32 %v7167_v51, %v7166_v12  ;;  %v7172_v51 = vld [vmem:[#allocation67_spill] sm:$0xff] }
 0x4e9   : > { %1921 = vmax.xlane.f32.xlu0 %v6054_v63  ;;  %v3763_v24 = vpop.eup %3762 }
 0x4ea   : > { %v3765_v50 = vpop.eup %3764  ;;  %v6062_v45 = vpop.xlane.xlu0 %1993  ;;  %v2862_v25 = vmul.f32 %v3763_v24, %v5749_v60  ;;  %v7168_v60 = vld [vmem:[#allocation145_spill] sm:$0xff] }
 0x4eb   : > { %v6064_v28 = vpop.xlane.xlu2 %1931  ;;  %v2550_v18 = vpop.xlane.xlu1 %2549  ;;  %v2835_v41 = vmul.f32 %v3765_v50, %v5745_v54  ;;  %v2170_v54 = vsub.f32 %v5575_v11, %v5940_v19  ;;  %v2283_v50 = vmul.f32 1.442695, %v2102_v20  ;;  %v7169_v19 = vld [vmem:[#allocation95_spill] sm:$0xff] }
 0x4ec   : > { %3772 = vrcp.f32 %v2550_v18  ;;  %2993 = vmatpush.xpose.msrb.mxu1 %v2862_v25  ;;  %v6068_v2 = vpop.eup %3766 }
 0x4ed   : > { %2981 = vmatpush.xpose.msra.mxu3 %v2835_v41  ;;  %v6070_v59 = vpop.eup %3768  ;;  %3774 = vpow2.f32 %v2363_v57  ;;  %v2157_v41 = vsub.f32 %v7168_v60, %v5911_v8  ;;  %v2419_v57 = vmul.f32 1.442695, %v2170_v54  ;;  %v6093_v8 = vsel %vm1617_vm2, %v7169_v19, -1e+30  ;;  %v7173_v60 = vld [vmem:[#allocation28_spill] sm:$0xff] }
 0x4ee   : > { %7164 = vst [vmem:[#allocation25_spill] sm:$0xff] %v6070_v59  ;;  %v6072_v16 = vpop.eup %3770  ;;  %3776 = vpow2.f32 %v2431_v61  ;;  %v2088_v20 = vsub.f32 %v7173_v60, %v7172_v51 }
 0x4ef   : > { %7165 = vst [vmem:[#allocation58_spill] sm:$0xff] %v6072_v16  ;;  %2677 = vadd.xlane.f32.xlu1 %v6070_v59  ;;  %v2393_v12 = vmul.f32 1.442695, %v2157_v41 }
 0x4f0   : > { %2513 = vadd.xlane.f32.xlu2 %v6068_v2  ;;  %7170 = vst [vmem:[#allocation130_spill] sm:$0xff] %v6093_v8 }
 0x4f1   : > { %2685 = vadd.xlane.f32.xlu0 %v6072_v16 }
 0x4f2   : > { %v3773_v32 = vpop.eup %3772  ;;  %v2522_v24 = vpop.xlane.xlu0 %2521 }
 0x4f3   : > { %v6083_v62 = vpop.xlane.xlu2 %1857  ;;  %v6085_v25 = vpop.xlane.xlu1 %2019  ;;  %3778 = vrcp.f32 %v2522_v24  ;;  %v2875_v18 = vmul.f32 %v3773_v32, %v5781_v26  ;;  %v7174_v26 = vld [vmem:[#allocation150_spill] sm:$0xff]  ;;  %v7176_v32 = vld [vmem:[#allocation91_spill] sm:$0xff] }
 0x4f4   : > { %v6088_v11 = vpop.eup %3774  ;;  %3780 = vpow2.f32 %v2283_v50  ;;  %v2156_v54 = vsub.f32 %v7174_v26, %v5916_v56  ;;  %v2125_v24 = vsub.f32 %v7176_v32, %v7175_v30  ;;  %v2255_v50 = vmul.f32 1.442695, %v2088_v20  ;;  %v7180_v30 = vld [vmem:[#allocation47_spill] sm:$0xff] }
 0x4f5   : > { %3019 = vmatpush.xpose.msrb.mxu2 %v2875_v18  ;;  %v6095_v61 = vpop.eup %3776  ;;  %3782 = vpow2.f32 %v2419_v57 }
 0x4f6   : > { %7171 = vst [vmem:[#allocation138_spill] sm:$0xff] %v6095_v61  ;;  %3784 = vpow2.f32 %v2393_v12  ;;  %v2391_v59 = vmul.f32 1.442695, %v2156_v54  ;;  %v2329_v56 = vmul.f32 1.442695, %v2125_v24  ;;  %v7179_v12 = vld [vmem:[#allocation105_spill] sm:$0xff] }
 0x4f7   : > { %2619 = vadd.xlane.f32.xlu1 %v6088_v11  ;;  %v2101_v32 = vsub.f32 %v7180_v30, %v7179_v12  ;;  %v7182_v54 = vld [vmem:[#allocation122_spill] sm:$0xff] }
 0x4f8   : > { %1953 = vmax.xlane.f32.xlu2 %v6093_v8 }
 0x4f9   : > { %2687 = vadd.xlane.f32.xlu0 %v6095_v61  ;;  %v3779_v41 = vpop.eup %3778 }
 0x4fa   : > { %v2466_v18 = vpop.xlane.xlu0 %2465  ;;  %v2861_v51 = vmul.f32 %v3779_v41, %v5800_v49  ;;  %v6109_v39 = vpop.eup %3780  ;;  %v7181_v49 = vld [vmem:[#allocation21_spill] sm:$0xff]  ;;  %v7183_v41 = vld [vmem:[#allocation66_spill] sm:$0xff] }
 0x4fb   : > { %v2468_v19 = vpop.xlane.xlu2 %2467  ;;  %v6107_v60 = vpop.xlane.xlu1 %1991  ;;  %v2169_v20 = vsub.f32 %v7181_v49, %v5844_v15  ;;  %v2141_v24 = vsub.f32 %v7183_v41, %v7182_v54  ;;  %v7186_v41 = vld [vmem:[#allocation22_spill] sm:$0xff] }
 0x4fc   : > { %3786 = vrcp.f32 %v2468_v19  ;;  %2994 = vmatpush.xpose.msrb.mxu1 %v2861_v51  ;;  %v6111_v57 = vpop.eup %3782 }
 0x4fd   : > { %7177 = vst [vmem:[#allocation88_spill] sm:$0xff] %v6111_v57  ;;  %3788 = vrcp.f32 %v2466_v18  ;;  %v6113_v26 = vpop.eup %3784  ;;  %v2417_v16 = vmul.f32 1.442695, %v2169_v20 }
 0x4fe   : > { %7178 = vst [vmem:[#allocation17_spill] sm:$0xff] %v6113_v26  ;;  %3790 = vpow2.f32 %v2255_v50  ;;  %v2281_v50 = vmul.f32 1.442695, %v2101_v32  ;;  %v7187_v32 = vld [vmem:[#allocation139_spill] sm:$0xff] }
 0x4ff   : > { %2539 = vadd.xlane.f32.xlu1 %v6109_v39  ;;  %3792 = vpow2.f32 %v2391_v59  ;;  %v2361_v59 = vmul.f32 1.442695, %v2141_v24  ;;  %v2155_v20 = vsub.f32 %v7187_v32, %v5822_v37  ;;  %v7188_v24 = vld [vmem:[#allocation100_spill] sm:$0xff] }
 0x500   : > { %2675 = vadd.xlane.f32.xlu2 %v6111_v57  ;;  %3794 = vpow2.f32 %v2329_v56  ;;  %v7185_v56 = vld [vmem:[#allocation63_spill] sm:$0xff]  ;;  %v7192_v32 = vld [vmem:[#allocation56_spill] sm:$0xff] }
 0x501   : > { %2649 = vadd.xlane.f32.xlu0 %v6113_v26  ;;  %v2087_v26 = vsub.f32 %v7186_v41, %v7185_v56 }
 0x502   : > { %v3787_v18 = vpop.eup %3786  ;;  %v6124_v19 = vpop.xlane.xlu0 %1927 }
 0x503   : > { %v6126_v51 = vpop.xlane.xlu2 %1929  ;;  %v2520_v12 = vpop.xlane.xlu1 %2519  ;;  %v2834_v30 = vmul.f32 %v3787_v18, %v5825_v22  ;;  %v2124_v18 = vsub.f32 %v7188_v24, %v5584_v38  ;;  %v2253_v56 = vmul.f32 1.442695, %v2087_v26 }
 0x504   : > { %v3789_v57 = vpop.eup %3788  ;;  %3796 = vrcp.f32 %v2520_v12 }
 0x505   : > { %v6129_v15 = vpop.eup %3790  ;;  %2982 = vmatpush.xpose.msra.mxu3 %v2834_v30  ;;  %3798 = vpow2.f32 %v2281_v50  ;;  %v2833_v22 = vmul.f32 %v3789_v57, %v5827_v5  ;;  %v2389_v57 = vmul.f32 1.442695, %v2155_v20  ;;  %v7195_v20 = vld [vmem:[#allocation74_spill] sm:$0xff] }
 0x506   : > { %v6131_v49 = vpop.eup %3792  ;;  %3800 = vpow2.f32 %v2417_v16  ;;  %v2327_v16 = vmul.f32 1.442695, %v2124_v18 }
 0x507   : > { %7184 = vst [vmem:[#allocation19_spill] sm:$0xff] %v6131_v49  ;;  %v6133_v54 = vpop.eup %3794  ;;  %2511 = vadd.xlane.f32.xlu1 %v6129_v15  ;;  %3802 = vpow2.f32 %v2361_v59 }
 0x508   : > { %2647 = vadd.xlane.f32.xlu2 %v6131_v49  ;;  %v7189_v49 = vld [vmem:[#allocation34_spill] sm:$0xff]  ;;  %3804 = vpow2.f32 %v2253_v56 }
 0x509   : > { %2585 = vadd.xlane.f32.xlu0 %v6133_v54  ;;  %2983 = vmatpush.xpose.msra.mxu3 %v2833_v22  ;;  %v7191_v22 = vld [vmem:[#allocation113_spill] sm:$0xff]  ;;  %3806 = vpow2.f32 %v2389_v57 }
 0x50a   : > { %v3797_v12 = vpop.eup %3796  ;;  %v2546_v30 = vpop.xlane.xlu0 %2545  ;;  %v2100_v24 = vsub.f32 %v7192_v32, %v7191_v22  ;;  %3808 = vpow2.f32 %v2327_v16  ;;  %v7196_v32 = vld [vmem:[#allocation36_spill] sm:$0xff]  ;;  %v7198_v16 = vld [vmem:[#allocation111_spill] sm:$0xff] }
 0x50b   : > { %v6145_v50 = vpop.xlane.xlu2 %1961  ;;  %v6147_v41 = vpop.xlane.xlu1 %1989  ;;  %v2860_v5 = vmul.f32 %v3797_v12, %v5861_v46  ;;  %v7193_v46 = vld [vmem:[#allocation141_spill] sm:$0xff] }
 0x50c   : > { %2984 = vmatmul.f32.vlgmr.msra.gmra.mxu3 %v7189_v49  ;;  %v6151_v37 = vpop.eup %3798  ;;  %v2168_v26 = vsub.f32 %v7193_v46, %v5883_v33  ;;  %v7194_v49 = vld [vmem:[#allocation129_spill] sm:$0xff] }
 0x50d   : > { %2995 = vmatpush.xpose.msrb.mxu1 %v2860_v5  ;;  %v6153_v59 = vpop.eup %3800  ;;  %v2140_v18 = vsub.f32 %v7195_v20, %v7194_v49  ;;  %v2279_v5 = vmul.f32 1.442695, %v2100_v24  ;;  %v2086_v49 = vsub.f32 %v7198_v16, %v5632_v13 }
 0x50e   : > { %7190 = vst [vmem:[#allocation78_spill] sm:$0xff] %v6153_v59  ;;  %v6155_v38 = vpop.eup %3802  ;;  %v2415_v22 = vmul.f32 1.442695, %v2168_v26 }
 0x50f   : > { %2537 = vadd.xlane.f32.xlu1 %v6151_v37  ;;  %v6169_v57 = vpop.eup %3804  ;;  %v2251_v16 = vmul.f32 1.442695, %v2086_v49 }
 0x510   : > { %2673 = vadd.xlane.f32.xlu2 %v6153_v59  ;;  %v2359_v59 = vmul.f32 1.442695, %v2140_v18  ;;  %v6171_v33 = vpop.eup %3806 }
 0x511   : > { %2617 = vadd.xlane.f32.xlu0 %v6155_v38  ;;  %7197 = vst [vmem:[#allocation126_spill] sm:$0xff] %v6171_v33  ;;  %v6173_v46 = vpop.eup %3808 }
 0x512   : > { %v6166_v12 = vpop.xlane.xlu0 %1925 }
 0x513   : > { %v2548_v56 = vpop.xlane.xlu2 %2547  ;;  %v2624_v61 = vpop.xlane.xlu1 %2623 }
 0x514   : > { %3810 = vrcp.f32 %v2548_v56  ;;  %2987 = vmatmul.f32.gmra.mxu3 %v7196_v32 }
 0x515   : > { %3812 = vrcp.f32 %v2624_v61  ;;  %v7199_v61 = vld [vmem:[#allocation140_spill] sm:$0xff] }
 0x516   : > { %3814 = vrcp.f32 %v2546_v30  ;;  %v2154_v24 = vsub.f32 %v7199_v61, %v5848_v27  ;;  %v7200_v30 = vld [vmem:[#allocation99_spill] sm:$0xff] }
 0x517   : > { %3816 = vpow2.f32 %v2279_v5  ;;  %2509 = vadd.xlane.f32.xlu1 %v6169_v57  ;;  %v2123_v20 = vsub.f32 %v7200_v30, %v5582_v43 }
 0x518   : > { %2645 = vadd.xlane.f32.xlu2 %v6171_v33  ;;  %3818 = vpow2.f32 %v2415_v22  ;;  %v2387_v22 = vmul.f32 1.442695, %v2154_v24 }
 0x519   : > { %2583 = vadd.xlane.f32.xlu0 %v6173_v46  ;;  %3820 = vpow2.f32 %v2359_v59  ;;  %v2325_v59 = vmul.f32 1.442695, %v2123_v20 }
 0x51a   : > { %v3811_v26 = vpop.eup %3810  ;;  %v2544_v56 = vpop.xlane.xlu0 %2543 }
 0x51b   : > { %v3813_v18 = vpop.eup %3812  ;;  %v6184_v5 = vpop.xlane.xlu2 %2017  ;;  %v2874_v13 = vmul.f32 %v3811_v26, %v5899_v9  ;;  %3822 = vrcp.f32 %v2544_v56  ;;  %v7202_v9 = vld [vmem:[#allocation103_spill] sm:$0xff] }
 0x51c   : > { %v3815_v32 = vpop.eup %3814  ;;  %v6187_v33 = vpop.xlane.xlu1 %1987  ;;  %v2912_v27 = vmul.f32 %v3813_v18, %v5906_v17  ;;  %v2099_v49 = vsub.f32 %v7202_v9, %v5586_v29  ;;  %3824 = vpow2.f32 %v2251_v16  ;;  %v7203_v17 = vld [vmem:[#allocation133_spill] sm:$0xff]  ;;  %v7208_v9 = vld [vmem:[#allocation127_spill] sm:$0xff] }
 0x51d   : > { %3020 = vmatpush.xpose.msrb.mxu2 %v2874_v13  ;;  %v6190_v61 = vpop.eup %3816  ;;  %v2873_v30 = vmul.f32 %v3815_v32, %v5875_v53  ;;  %v2167_v24 = vsub.f32 %v7203_v17, %v5796_v6  ;;  %3826 = vpow2.f32 %v2387_v22  ;;  %v7204_v53 = vld [vmem:[#allocation107_spill] sm:$0xff] }
 0x51e   : > { %3060 = vmatpush.xpose.msra.mxu0 %v2912_v27  ;;  %v6192_v43 = vpop.eup %3818  ;;  %3828 = vpow2.f32 %v2325_v59  ;;  %v2139_v20 = vsub.f32 %v7204_v53, %v5606_v3  ;;  %v2277_v56 = vmul.f32 1.442695, %v2099_v49  ;;  %v7206_v59 = vld [vmem:[#allocation13_spill] sm:$0xff]  ;;  %v2122_v49 = vsub.f32 %v7208_v9, %v5742_v21  ;;  %v7211_v21 = vld [vmem:[#allocation144_spill] sm:$0xff] }
 0x51f   : > { %7201 = vst [vmem:[#allocation69_spill] sm:$0xff] %v6192_v43  ;;  %v6195_v8 = vpop.eup %3820  ;;  %2535 = vadd.xlane.f32.xlu1 %v6190_v61  ;;  %v2413_v32 = vmul.f32 1.442695, %v2167_v24  ;;  %v2085_v3 = vsub.f32 %v7206_v59, %v5662_v23  ;;  %v7213_v59 = vld [vmem:[#allocation41_spill] sm:$0xff] }
 0x520   : > { %2671 = vadd.xlane.f32.xlu2 %v6192_v43  ;;  %v2357_v6 = vmul.f32 1.442695, %v2139_v20 }
 0x521   : > { %2615 = vadd.xlane.f32.xlu0 %v6195_v8  ;;  %3021 = vmatpush.xpose.msrb.mxu2 %v2873_v30  ;;  %v3823_v26 = vpop.eup %3822 }
 0x522   : > { %v2872_v29 = vmul.f32 %v3823_v26, %v5919_v42  ;;  %v6209_v16 = vpop.eup %3824  ;;  %v7207_v42 = vld [vmem:[#allocation131_spill] sm:$0xff]  ;;  %v2249_v26 = vmul.f32 1.442695, %v2085_v3 }
 0x523   : > { %v6206_v18 = vpop.xlane.xlu2 %1959  ;;  %v6211_v27 = vpop.eup %3826  ;;  %v2153_v30 = vsub.f32 %v7207_v42, %v5766_v55 }
 0x524   : > { %v2622_v13 = vpop.xlane.xlu1 %2621  ;;  %7205 = vst [vmem:[#allocation137_spill] sm:$0xff] %v6211_v27  ;;  %v6213_v22 = vpop.eup %3828 }
 0x525   : > { %3830 = vrcp.f32 %v2622_v13  ;;  %3022 = vmatpush.xpose.msrb.mxu2 %v2872_v29  ;;  %v2385_v23 = vmul.f32 1.442695, %v2153_v30  ;;  %v2323_v29 = vmul.f32 1.442695, %v2122_v49  ;;  %v7210_v13 = vld [vmem:[#allocation110_spill] sm:$0xff]  ;;  %v6240_v42 = vpop.xlane.xlu0 %1923 }
 0x526   : > { %3832 = vpow2.f32 %v2277_v56 }
 0x527   : > { %2507 = vadd.xlane.f32.xlu1 %v6209_v16  ;;  %3834 = vpow2.f32 %v2413_v32  ;;  %v2098_v32 = vsub.f32 %v7210_v13, %v5630_v40 }
 0x528   : > { %2643 = vadd.xlane.f32.xlu2 %v6211_v27  ;;  %3836 = vpow2.f32 %v2357_v6  ;;  %v7212_v6 = vld [vmem:[#allocation42_spill] sm:$0xff] }
 0x529   : > { %2581 = vadd.xlane.f32.xlu0 %v6213_v22  ;;  %v2138_v3 = vsub.f32 %v7213_v59, %v7212_v6  ;;  %v2275_v40 = vmul.f32 1.442695, %v2098_v32  ;;  %v7217_v32 = vld [vmem:[#allocation10_spill] sm:$0xff]  ;;  %v7219_v6 = vld [vmem:[#allocation68_spill] sm:$0xff]  ;;  %v7220_v59 = vld [vmem:[#allocation125_spill] sm:$0xff] }
 0x52b   : > { %v3831_v17 = vpop.eup %3830  ;;  %v2592_v24 = vpop.xlane.xlu2 %2591 }
 0x52c   : > { %v2911_v53 = vmul.f32 %v3831_v17, %v5952_v10  ;;  %v6225_v20 = vpop.eup %3832  ;;  %3838 = vrcp.f32 %v2592_v24  ;;  %v2166_v10 = vsub.f32 %v7211_v21, %v5872_v1  ;;  %v7218_v21 = vld [vmem:[#allocation55_spill] sm:$0xff] }
 0x52d   : > { %v6227_v56 = vpop.eup %3834  ;;  %3840 = vpow2.f32 %v2249_v26  ;;  %v2355_v26 = vmul.f32 1.442695, %v2138_v3  ;;  %v2121_v3 = vsub.f32 %v7220_v59, %v7219_v6  ;;  %v7224_v6 = vld [vmem:[#allocation132_spill] sm:$0xff] }
 0x52e   : > { %3061 = vmatpush.xpose.msra.mxu0 %v2911_v53  ;;  %7209 = vst [vmem:[#allocation81_spill] sm:$0xff] %v6227_v56  ;;  %v6229_v55 = vpop.eup %3836  ;;  %3842 = vpow2.f32 %v2385_v23  ;;  %v2411_v49 = vmul.f32 1.442695, %v2166_v10  ;;  %v7215_v23 = vld [vmem:[#allocation77_spill] sm:$0xff]  ;;  %v2152_v10 = vsub.f32 %v7218_v21, %v7217_v32  ;;  %v7228_v59 = vld [vmem:[#allocation128_spill] sm:$0xff] }
 0x52f   : > { %2533 = vadd.xlane.f32.xlu1 %v6225_v20  ;;  %3844 = vpow2.f32 %v2323_v29  ;;  %v7216_v29 = vld [vmem:[#allocation11_spill] sm:$0xff]  ;;  %v2321_v32 = vmul.f32 1.442695, %v2121_v3 }
 0x530   : > { %2669 = vadd.xlane.f32.xlu2 %v6227_v56  ;;  %v2084_v13 = vsub.f32 %v7216_v29, %v7215_v23  ;;  %v2383_v23 = vmul.f32 1.442695, %v2152_v10  ;;  %v7227_v10 = vld [vmem:[#allocation61_spill] sm:$0xff] }
 0x531   : > { %2613 = vadd.xlane.f32.xlu0 %v6229_v55  ;;  %v2137_v3 = vsub.f32 %v7228_v59, %v7227_v10  ;;  %v7236_v10 = vld [vmem:[#allocation147_spill] sm:$0xff] }
 0x532   : > { %v3839_v9 = vpop.eup %3838 }
 0x533   : > { %v2518_v30 = vpop.xlane.xlu2 %2517  ;;  %v2896_v17 = vmul.f32 %v3839_v9, %v5961_v7  ;;  %v6243_v24 = vpop.eup %3840 }
 0x534   : > { %3846 = vrcp.f32 %v2518_v30  ;;  %v6245_v53 = vpop.eup %3842 }
 0x535   : > { %7214 = vst [vmem:[#allocation73_spill] sm:$0xff] %v6245_v53  ;;  %3037 = vmatpush.xpose.msra.mxu3 %v2896_v17  ;;  %v6247_v1 = vpop.eup %3844  ;;  %3848 = vpow2.f32 %v2275_v40  ;;  %v2247_v40 = vmul.f32 1.442695, %v2084_v13  ;;  %v6261_v17 = vpop.xlane.xlu0 %2651  ;;  %v7226_v13 = vld [vmem:[#allocation8_spill] sm:$0xff] }
 0x536   : > { %3850 = vpow2.f32 %v2411_v49  ;;  %7221 = vst [vmem:[#allocation117_spill] sm:$0xff] %v6261_v17 }
 0x537   : > { %2505 = vadd.xlane.f32.xlu1 %v6243_v24  ;;  %3852 = vpow2.f32 %v2355_v26 }
 0x538   : > { %2641 = vadd.xlane.f32.xlu2 %v6245_v53  ;;  %3854 = vpow2.f32 %v2247_v40  ;;  %v7223_v53 = vld [vmem:[#allocation72_spill] sm:$0xff] }
 0x539   : > { %2579 = vadd.xlane.f32.xlu0 %v6247_v1  ;;  %v2165_v26 = vsub.f32 %v7224_v6, %v7223_v53  ;;  %3856 = vpow2.f32 %v2383_v23 }
 0x53a   : > { %v3847_v7 = vpop.eup %3846  ;;  %3858 = vpow2.f32 %v2321_v32  ;;  %v7234_v32 = vld [vmem:[#allocation9_spill] sm:$0xff] }
 0x53b   : > { %v6258_v30 = vpop.xlane.xlu2 %1957  ;;  %v2859_v9 = vmul.f32 %v3847_v7, %v5973_v31  ;;  %v6263_v29 = vpop.eup %3848  ;;  %v7225_v31 = vld [vmem:[#allocation43_spill] sm:$0xff]  ;;  %v2409_v27 = vmul.f32 1.442695, %v2165_v26  ;;  %v7235_v26 = vld [vmem:[#allocation50_spill] sm:$0xff] }
 0x53c   : > { %v6265_v49 = vpop.eup %3850  ;;  %v2097_v7 = vsub.f32 %v7226_v13, %v7225_v31  ;;  %v7233_v31 = vld [vmem:[#allocation14_spill] sm:$0xff]  ;;  %v2151_v59 = vsub.f32 %v7236_v10, %v7235_v26 }
 0x53d   : > { %2996 = vmatpush.xpose.msrb.mxu1 %v2859_v9  ;;  %7222 = vst [vmem:[#allocation93_spill] sm:$0xff] %v6265_v49  ;;  %v6267_v21 = vpop.eup %3852  ;;  %v6278_v9 = vpop.xlane.xlu1 %2679  ;;  %v2083_v13 = vsub.f32 %v7234_v32, %v7233_v31 }
 0x53e   : > { %7229 = vst [vmem:[#allocation124_spill] sm:$0xff] %v6278_v9  ;;  %v2273_v53 = vmul.f32 1.442695, %v2097_v7  ;;  %v6282_v6 = vpop.eup %3854 }
 0x53f   : > { %2531 = vadd.xlane.f32.xlu1 %v6263_v29  ;;  %v6284_v56 = vpop.eup %3856  ;;  %v2245_v31 = vmul.f32 1.442695, %v2083_v13 }
 0x540   : > { %2667 = vadd.xlane.f32.xlu2 %v6265_v49  ;;  %v2353_v49 = vmul.f32 1.442695, %v2137_v3  ;;  %7231 = vst [vmem:[#allocation57_spill] sm:$0xff] %v6284_v56  ;;  %v6286_v23 = vpop.eup %3858  ;;  %v7237_v3 = vld [vmem:[#allocation60_spill] sm:$0xff] }
 0x541   : > { %2611 = vadd.xlane.f32.xlu0 %v6267_v21  ;;  %7232 = vst [vmem:[#allocation120_spill] sm:$0xff] %v6286_v23 }
 0x542   : > { %v6280_v17 = vpop.xlane.xlu0 %2653 }
 0x543   : > { %v2590_v40 = vpop.xlane.xlu2 %2589  ;;  %7230 = vst [vmem:[#allocation114_spill] sm:$0xff] %v6280_v17 }
 0x544   : > { %3860 = vrcp.f32 %v2590_v40  ;;  %v7238_v40 = vld [vmem:[#allocation27_spill] sm:$0xff] }
 0x545   : > { %3862 = vpow2.f32 %v2409_v27  ;;  %v2120_v17 = vsub.f32 %v7238_v40, %v7237_v3  ;;  %v7244_v3 = vld [vmem:[#allocation24_spill] sm:$0xff] }
 0x546   : > { %3864 = vpow2.f32 %v2273_v53  ;;  %v2381_v53 = vmul.f32 1.442695, %v2151_v59  ;;  %v7247_v59 = vld [vmem:[#allocation134_spill] sm:$0xff] }
 0x547   : > { %2503 = vadd.xlane.f32.xlu1 %v6282_v6  ;;  %3866 = vpow2.f32 %v2353_v49  ;;  %v2319_v26 = vmul.f32 1.442695, %v2120_v17  ;;  %v7243_v49 = vld [vmem:[#allocation102_spill] sm:$0xff] }
 0x548   : > { %2639 = vadd.xlane.f32.xlu2 %v6284_v56  ;;  %v2119_v40 = vsub.f32 %v7244_v3, %v7243_v49  ;;  %v7246_v17 = vld [vmem:[#allocation30_spill] sm:$0xff] }
 0x549   : > { %2577 = vadd.xlane.f32.xlu0 %v6286_v23 }
 0x54a   : > { %v3861_v7 = vpop.eup %3860  ;;  %v6297_v43 = vpop.xlane.xlu1 %2681  ;;  %v2317_v3 = vmul.f32 1.442695, %v2119_v40  ;;  %v7252_v40 = vld [vmem:[#allocation33_spill] sm:$0xff] }
 0x54b   : > { %7239 = vst [vmem:[#allocation16_spill] sm:$0xff] %v6297_v43  ;;  %v2516_v9 = vpop.xlane.xlu2 %2515  ;;  %v2895_v27 = vmul.f32 %v3861_v7, %v5996_v35  ;;  %v6302_v56 = vpop.eup %3862  ;;  %v7245_v35 = vld [vmem:[#allocation51_spill] sm:$0xff]  ;;  %v2136_v7 = vsub.f32 %v7247_v59, %v7246_v17  ;;  %v7249_v17 = vld [vmem:[#allocation142_spill] sm:$0xff] }
 0x54c   : > { %v6300_v32 = vpop.xlane.xlu0 %2655  ;;  %3868 = vrcp.f32 %v2516_v9  ;;  %7241 = vst [vmem:[#allocation136_spill] sm:$0xff] %v6302_v56  ;;  %v6304_v10 = vpop.eup %3864  ;;  %v2082_v9 = vsub.f32 %v7245_v35, %v6019_v36  ;;  %v7250_v59 = vld [vmem:[#allocation38_spill] sm:$0xff] }
 0x54d   : > { %7240 = vst [vmem:[#allocation118_spill] sm:$0xff] %v6300_v32  ;;  %3038 = vmatpush.xpose.msra.mxu3 %v2895_v27  ;;  %v6306_v23 = vpop.eup %3866  ;;  %3870 = vpow2.f32 %v2245_v31  ;;  %v2351_v36 = vmul.f32 1.442695, %v2136_v7  ;;  %v2135_v43 = vsub.f32 %v7250_v59, %v7249_v17 }
 0x54e   : > { %7242 = vst [vmem:[#allocation80_spill] sm:$0xff] %v6306_v23  ;;  %3872 = vpow2.f32 %v2381_v53 }
 0x54f   : > { %2529 = vadd.xlane.f32.xlu1 %v6304_v10  ;;  %3874 = vpow2.f32 %v2319_v26 }
 0x550   : > { %2665 = vadd.xlane.f32.xlu2 %v6302_v56  ;;  %v2243_v56 = vmul.f32 1.442695, %v2082_v9  ;;  %v7253_v9 = vld [vmem:[#allocation152_spill] sm:$0xff] }
 0x551   : > { %2609 = vadd.xlane.f32.xlu0 %v6306_v23  ;;  %v2349_v23 = vmul.f32 1.442695, %v2135_v43  ;;  %v7257_v43 = vld [vmem:[#allocation45_spill] sm:$0xff] }
 0x552   : > { %v3869_v13 = vpop.eup %3868  ;;  %v6317_v27 = vpop.xlane.xlu1 %2683 }
 0x553   : > { %v6319_v31 = vpop.xlane.xlu2 %1955  ;;  %v2858_v49 = vmul.f32 %v3869_v13, %v6008_v58  ;;  %v6322_v53 = vpop.eup %3870  ;;  %v7251_v58 = vld [vmem:[#allocation52_spill] sm:$0xff]  ;;  %v2164_v13 = vsub.f32 %v7253_v9, %v7252_v40  ;;  %v7256_v40 = vld [vmem:[#allocation39_spill] sm:$0xff] }
 0x554   : > { %v2542_v32 = vpop.xlane.xlu0 %2541  ;;  %v6324_v35 = vpop.eup %3872  ;;  %v2163_v9 = vsub.f32 %v7256_v40, %v6021_v14 }
 0x555   : > { %3876 = vrcp.f32 %v2542_v32  ;;  %2997 = vmatpush.xpose.msrb.mxu1 %v2858_v49  ;;  %7248 = vst [vmem:[#allocation143_spill] sm:$0xff] %v6324_v35  ;;  %v6326_v26 = vpop.eup %3874  ;;  %v2118_v32 = vsub.f32 %v7251_v58, %v6064_v28  ;;  %v2407_v28 = vmul.f32 1.442695, %v2164_v13  ;;  %v7258_v13 = vld [vmem:[#allocation53_spill] sm:$0xff] }
 0x556   : > { %3878 = vpow2.f32 %v2317_v3 }
 0x557   : > { %2501 = vadd.xlane.f32.xlu1 %v6322_v53  ;;  %3880 = vpow2.f32 %v2243_v56  ;;  %v2315_v56 = vmul.f32 1.442695, %v2118_v32 }
 0x558   : > { %2637 = vadd.xlane.f32.xlu2 %v6324_v35  ;;  %3882 = vpow2.f32 %v2351_v36 }
 0x559   : > { %2575 = vadd.xlane.f32.xlu0 %v6326_v26 }
 0x55a   : > { %v6337_v49 = vpop.xlane.xlu1 %1985 }
 0x55b   : > { %v3877_v7 = vpop.eup %3876  ;;  %v2588_v3 = vpop.xlane.xlu2 %2587 }
 0x55c   : > { %v6339_v17 = vpop.xlane.xlu0 %1921  ;;  %3884 = vrcp.f32 %v2588_v3  ;;  %v2871_v59 = vmul.f32 %v3877_v7, %v6031_v48  ;;  %v6342_v35 = vpop.eup %3878  ;;  %v2134_v48 = vsub.f32 %v7257_v43, %v6041_v52  ;;  %v2150_v7 = vsub.f32 %v7258_v13, %v6017_v0  ;;  %v7259_v0 = vld [vmem:[#allocation7_spill] sm:$0xff] }
 0x55d   : > { %7254 = vst [vmem:[#allocation96_spill] sm:$0xff] %v6342_v35  ;;  %v6344_v58 = vpop.eup %3880  ;;  %3886 = vpow2.f32 %v2349_v23  ;;  %v2149_v43 = vsub.f32 %v7259_v0, %v6062_v45 }
 0x55e   : > { %3023 = vmatpush.xpose.msrb.mxu2 %v2871_v59  ;;  %7255 = vst [vmem:[#allocation90_spill] sm:$0xff] %v6344_v58  ;;  %v6346_v36 = vpop.eup %3882  ;;  %3888 = vpow2.f32 %v2315_v56  ;;  %v2405_v59 = vmul.f32 1.442695, %v2163_v9  ;;  %v2379_v52 = vmul.f32 1.442695, %v2150_v7 }
 0x55f   : > { %2573 = vadd.xlane.f32.xlu1 %v6342_v35  ;;  %3890 = vpow2.f32 %v2407_v28 }
 0x560   : > { %2499 = vadd.xlane.f32.xlu2 %v6344_v58  ;;  %v2347_v58 = vmul.f32 1.442695, %v2134_v48  ;;  %v7261_v48 = vld [vmem:[#allocation37_spill] sm:$0xff] }
 0x561   : > { %2607 = vadd.xlane.f32.xlu0 %v6346_v36 }
 0x562   : > { %v3885_v32 = vpop.eup %3884  ;;  %v6357_v3 = vpop.xlane.xlu1 %2677 }
 0x563   : > { %v2514_v23 = vpop.xlane.xlu2 %2513  ;;  %v2894_v14 = vmul.f32 %v3885_v32, %v6043_v4  ;;  %v6362_v35 = vpop.eup %3886  ;;  %v7260_v4 = vld [vmem:[#allocation35_spill] sm:$0xff]  ;;  %v2081_v32 = vsub.f32 %v7261_v48, %v6083_v62 }
 0x564   : > { %v6360_v40 = vpop.xlane.xlu0 %2685  ;;  %3892 = vrcp.f32 %v2514_v23  ;;  %v6364_v56 = vpop.eup %3888  ;;  %v2162_v9 = vsub.f32 %v7260_v4, %v6085_v25  ;;  %v7264_v62 = vld [vmem:[#allocation23_spill] sm:$0xff] }
 0x565   : > { %3039 = vmatpush.xpose.msra.mxu3 %v2894_v14  ;;  %v6366_v28 = vpop.eup %3890  ;;  %3894 = vpow2.f32 %v2405_v59  ;;  %v2377_v14 = vmul.f32 1.442695, %v2149_v43  ;;  %v2241_v25 = vmul.f32 1.442695, %v2081_v32  ;;  %v2116_v48 = vsub.f32 %v7264_v62, %v6124_v19  ;;  %v7265_v43 = vld [vmem:[#allocation18_spill] sm:$0xff] }
 0x566   : > { %3896 = vpow2.f32 %v2347_v58  ;;  %v2403_v59 = vmul.f32 1.442695, %v2162_v9  ;;  %v7266_v32 = vld [vmem:[#allocation46_spill] sm:$0xff] }
 0x567   : > { %2605 = vadd.xlane.f32.xlu1 %v6362_v35  ;;  %3898 = vpow2.f32 %v2379_v52 }
 0x568   : > { %2571 = vadd.xlane.f32.xlu2 %v6364_v56 }
 0x569   : > { %2663 = vadd.xlane.f32.xlu0 %v6366_v28 }
 0x56a   : > { %v2620_v13 = vpop.xlane.xlu1 %2619  ;;  %v3893_v23 = vpop.eup %3892 }
 0x56b   : > { %v6377_v7 = vpop.xlane.xlu2 %1953  ;;  %3900 = vrcp.f32 %v2620_v13  ;;  %v2857_v58 = vmul.f32 %v3893_v23, %v6068_v2  ;;  %v6382_v0 = vpop.eup %3894  ;;  %v2133_v2 = vsub.f32 %v7265_v43, %v6145_v50  ;;  %v2117_v13 = vsub.f32 %v7266_v32, %v6126_v51  ;;  %v7268_v51 = vld [vmem:[#allocation116_spill] sm:$0xff] }
 0x56c   : > { %v6379_v45 = vpop.xlane.xlu0 %2687  ;;  %7262 = vst [vmem:[#allocation112_spill] sm:$0xff] %v6382_v0  ;;  %v6384_v4 = vpop.eup %3896  ;;  %3902 = vpow2.f32 %v2377_v14  ;;  %v2147_v32 = vsub.f32 %v7268_v51, %v6147_v41 }
 0x56d   : > { %2998 = vmatpush.xpose.msrb.mxu1 %v2857_v58  ;;  %v6386_v52 = vpop.eup %3898  ;;  %3904 = vpow2.f32 %v2403_v59  ;;  %v2311_v58 = vmul.f32 1.442695, %v2116_v48  ;;  %v2345_v59 = vmul.f32 1.442695, %v2133_v2  ;;  %v2313_v50 = vmul.f32 1.442695, %v2117_v13 }
 0x56e   : > { %7263 = vst [vmem:[#allocation148_spill] sm:$0xff] %v6386_v52  ;;  %3906 = vpow2.f32 %v2241_v25 }
 0x56f   : > { %2661 = vadd.xlane.f32.xlu1 %v6382_v0 }
 0x570   : > { %2603 = vadd.xlane.f32.xlu2 %v6384_v4 }
 0x571   : > { %2635 = vadd.xlane.f32.xlu0 %v6386_v52  ;;  %v3901_v9 = vpop.eup %3900 }
 0x572   : > { %v2540_v23 = vpop.xlane.xlu1 %2539  ;;  %v2910_v19 = vmul.f32 %v3901_v9, %v6088_v11  ;;  %v6402_v0 = vpop.eup %3902  ;;  %v7269_v11 = vld [vmem:[#allocation94_spill] sm:$0xff]  ;;  %v7270_v9 = vld [vmem:[#allocation104_spill] sm:$0xff] }
 0x573   : > { %v6397_v14 = vpop.xlane.xlu2 %2675  ;;  %3908 = vrcp.f32 %v2540_v23  ;;  %7267 = vst [vmem:[#allocation115_spill] sm:$0xff] %v6402_v0  ;;  %v6404_v43 = vpop.eup %3904  ;;  %v2161_v48 = vsub.f32 %v7269_v11, %v6184_v5  ;;  %v2148_v13 = vsub.f32 %v7270_v9, %v6107_v60  ;;  %v7271_v60 = vld [vmem:[#allocation20_spill] sm:$0xff] }
 0x574   : > { %v6400_v62 = vpop.xlane.xlu0 %2649  ;;  %3062 = vmatpush.xpose.msra.mxu0 %v2910_v19  ;;  %v6406_v25 = vpop.eup %3906  ;;  %3910 = vpow2.f32 %v2311_v58  ;;  %v2373_v58 = vmul.f32 1.442695, %v2147_v32 }
 0x575   : > { %3912 = vpow2.f32 %v2345_v59  ;;  %v2375_v5 = vmul.f32 1.442695, %v2148_v13 }
 0x576   : > { %3914 = vpow2.f32 %v2313_v50  ;;  %v2115_v50 = vsub.f32 %v7271_v60, %v6166_v12 }
 0x577   : > { %2633 = vadd.xlane.f32.xlu1 %v6402_v0  ;;  %v2401_v0 = vmul.f32 1.442695, %v2161_v48 }
 0x578   : > { %2659 = vadd.xlane.f32.xlu2 %v6404_v43 }
 0x579   : > { %2497 = vadd.xlane.f32.xlu0 %v6406_v25  ;;  %v3909_v2 = vpop.eup %3908 }
 0x57a   : > { %v2512_v23 = vpop.xlane.xlu1 %2511  ;;  %v2870_v41 = vmul.f32 %v3909_v2, %v6109_v39  ;;  %v6420_v59 = vpop.eup %3910  ;;  %v7272_v39 = vld [vmem:[#allocation31_spill] sm:$0xff]  ;;  %v7273_v2 = vld [vmem:[#allocation6_spill] sm:$0xff] }
 0x57b   : > { %v6417_v19 = vpop.xlane.xlu2 %2647  ;;  %3916 = vrcp.f32 %v2512_v23  ;;  %v6422_v11 = vpop.eup %3912  ;;  %v2146_v32 = vsub.f32 %v7272_v39, %v6187_v33  ;;  %v2132_v9 = vsub.f32 %v7273_v2, %v6206_v18  ;;  %v7274_v2 = vld [vmem:[#allocation5_spill] sm:$0xff] }
 0x57c   : > { %v2586_v51 = vpop.xlane.xlu0 %2585  ;;  %3024 = vmatpush.xpose.msrb.mxu2 %v2870_v41  ;;  %v6424_v52 = vpop.eup %3914 }
 0x57d   : > { %3918 = vrcp.f32 %v2586_v51  ;;  %v2371_v33 = vmul.f32 1.442695, %v2146_v32  ;;  %v2131_v32 = vsub.f32 %v5985_v44, %v6258_v30  ;;  %v2130_v30 = vsub.f32 %v6029_v34, %v6319_v31 }
 0x57e   : > { %3920 = vpow2.f32 %v2373_v58  ;;  %v2309_v58 = vmul.f32 1.442695, %v2115_v50 }
 0x57f   : > { %2601 = vadd.xlane.f32.xlu1 %v6422_v11  ;;  %3922 = vpow2.f32 %v2401_v0 }
 0x580   : > { %2567 = vadd.xlane.f32.xlu2 %v6420_v59  ;;  %3924 = vpow2.f32 %v2375_v5  ;;  %v2343_v5 = vmul.f32 1.442695, %v2132_v9 }
 0x581   : > { %2569 = vadd.xlane.f32.xlu0 %v6424_v52  ;;  %v3917_v48 = vpop.eup %3916 }
 0x582   : > { %v2538_v23 = vpop.xlane.xlu1 %2537  ;;  %v2856_v12 = vmul.f32 %v3917_v48, %v6129_v15  ;;  %v2114_v15 = vsub.f32 %v7274_v2, %v6240_v42 }
 0x583   : > { %v3919_v13 = vpop.eup %3918  ;;  %v6435_v41 = vpop.xlane.xlu2 %2673  ;;  %3926 = vrcp.f32 %v2538_v23 }
 0x584   : > { %v2618_v51 = vpop.xlane.xlu0 %2617  ;;  %v2893_v60 = vmul.f32 %v3919_v13, %v6133_v54  ;;  %2999 = vmatpush.xpose.msrb.mxu1 %v2856_v12  ;;  %v6439_v0 = vpop.eup %3920  ;;  %v2145_v54 = vsub.f32 %v6048_v47, %v6337_v49  ;;  %v2307_v23 = vmul.f32 1.442695, %v2114_v15  ;;  %v2341_v49 = vmul.f32 1.442695, %v2131_v32 }
 0x585   : > { %3928 = vrcp.f32 %v2618_v51  ;;  %v6441_v39 = vpop.eup %3922 }
 0x586   : > { %3040 = vmatpush.xpose.msra.mxu3 %v2893_v60  ;;  %v6443_v18 = vpop.eup %3924  ;;  %3930 = vpow2.f32 %v2309_v58  ;;  %v2369_v51 = vmul.f32 1.442695, %v2145_v54 }
 0x587   : > { %2657 = vadd.xlane.f32.xlu1 %v6441_v39  ;;  %3932 = vpow2.f32 %v2371_v33 }
 0x588   : > { %2629 = vadd.xlane.f32.xlu2 %v6439_v0  ;;  %3934 = vpow2.f32 %v2343_v5 }
 0x589   : > { %2631 = vadd.xlane.f32.xlu0 %v6443_v18  ;;  %v3927_v50 = vpop.eup %3926 }
 0x58a   : > { %v2510_v9 = vpop.xlane.xlu1 %2509  ;;  %v2869_v42 = vmul.f32 %v3927_v50, %v6151_v37  ;;  %v2113_v37 = vsub.f32 %v6054_v63, %v6339_v17  ;;  %v2339_v17 = vmul.f32 1.442695, %v2130_v30 }
 0x58b   : > { %v3929_v48 = vpop.eup %3928  ;;  %v6454_v13 = vpop.xlane.xlu2 %2645  ;;  %3936 = vrcp.f32 %v2510_v9 }
 0x58c   : > { %v2584_v12 = vpop.xlane.xlu0 %2583  ;;  %v2909_v58 = vmul.f32 %v3929_v48, %v6155_v38  ;;  %3025 = vmatpush.xpose.msrb.mxu2 %v2869_v42  ;;  %v6458_v47 = vpop.eup %3930  ;;  %v2305_v32 = vmul.f32 1.442695, %v2113_v37 }
 0x58d   : > { %3938 = vrcp.f32 %v2584_v12  ;;  %v6460_v60 = vpop.eup %3932 }
 0x58e   : > { %3063 = vmatpush.xpose.msra.mxu0 %v2909_v58  ;;  %v6462_v44 = vpop.eup %3934  ;;  %3940 = vpow2.f32 %v2307_v23 }
 0x58f   : > { %2565 = vadd.xlane.f32.xlu1 %v6458_v47  ;;  %3942 = vpow2.f32 %v2369_v51 }
 0x590   : > { %2627 = vadd.xlane.f32.xlu2 %v6460_v60  ;;  %3944 = vpow2.f32 %v2341_v49 }
 0x591   : > { %2599 = vadd.xlane.f32.xlu0 %v6462_v44  ;;  %v3937_v38 = vpop.eup %3936 }
 0x592   : > { %v2536_v5 = vpop.xlane.xlu1 %2535  ;;  %v2855_v15 = vmul.f32 %v3937_v38, %v6169_v57 }
 0x593   : > { %v3939_v33 = vpop.eup %3938  ;;  %v6471_v2 = vpop.xlane.xlu2 %2671  ;;  %3946 = vrcp.f32 %v2536_v5 }
 0x594   : > { %v2616_v54 = vpop.xlane.xlu0 %2615  ;;  %v2892_v50 = vmul.f32 %v3939_v33, %v6173_v46  ;;  %3000 = vmatpush.xpose.msrb.mxu1 %v2855_v15  ;;  %v6475_v63 = vpop.eup %3940  ;;  %v7275_v46 = vld [vmem:[#allocation130_spill] sm:$0xff] }
 0x595   : > { %3948 = vrcp.f32 %v2616_v54  ;;  %v6477_v48 = vpop.eup %3942  ;;  %v2129_v31 = vsub.f32 %v7275_v46, %v6377_v7 }
 0x596   : > { %3041 = vmatpush.xpose.msra.mxu3 %v2892_v50  ;;  %v6479_v34 = vpop.eup %3944  ;;  %3950 = vpow2.f32 %v2305_v32 }
 0x597   : > { %2563 = vadd.xlane.f32.xlu1 %v6475_v63  ;;  %3952 = vpow2.f32 %v2339_v17  ;;  %v2337_v49 = vmul.f32 1.442695, %v2129_v31 }
 0x598   : > { %2625 = vadd.xlane.f32.xlu2 %v6477_v48 }
 0x599   : > { %2597 = vadd.xlane.f32.xlu0 %v6479_v34  ;;  %v3947_v57 = vpop.eup %3946 }
 0x59a   : > { %v2508_v42 = vpop.xlane.xlu1 %2507  ;;  %v2868_v12 = vmul.f32 %v3947_v57, %v6190_v61 }
 0x59b   : > { %v3949_v9 = vpop.eup %3948  ;;  %v6486_v23 = vpop.xlane.xlu2 %2643  ;;  %3954 = vrcp.f32 %v2508_v42 }
 0x59c   : > { %v2582_v58 = vpop.xlane.xlu0 %2581  ;;  %v2908_v51 = vmul.f32 %v3949_v9, %v6195_v8  ;;  %3026 = vmatpush.xpose.msrb.mxu2 %v2868_v12  ;;  %v6490_v37 = vpop.eup %3950 }
 0x59d   : > { %3956 = vrcp.f32 %v2582_v58  ;;  %v6492_v38 = vpop.eup %3952 }
 0x59e   : > { %3064 = vmatpush.xpose.msra.mxu0 %v2908_v51  ;;  %3958 = vpow2.f32 %v2337_v49 }
 0x59f   : > { %2561 = vadd.xlane.f32.xlu1 %v6490_v37 }
 0x5a1   : > { %2595 = vadd.xlane.f32.xlu0 %v6492_v38  ;;  %v3955_v7 = vpop.eup %3954 }
 0x5a2   : > { %v2534_v61 = vpop.xlane.xlu1 %2533  ;;  %v2854_v8 = vmul.f32 %v3955_v7, %v6209_v16 }
 0x5a3   : > { %v3957_v30 = vpop.eup %3956  ;;  %v6496_v33 = vpop.xlane.xlu2 %2669  ;;  %3960 = vrcp.f32 %v2534_v61 }
 0x5a4   : > { %v2614_v5 = vpop.xlane.xlu0 %2613  ;;  %v2891_v15 = vmul.f32 %v3957_v30, %v6213_v22  ;;  %3001 = vmatpush.xpose.msrb.mxu1 %v2854_v8  ;;  %v6500_v54 = vpop.eup %3958 }
 0x5a5   : > { %3962 = vrcp.f32 %v2614_v5 }
 0x5a6   : > { %3042 = vmatpush.xpose.msra.mxu3 %v2891_v15 }
 0x5a9   : > { %2593 = vadd.xlane.f32.xlu0 %v6500_v54  ;;  %v3961_v50 = vpop.eup %3960 }
 0x5aa   : > { %v2506_v17 = vpop.xlane.xlu1 %2505  ;;  %v2867_v46 = vmul.f32 %v3961_v50, %v6225_v20 }
 0x5ab   : > { %v3963_v32 = vpop.eup %3962  ;;  %v6503_v57 = vpop.xlane.xlu2 %2641  ;;  %3964 = vrcp.f32 %v2506_v17 }
 0x5ac   : > { %v2580_v16 = vpop.xlane.xlu0 %2579  ;;  %v2907_v31 = vmul.f32 %v3963_v32, %v6229_v55  ;;  %3027 = vmatpush.xpose.msrb.mxu2 %v2867_v46  ;;  %v7276_v46 = vld [vmem:[#allocation120_spill] sm:$0xff] }
 0x5ad   : > { %3966 = vrcp.f32 %v2580_v16 }
 0x5ae   : > { %3065 = vmatpush.xpose.msra.mxu0 %v2907_v31 }
 0x5b1   : > { %v3965_v22 = vpop.eup %3964 }
 0x5b2   : > { %v2532_v42 = vpop.xlane.xlu1 %2531  ;;  %v2853_v58 = vmul.f32 %v3965_v22, %v6243_v24 }
 0x5b3   : > { %v3967_v9 = vpop.eup %3966  ;;  %v6507_v12 = vpop.xlane.xlu2 %2667  ;;  %3968 = vrcp.f32 %v2532_v42  ;;  %v7277_v42 = vld [vmem:[#allocation80_spill] sm:$0xff] }
 0x5b4   : > { %v2612_v51 = vpop.xlane.xlu0 %2611  ;;  %v2890_v49 = vmul.f32 %v3967_v9, %v6247_v1  ;;  %3002 = vmatpush.xpose.msrb.mxu1 %v2853_v58 }
 0x5b5   : > { %3970 = vrcp.f32 %v2612_v51  ;;  %v7278_v51 = vld [vmem:[#allocation138_spill] sm:$0xff] }
 0x5b6   : > { %3043 = vmatpush.xpose.msra.mxu3 %v2890_v49 }
 0x5b9   : > { %v3969_v20 = vpop.eup %3968 }
 0x5ba   : > { %v2504_v55 = vpop.xlane.xlu1 %2503  ;;  %v2866_v61 = vmul.f32 %v3969_v20, %v6263_v29 }
 0x5bb   : > { %v3971_v7 = vpop.eup %3970  ;;  %v6511_v30 = vpop.xlane.xlu2 %2639  ;;  %3972 = vrcp.f32 %v2504_v55 }
 0x5bc   : > { %v2578_v8 = vpop.xlane.xlu0 %2577  ;;  %v2906_v5 = vmul.f32 %v3971_v7, %v6267_v21  ;;  %3028 = vmatpush.xpose.msrb.mxu2 %v2866_v61  ;;  %v7280_v7 = vld [vmem:[#allocation49_spill] sm:$0xff] }
 0x5bd   : > { %3974 = vrcp.f32 %v2578_v8 }
 0x5be   : > { %3066 = vmatpush.xpose.msra.mxu0 %v2906_v5  ;;  %3976 = vrcp.f32 %v6379_v45  ;;  %v7282_v5 = vld [vmem:[#allocation124_spill] sm:$0xff] }
 0x5c1   : > { %v3973_v24 = vpop.eup %3972 }
 0x5c2   : > { %v2530_v1 = vpop.xlane.xlu1 %2529  ;;  %v2852_v32 = vmul.f32 %v3973_v24, %v6282_v6 }
 0x5c3   : > { %v3975_v15 = vpop.eup %3974  ;;  %v6516_v50 = vpop.xlane.xlu2 %2665  ;;  %3978 = vrcp.f32 %v2530_v1 }
 0x5c4   : > { %v2610_v17 = vpop.xlane.xlu0 %2609  ;;  %v2889_v29 = vmul.f32 %v3975_v15, %v7276_v46  ;;  %3003 = vmatpush.xpose.msrb.mxu1 %v2852_v32  ;;  %v3977_v21 = vpop.eup %3976  ;;  %v7283_v46 = vld [vmem:[#allocation84_spill] sm:$0xff] }
 0x5c5   : > { %3980 = vrcp.f32 %v2610_v17  ;;  %v2944_v49 = vmul.f32 %v3977_v21, %v7278_v51 }
 0x5c6   : > { %3044 = vmatpush.xpose.msra.mxu3 %v2889_v29  ;;  %3982 = vrcp.f32 %v6360_v40  ;;  %v7279_v40 = vld [vmem:[#allocation16_spill] sm:$0xff] }
 0x5c7   : > { %3984 = vrcp.f32 %v6317_v27  ;;  %v7281_v27 = vld [vmem:[#allocation58_spill] sm:$0xff] }
 0x5c9   : > { %v3979_v16 = vpop.eup %3978 }
 0x5ca   : > { %v2502_v45 = vpop.xlane.xlu1 %2501  ;;  %v2865_v9 = vmul.f32 %v3979_v16, %v6304_v10  ;;  %v7284_v16 = vld [vmem:[#allocation54_spill] sm:$0xff] }
 0x5cb   : > { %v3981_v31 = vpop.eup %3980  ;;  %v6522_v22 = vpop.xlane.xlu2 %2637  ;;  %3986 = vrcp.f32 %v2502_v45 }
 0x5cc   : > { %v2576_v6 = vpop.xlane.xlu0 %2575  ;;  %v2905_v58 = vmul.f32 %v3981_v31, %v7277_v42  ;;  %v3983_v20 = vpop.eup %3982  ;;  %3029 = vmatpush.xpose.msrb.mxu2 %v2865_v9  ;;  %v7285_v31 = vld [vmem:[#allocation135_spill] sm:$0xff] }
 0x5cd   : > { %3988 = vrcp.f32 %v2576_v6  ;;  %v2943_v55 = vmul.f32 %v3983_v20, %v7281_v27  ;;  %v3985_v61 = vpop.eup %3984 }
 0x5ce   : > { %3067 = vmatpush.xpose.msra.mxu0 %v2905_v58  ;;  %3990 = vrcp.f32 %v7279_v40  ;;  %v2942_v29 = vmul.f32 %v3985_v61, %v7283_v46  ;;  %v7286_v58 = vld [vmem:[#allocation96_spill] sm:$0xff] }
 0x5cf   : > { %3030 = vmatmul.f32.vlgmr.msrb.gmra.mxu2 %v7280_v7  ;;  %3992 = vrcp.f32 %v7282_v5 }
 0x5d0   : > { %3106 = vmatpush.xpose.msra.mxu2 %v2944_v49 }
 0x5d1   : > { %v3987_v8 = vpop.eup %3986 }
 0x5d2   : > { %v2574_v24 = vpop.xlane.xlu1 %2573  ;;  %v2851_v1 = vmul.f32 %v3987_v8, %v6322_v53 }
 0x5d3   : > { %v3989_v10 = vpop.eup %3988  ;;  %v2500_v15 = vpop.xlane.xlu2 %2499  ;;  %3994 = vrcp.f32 %v2574_v24 }
 0x5d4   : > { %3107 = vmatpush.xpose.msra.mxu2 %v2943_v55  ;;  %v2608_v32 = vpop.xlane.xlu0 %2607  ;;  %v2888_v17 = vmul.f32 %v3989_v10, %v6326_v26  ;;  %v3991_v21 = vpop.eup %3990  ;;  %3004 = vmatpush.xpose.msrb.mxu1 %v2851_v1  ;;  %v7288_v55 = vld [vmem:[#allocation90_spill] sm:$0xff] }
 0x5d5   : > { %3996 = vrcp.f32 %v2608_v32  ;;  %v2941_v45 = vmul.f32 %v3991_v21, %v7285_v31  ;;  %v3993_v9 = vpop.eup %3992  ;;  %v7291_v21 = vld [vmem:[#allocation78_spill] sm:$0xff] }
 0x5d6   : > { %3998 = vrcp.f32 %v2500_v15  ;;  %3045 = vmatpush.xpose.msra.mxu3 %v2888_v17  ;;  %v7290_v17 = vld [vmem:[#allocation88_spill] sm:$0xff] }
 0x5d7   : > { %4000 = vrcp.f32 %v6357_v3  ;;  %3033 = vmatmul.f32.gmra.mxu2 %v7284_v16  ;;  %v7287_v3 = vld [vmem:[#allocation87_spill] sm:$0xff] }
 0x5d8   : > { %3108 = vmatpush.xpose.msra.mxu2 %v2942_v29  ;;  %4002 = vrcp.f32 %v6397_v14  ;;  %v2940_v7 = vmul.f32 %v3993_v9, %v7287_v3  ;;  %v7289_v14 = vld [vmem:[#allocation25_spill] sm:$0xff]  ;;  %v7292_v9 = vld [vmem:[#allocation118_spill] sm:$0xff] }
 0x5d9   : > { %v3995_v53 = vpop.eup %3994 }
 0x5da   : > { %v2606_v26 = vpop.xlane.xlu1 %2605  ;;  %v2887_v51 = vmul.f32 %v3995_v53, %v7286_v58 }
 0x5db   : > { %v3997_v6 = vpop.eup %3996  ;;  %v2572_v42 = vpop.xlane.xlu2 %2571  ;;  %4004 = vrcp.f32 %v2606_v26 }
 0x5dc   : > { %3109 = vmatpush.xpose.msra.mxu2 %v2941_v45  ;;  %v3999_v49 = vpop.eup %3998  ;;  %v2664_v20 = vpop.xlane.xlu0 %2663  ;;  %v2904_v40 = vmul.f32 %v3997_v6, %v6346_v36  ;;  %3046 = vmatpush.xpose.msra.mxu3 %v2887_v51  ;;  %4006 = vrcp.f32 %v2572_v42  ;;  %v7293_v6 = vld [vmem:[#allocation69_spill] sm:$0xff]  ;;  %v7294_v42 = vld [vmem:[#allocation114_spill] sm:$0xff] }
 0x5dd   : > { %v4001_v27 = vpop.eup %4000  ;;  %v2850_v61 = vmul.f32 %v3999_v49, %v7288_v55  ;;  %4008 = vrcp.f32 %v6435_v41 }
 0x5de   : > { %3068 = vmatpush.xpose.msra.mxu0 %v2904_v40  ;;  %v2939_v8 = vmul.f32 %v4001_v27, %v7289_v14  ;;  %v4003_v10 = vpop.eup %4002  ;;  %4010 = vrcp.f32 %v6471_v2  ;;  %v7296_v40 = vld [vmem:[#allocation117_spill] sm:$0xff] }
 0x5df   : > { %3005 = vmatpush.xpose.msrb.mxu1 %v2850_v61  ;;  %v2938_v46 = vmul.f32 %v4003_v10, %v7290_v17  ;;  %v7297_v61 = vld [vmem:[#allocation93_spill] sm:$0xff]  ;;  %v7300_v17 = vld [vmem:[#allocation40_spill] sm:$0xff] }
 0x5e0   : > { %3110 = vmatpush.xpose.msra.mxu2 %v2940_v7 }
 0x5e1   : > { %v4005_v5 = vpop.eup %4004 }
 0x5e2   : > { %v2662_v36 = vpop.xlane.xlu1 %2661  ;;  %v2903_v15 = vmul.f32 %v4005_v5, %v6362_v35  ;;  %v4007_v1 = vpop.eup %4006 }
 0x5e3   : > { %v2604_v24 = vpop.xlane.xlu2 %2603  ;;  %v4009_v29 = vpop.eup %4008  ;;  %v2886_v41 = vmul.f32 %v4007_v1, %v6364_v56 }
 0x5e4   : > { %3111 = vmatpush.xpose.msra.mxu2 %v2939_v8  ;;  %v6546_v32 = vpop.xlane.xlu0 %2635  ;;  %3069 = vmatpush.xpose.msra.mxu0 %v2903_v15  ;;  %4012 = vrcp.f32 %v2604_v24  ;;  %v2937_v2 = vmul.f32 %v4009_v29, %v7291_v21  ;;  %v4011_v16 = vpop.eup %4010  ;;  %v7298_v8 = vld [vmem:[#allocation98_spill] sm:$0xff] }
 0x5e5   : > { %4014 = vrcp.f32 %v6496_v33  ;;  %3047 = vmatpush.xpose.msra.mxu3 %v2886_v41  ;;  %v2936_v56 = vmul.f32 %v4011_v16, %v7293_v6 }
 0x5e6   : > { %4016 = vrcp.f32 %v6507_v12  ;;  %v7295_v12 = vld [vmem:[#allocation81_spill] sm:$0xff] }
 0x5e7   : > { %4018 = vrcp.f32 %v7292_v9 }
 0x5e8   : > { %3112 = vmatpush.xpose.msra.mxu2 %v2938_v46 }
 0x5ea   : > { %v6553_v35 = vpop.xlane.xlu1 %2633  ;;  %v4013_v45 = vpop.eup %4012 }
 0x5eb   : > { %v2660_v31 = vpop.xlane.xlu2 %2659  ;;  %v4015_v26 = vpop.eup %4014  ;;  %v2902_v33 = vmul.f32 %v4013_v45, %v6384_v4 }
 0x5ec   : > { %3113 = vmatpush.xpose.msra.mxu2 %v2937_v2  ;;  %v2498_v53 = vpop.xlane.xlu0 %2497  ;;  %v2935_v58 = vmul.f32 %v4015_v26, %v7295_v12  ;;  %v4017_v51 = vpop.eup %4016 }
 0x5ed   : > { %4020 = vrcp.f32 %v2498_v53  ;;  %3070 = vmatpush.xpose.msra.mxu0 %v2902_v33  ;;  %v4019_v49 = vpop.eup %4018  ;;  %v7302_v53 = vld [vmem:[#allocation106_spill] sm:$0xff]  ;;  %v7304_v33 = vld [vmem:[#allocation44_spill] sm:$0xff] }
 0x5ee   : > { %4022 = vrcp.f32 %v6516_v50  ;;  %v2934_v50 = vmul.f32 %v4017_v51, %v7297_v61  ;;  %v2928_v10 = vmul.f32 %v4019_v49, %v7298_v8 }
 0x5ef   : > { %4024 = vrcp.f32 %v7294_v42 }
 0x5f0   : > { %3114 = vmatpush.xpose.msra.mxu2 %v2936_v56  ;;  %4026 = vrcp.f32 %v7296_v40 }
 0x5f1   : > { %4028 = vrcp.f32 %v2664_v20  ;;  %v7299_v20 = vld [vmem:[#allocation136_spill] sm:$0xff] }
 0x5f2   : > { %v2602_v7 = vpop.xlane.xlu1 %2601 }
 0x5f3   : > { %v4021_v3 = vpop.eup %4020  ;;  %4030 = vrcp.f32 %v2602_v7  ;;  %v2568_v55 = vpop.xlane.xlu2 %2567 }
 0x5f4   : > { %3115 = vmatpush.xpose.msra.mxu2 %v2935_v58  ;;  %v2570_v27 = vpop.xlane.xlu0 %2569  ;;  %v2849_v4 = vmul.f32 %v4021_v3, %v6406_v25  ;;  %v4023_v14 = vpop.eup %4022  ;;  %v7301_v25 = vld [vmem:[#allocation83_spill] sm:$0xff] }
 0x5f5   : > { %4032 = vrcp.f32 %v2570_v27  ;;  %v4025_v5 = vpop.eup %4024  ;;  %v2933_v15 = vmul.f32 %v4023_v14, %v7299_v20  ;;  %v7307_v27 = vld [vmem:[#allocation126_spill] sm:$0xff] }
 0x5f6   : > { %4034 = vrcp.f32 %v2662_v36  ;;  %3006 = vmatpush.xpose.msrb.mxu1 %v2849_v4  ;;  %v4027_v24 = vpop.eup %4026  ;;  %v2927_v46 = vmul.f32 %v4025_v5, %v7301_v25 }
 0x5f7   : > { %4036 = vrcp.f32 %v2568_v55  ;;  %v4029_v1 = vpop.eup %4028  ;;  %v2926_v6 = vmul.f32 %v4027_v24, %v7302_v53  ;;  %v7310_v24 = vld [vmem:[#allocation73_spill] sm:$0xff]  ;;  %v7314_v53 = vld [vmem:[#allocation148_spill] sm:$0xff] }
 0x5f8   : > { %3116 = vmatpush.xpose.msra.mxu2 %v2934_v50  ;;  %4038 = vrcp.f32 %v6400_v62  ;;  %v2932_v45 = vmul.f32 %v4029_v1, %v6366_v28 }
 0x5f9   : > { %3007 = vmatmul.f32.vlgmr.msrb.gmra.mxu1 %v7300_v17  ;;  %v4031_v29 = vpop.eup %4030  ;;  %4040 = vrcp.f32 %v2660_v31 }
 0x5fa   : > { %3083 = vmatpush.xpose.msra.mxu1 %v2928_v10  ;;  %v2658_v36 = vpop.xlane.xlu1 %2657  ;;  %v2901_v21 = vmul.f32 %v4031_v29, %v6422_v11  ;;  %4042 = vrcp.f32 %v6417_v19  ;;  %v7303_v19 = vld [vmem:[#allocation112_spill] sm:$0xff] }
 0x5fb   : > { %v4033_v41 = vpop.eup %4032  ;;  %4044 = vrcp.f32 %v2658_v36  ;;  %v2630_v5 = vpop.xlane.xlu2 %2629  ;;  %v7313_v36 = vld [vmem:[#allocation143_spill] sm:$0xff] }
 0x5fc   : > { %3117 = vmatpush.xpose.msra.mxu2 %v2933_v15  ;;  %v4035_v2 = vpop.eup %4034  ;;  %v6571_v16 = vpop.xlane.xlu0 %2631  ;;  %v2885_v62 = vmul.f32 %v4033_v41, %v6424_v52  ;;  %3071 = vmatpush.xpose.msra.mxu0 %v2901_v21  ;;  %4046 = vrcp.f32 %v6454_v13  ;;  %v7305_v52 = vld [vmem:[#allocation17_spill] sm:$0xff] }
 0x5fd   : > { %v4037_v9 = vpop.eup %4036  ;;  %v2931_v31 = vmul.f32 %v4035_v2, %v7303_v19  ;;  %4048 = vrcp.f32 %v6486_v23 }
 0x5fe   : > { %3084 = vmatpush.xpose.msra.mxu1 %v2927_v46  ;;  %v4039_v56 = vpop.eup %4038  ;;  %3048 = vmatpush.xpose.msra.mxu3 %v2885_v62  ;;  %v2884_v11 = vmul.f32 %v4037_v9, %v6420_v59  ;;  %v7306_v59 = vld [vmem:[#allocation19_spill] sm:$0xff]  ;;  %v7311_v46 = vld [vmem:[#allocation92_spill] sm:$0xff] }
 0x5ff   : > { %v4041_v26 = vpop.eup %4040  ;;  %v2925_v28 = vmul.f32 %v4039_v56, %v7305_v52  ;;  %v7317_v52 = vld [vmem:[#allocation64_spill] sm:$0xff] }
 0x600   : > { %3118 = vmatpush.xpose.msra.mxu2 %v2932_v45  ;;  %v4043_v42 = vpop.eup %4042  ;;  %v2930_v13 = vmul.f32 %v4041_v26, %v6404_v43 }
 0x601   : > { %3010 = vmatmul.f32.gmra.mxu1 %v7304_v33  ;;  %v4045_v51 = vpop.eup %4044  ;;  %v2924_v49 = vmul.f32 %v4043_v42, %v7306_v59  ;;  %v7321_v59 = vld [vmem:[#allocation85_spill] sm:$0xff] }
 0x602   : > { %3085 = vmatpush.xpose.msra.mxu1 %v2926_v6  ;;  %3049 = vmatpush.xpose.msra.mxu3 %v2884_v11  ;;  %v2566_v12 = vpop.xlane.xlu1 %2565  ;;  %v4047_v40 = vpop.eup %4046  ;;  %v2929_v3 = vmul.f32 %v4045_v51, %v6441_v39  ;;  %v7309_v39 = vld [vmem:[#allocation137_spill] sm:$0xff]  ;;  %v7316_v11 = vld [vmem:[#allocation115_spill] sm:$0xff] }
 0x603   : > { %4050 = vrcp.f32 %v2566_v12  ;;  %v4049_v7 = vpop.eup %4048  ;;  %v2923_v23 = vmul.f32 %v4047_v40, %v7307_v27  ;;  %v2628_v62 = vpop.xlane.xlu2 %2627  ;;  %v7320_v51 = vld [vmem:[#allocation79_spill] sm:$0xff] }
 0x604   : > { %3119 = vmatpush.xpose.msra.mxu2 %v2931_v31  ;;  %v2600_v58 = vpop.xlane.xlu0 %2599  ;;  %v2922_v8 = vmul.f32 %v4049_v7, %v7309_v39  ;;  %v2962_v7 = vpop.f32.mrf.mxu3 }
 0x605   : > { %4052 = vrcp.f32 %v2600_v58 }
 0x606   : > { %3086 = vmatpush.xpose.msra.mxu1 %v2925_v28  ;;  %4054 = vrcp.f32 %v6503_v57  ;;  %v7308_v57 = vld [vmem:[#allocation89_spill] sm:$0xff]  ;;  %v7318_v28 = vld [vmem:[#allocation70_spill] sm:$0xff] }
 0x607   : > { %4056 = vrcp.f32 %v6511_v30 }
 0x608   : > { %3120 = vmatpush.xpose.msra.mxu2 %v2930_v13 }
 0x609   : > { %v4051_v55 = vpop.eup %4050 }
 0x60a   : > { %3087 = vmatpush.xpose.msra.mxu1 %v2924_v49  ;;  %v2564_v43 = vpop.xlane.xlu1 %2563  ;;  %v2883_v61 = vmul.f32 %v4051_v55, %v6458_v47 }
 0x60b   : > { %v4053_v4 = vpop.eup %4052  ;;  %4058 = vrcp.f32 %v2564_v43 }
 0x60c   : > { %3121 = vmatpush.xpose.msra.mxu2 %v2929_v3  ;;  %v2598_v50 = vpop.xlane.xlu0 %2597  ;;  %v2900_v14 = vmul.f32 %v4053_v4, %v6462_v44  ;;  %3050 = vmatpush.xpose.msra.mxu3 %v2883_v61  ;;  %v4055_v10 = vpop.eup %4054 }
 0x60d   : > { %4060 = vrcp.f32 %v2598_v50  ;;  %v4057_v30 = vpop.eup %4056  ;;  %v2921_v20 = vmul.f32 %v4055_v10, %v7310_v24  ;;  %v2965_v27 = vpop.f32.mrf.mxu3  ;;  %v3175_v50 = vld [vmem:[%s6725_s2 + $0x70] sm:$0xff]  ;;  %v3172_v10 = vld [vmem:[%s6725_s2 + $0x58] sm:$0xff]  ;;  %v3170_v24 = vld [vmem:[%s6725_s2 + $0x48] sm:$0xff] }
 0x60e   : > { %3088 = vmatpush.xpose.msra.mxu1 %v2923_v23  ;;  %3072 = vmatpush.xpose.msra.mxu0 %v2900_v14  ;;  %4062 = vrcp.f32 %v6522_v22  ;;  %v7312_v22 = vld [vmem:[#allocation57_spill] sm:$0xff] }
 0x60f   : > { %3122 = vmatmul.f32.vlgmr.msra.gmra.mxu2 %v7308_v57  ;;  %4064 = vrcp.f32 %v6546_v32  ;;  %v2920_v29 = vmul.f32 %v4057_v30, %v7312_v22  ;;  %v3174_v57 = vld [vmem:[%s6725_s2 + $0x68] sm:$0xff] }
 0x610   : > { %v3162_v22 = vld [vmem:[%s6725_s2 + $0x8] sm:$0xff] }
 0x611   : > { %v4059_v47 = vpop.eup %4058 }
 0x612   : > { %3089 = vmatpush.xpose.msra.mxu1 %v2922_v8  ;;  %v2562_v44 = vpop.xlane.xlu1 %2561  ;;  %v2882_v1 = vmul.f32 %v4059_v47, %v6475_v63  ;;  %v3173_v8 = vld [vmem:[%s6725_s2 + $0x60] sm:$0xff] }
 0x613   : > { %v4061_v15 = vpop.eup %4060  ;;  %4066 = vrcp.f32 %v2562_v44  ;;  %v3169_v47 = vld [vmem:[%s6725_s2 + $0x40] sm:$0xff]  ;;  %v3167_v44 = vld [vmem:[%s6725_s2 + $0x30] sm:$0xff] }
 0x614   : > { %v2596_v17 = vpop.xlane.xlu0 %2595  ;;  %v2899_v25 = vmul.f32 %v4061_v15, %v6479_v34  ;;  %3051 = vmatpush.xpose.msra.mxu3 %v2882_v1  ;;  %v4063_v41 = vpop.eup %4062  ;;  %v3168_v15 = vld [vmem:[%s6725_s2 + $0x38] sm:$0xff]  ;;  %v3166_v1 = vld [vmem:[%s6725_s2 + $0x28] sm:$0xff] }
 0x615   : > { %4068 = vrcp.f32 %v2596_v17  ;;  %v4065_v32 = vpop.eup %4064  ;;  %v2919_v21 = vmul.f32 %v4063_v41, %v7313_v36  ;;  %v2985_v23 = vpop.f32.mrf.mxu3  ;;  %v3165_v17 = vld [vmem:[%s6725_s2 + $0x20] sm:$0xff] }
 0x616   : > { %3090 = vmatpush.xpose.msra.mxu1 %v2921_v20  ;;  %3073 = vmatpush.xpose.msra.mxu0 %v2899_v25  ;;  %4070 = vrcp.f32 %v6553_v35  ;;  %v2918_v6 = vmul.f32 %v4065_v32, %v7314_v53  ;;  %v7315_v35 = vld [vmem:[#allocation59_spill] sm:$0xff]  ;;  %v3164_v25 = vld [vmem:[%s6725_s2 + $0x18] sm:$0xff]  ;;  %v3569_v41 = vld [vmem:[%s6726_s3] ss:$0 sm:$0xff] }
 0x617   : > { %3125 = vmatmul.f32.gmra.mxu2 %v7311_v46  ;;  %4072 = vrcp.f32 %v6571_v16  ;;  %v2626_v16 = vpop.xlane.xlu2 %2625  ;;  %v3163_v46 = vld [vmem:[%s6725_s2 + $0x10] sm:$0xff] }
 0x619   : > { %v4067_v2 = vpop.eup %4066 }
 0x61a   : > { %3091 = vmatpush.xpose.msra.mxu1 %v2920_v29  ;;  %v2881_v34 = vmul.f32 %v4067_v2, %v6490_v37  ;;  %v3161_v29 = vld [vmem:[%s6725_s2] sm:$0xff] }
 0x61b   : > { %v4069_v63 = vpop.eup %4068 }
 0x61c   : > { %v2594_v45 = vpop.xlane.xlu0 %2593  ;;  %v2898_v9 = vmul.f32 %v4069_v63, %v6492_v38  ;;  %3052 = vmatpush.xpose.msra.mxu3 %v2881_v34  ;;  %v4071_v56 = vpop.eup %4070 }
 0x61d   : > { %4074 = vrcp.f32 %v2594_v45  ;;  %v2917_v19 = vmul.f32 %v4071_v56, %v7316_v11  ;;  %v4073_v31 = vpop.eup %4072  ;;  %v2988_v4 = vpop.f32.mrf.mxu3 }
 0x61e   : > { %3092 = vmatpush.xpose.msra.mxu1 %v2919_v21  ;;  %3074 = vmatpush.xpose.msra.mxu0 %v2898_v9  ;;  %4076 = vrcp.f32 %v2630_v5  ;;  %v2916_v38 = vmul.f32 %v4073_v31, %v6443_v18  ;;  %v3171_v5 = vld [vmem:[%s6725_s2 + $0x50] sm:$0xff] }
 0x61f   : > { %3053 = vmatmul.f32.vlgmr.msra.gmra.mxu3 %v7315_v35  ;;  %4078 = vrcp.f32 %v2628_v62 }
 0x620   : > { %4080 = vrcp.f32 %v2626_v16 }
 0x622   : > { %3093 = vmatpush.xpose.msra.mxu1 %v2918_v6 }
 0x623   : > { %v4075_v26 = vpop.eup %4074 }
 0x624   : > { %v2897_v37 = vmul.f32 %v4075_v26, %v6500_v54  ;;  %v4077_v33 = vpop.eup %4076  ;;  %v7319_v54 = vld [vmem:[#allocation75_spill] sm:$0xff] }
 0x625   : > { %v2915_v42 = vmul.f32 %v4077_v33, %v6439_v0  ;;  %v4079_v12 = vpop.eup %4078 }
 0x626   : > { %3094 = vmatpush.xpose.msra.mxu1 %v2917_v19  ;;  %3075 = vmatpush.xpose.msra.mxu0 %v2897_v37  ;;  %v2914_v58 = vmul.f32 %v4079_v12, %v6460_v60  ;;  %v4081_v13 = vpop.eup %4080 }
 0x627   : > { %3056 = vmatmul.f32.gmra.mxu3 %v7317_v52  ;;  %v2913_v18 = vmul.f32 %v4081_v13, %v6477_v48  ;;  %v3176_v48 = vld [vmem:[%s6725_s2 + $0x78] sm:$0xff] }
 0x629   : > { %3076 = vmatmul.f32.vlgmr.msra.gmra.mxu0 %v7318_v28 }
 0x62a   : > { %3095 = vmatpush.xpose.msra.mxu1 %v2916_v38 }
 0x62e   : > { %3096 = vmatpush.xpose.msra.mxu1 %v2915_v42 }
 0x631   : > { %3079 = vmatmul.f32.gmra.mxu0 %v7319_v54 }
 0x632   : > { %3097 = vmatpush.xpose.msra.mxu1 %v2914_v58 }
 0x636   : > { %3098 = vmatpush.xpose.msra.mxu1 %v2913_v18 }
 0x639   : > { %3099 = vmatmul.f32.vlgmr.msra.gmra.mxu1 %v7320_v51 }
 0x641   : > { %3102 = vmatmul.f32.gmra.mxu1 %v7321_v59 }
 0x652   : > { %v3031_v49 = vpop.f32.mrf.mxu2 }
 0x65a   : > { %v3034_v40 = vpop.f32.mrf.mxu2 }
 0x676   : > { %v3008_v60 = vpop.f32.mrf.mxu1 }
 0x67e   : > { %v3011_v55 = vpop.f32.mrf.mxu1 }
 0x692   : > { %v3123_v3 = vpop.f32.mrf.mxu2 }
 0x69a   : > { %v3126_v0 = vpop.f32.mrf.mxu2 }
 0x69b   : > { %3486 = vmatpush.lsf.msrb.mxu3 %v3126_v0 }
 0x69d   : > { %3487 = vmatpush.lsf.msrb.mxu3 %v3123_v3 }
 0x69f   : > { %3181 = vmatpush.msra.mxu3 %v3176_v48 }
 0x6a1   : > { %3182 = vmatpush.msra.mxu3 %v3175_v50 }
 0x6a2   : > { %v3054_v14 = vpop.f32.mrf.mxu3 }
 0x6a6   : > { %v3077_v61 = vpop.f32.mrf.mxu0 }
 0x6aa   : > { %v3057_v20 = vpop.f32.mrf.mxu3 }
 0x6ae   : > { %v3080_v30 = vpop.f32.mrf.mxu0 }
 0x6b6   : > { %v3100_v43 = vpop.f32.mrf.mxu1 }
 0x6be   : > { %v3103_v39 = vpop.f32.mrf.mxu1 }
 0x6bf   : > { %3488 = vmatpush.lsf.msrb.mxu3 %v3103_v39 }
 0x6c1   : > { %3183 = vmatpush.msra.mxu3 %v3174_v57 }
 0x6c3   : > { %3489 = vmatpush.lsf.msrb.mxu3 %v3100_v43 }
 0x6c5   : > { %3184 = vmatpush.msra.mxu3 %v3173_v8 }
 0x6c7   : > { %3490 = vmatpush.lsf.msrb.mxu3 %v3080_v30 }
 0x6c9   : > { %3185 = vmatpush.msra.mxu3 %v3172_v10 }
 0x6cb   : > { %3491 = vmatpush.lsf.msrb.mxu3 %v3077_v61 }
 0x6cd   : > { %3186 = vmatpush.msra.mxu3 %v3171_v5 }
 0x6cf   : > { %3492 = vmatpush.lsf.msrb.mxu3 %v3057_v20 }
 0x6d1   : > { %3187 = vmatpush.msra.mxu3 %v3170_v24 }
 0x6d3   : > { %3493 = vmatpush.lsf.msrb.mxu3 %v3054_v14 }
 0x6d5   : > { %3188 = vmatpush.msra.mxu3 %v3169_v47 }
 0x6d7   : > { %3494 = vmatpush.lsf.msrb.mxu3 %v3034_v40 }
 0x6d9   : > { %3189 = vmatpush.msra.mxu3 %v3168_v15 }
 0x6db   : > { %3495 = vmatpush.lsf.msrb.mxu3 %v3031_v49 }
 0x6dd   : > { %3190 = vmatpush.msra.mxu3 %v3167_v44 }
 0x6df   : > { %3496 = vmatpush.lsf.msrb.mxu3 %v3011_v55 }
 0x6e1   : > { %3191 = vmatpush.msra.mxu3 %v3166_v1 }
 0x6e3   : > { %3497 = vmatpush.lsf.msrb.mxu3 %v3008_v60 }
 0x6e5   : > { %3192 = vmatpush.msra.mxu3 %v3165_v17 }
 0x6e7   : > { %3498 = vmatpush.lsf.msrb.mxu3 %v2988_v4 }
 0x6e9   : > { %3193 = vmatpush.msra.mxu3 %v3164_v25 }
 0x6eb   : > { %3499 = vmatpush.lsf.msrb.mxu3 %v2985_v23 }
 0x6ed   : > { %3194 = vmatpush.msra.mxu3 %v3163_v46 }
 0x6ef   : > { %3500 = vmatpush.lsf.msrb.mxu3 %v2965_v27 }
 0x6f1   : > { %3195 = vmatpush.msra.mxu3 %v3162_v22 }
 0x6f3   : > { %3501 = vmatpush.lsf.msrb.mxu3 %v2962_v7 }
 0x6f4   : > { %3502 = vllmr.16.mxu3 }
 0x6f5   : > { %3196 = vmatpush.msra.mxu3 %v3161_v29 }
 0x715   : > { %3503 = vmatmul.lmr.bf16.vlgmr.msra.gmra.16.mxu3 }
 0x71d   : > { %3504 = vmatmul.lmr.bf16.gmra.16.mxu3 }
 0x725   : > { %3505 = vmatmul.lmr.bf16.gmra.16.mxu3 }
 0x72d   : > { %3506 = vmatmul.lmr.bf16.gmra.16.mxu3 }
 0x735   : > { %3507 = vmatmul.lmr.bf16.gmra.16.mxu3 }
 0x73d   : > { %3508 = vmatmul.lmr.bf16.gmra.16.mxu3 }
 0x745   : > { %3509 = vmatmul.lmr.bf16.gmra.16.mxu3 }
 0x74d   : > { %3510 = vmatmul.lmr.bf16.gmra.16.mxu3 }
 0x755   : > { %3511 = vmatmul.lmr.bf16.gmra.16.mxu3 }
 0x75d   : > { %3512 = vmatmul.lmr.bf16.gmra.16.mxu3 }
 0x765   : > { %3513 = vmatmul.lmr.bf16.gmra.16.mxu3 }
 0x76d   : > { %3514 = vmatmul.lmr.bf16.gmra.16.mxu3 }
 0x775   : > { %3515 = vmatmul.lmr.bf16.gmra.16.mxu3 }
 0x77d   : > { %3516 = vmatmul.lmr.bf16.gmra.16.mxu3 }
 0x785   : > { %3517 = vmatmul.lmr.bf16.gmra.16.mxu3 }
 0x78d   : > { %3518 = vmatmul.lmr.bf16.gmra.16.mxu3 }
 0x798   : > { %v3198_v32 = vpop.f32.mrf.mxu3 }
 0x799   : > { %v3199_v36 = vadd.f32 %v3569_v41, %v3198_v32 }
 0x79b   : > { %3246 = vst [vmem:[%s6671_s28] sm:$0xff] %v3199_v36 }
 0x7a0   : > { %v3201_v21 = vpop.f32.mrf.mxu3 }
 0x7a1   : > { %v3202_v2 = vadd.f32 %v3569_v41, %v3201_v21 }
 0x7a3   : > { %3247 = vst [vmem:[%s6671_s28 + $0x8] sm:$0xff] %v3202_v2 }
 0x7a8   : > { %v3204_v63 = vpop.f32.mrf.mxu3 }
 0x7a9   : > { %v3205_v62 = vadd.f32 %v3569_v41, %v3204_v63 }
 0x7ab   : > { %3248 = vst [vmem:[%s6671_s28 + $0x10] sm:$0xff] %v3205_v62 }
 0x7b0   : > { %v3207_v34 = vpop.f32.mrf.mxu3 }
 0x7b1   : > { %v3208_v45 = vadd.f32 %v3569_v41, %v3207_v34 }
 0x7b3   : > { %3249 = vst [vmem:[%s6671_s28 + $0x18] sm:$0xff] %v3208_v45 }
 0x7b8   : > { %v3210_v9 = vpop.f32.mrf.mxu3 }
 0x7b9   : > { %v3211_v53 = vadd.f32 %v3569_v41, %v3210_v9 }
 0x7bb   : > { %3250 = vst [vmem:[%s6671_s28 + $0x20] sm:$0xff] %v3211_v53 }
 0x7c0   : > { %v3213_v6 = vpop.f32.mrf.mxu3 }
 0x7c1   : > { %v3214_v56 = vadd.f32 %v3569_v41, %v3213_v6 }
 0x7c3   : > { %3251 = vst [vmem:[%s6671_s28 + $0x28] sm:$0xff] %v3214_v56 }
 0x7c8   : > { %v3216_v35 = vpop.f32.mrf.mxu3 }
 0x7c9   : > { %v3217_v11 = vadd.f32 %v3569_v41, %v3216_v35 }
 0x7cb   : > { %3252 = vst [vmem:[%s6671_s28 + $0x30] sm:$0xff] %v3217_v11 }
 0x7d0   : > { %v3219_v19 = vpop.f32.mrf.mxu3 }
 0x7d1   : > { %v3220_v31 = vadd.f32 %v3569_v41, %v3219_v19 }
 0x7d3   : > { %3253 = vst [vmem:[%s6671_s28 + $0x38] sm:$0xff] %v3220_v31 }
 0x7d8   : > { %v3222_v26 = vpop.f32.mrf.mxu3 }
 0x7d9   : > { %v3223_v37 = vadd.f32 %v3569_v41, %v3222_v26 }
 0x7db   : > { %3254 = vst [vmem:[%s6671_s28 + $0x40] sm:$0xff] %v3223_v37 }
 0x7e0   : > { %v3225_v16 = vpop.f32.mrf.mxu3 }
 0x7e1   : > { %v3226_v38 = vadd.f32 %v3569_v41, %v3225_v16 }
 0x7e3   : > { %3255 = vst [vmem:[%s6671_s28 + $0x48] sm:$0xff] %v3226_v38 }
 0x7e8   : > { %v3228_v33 = vpop.f32.mrf.mxu3 }
 0x7e9   : > { %v3229_v52 = vadd.f32 %v3569_v41, %v3228_v33 }
 0x7eb   : > { %3256 = vst [vmem:[%s6671_s28 + $0x50] sm:$0xff] %v3229_v52 }
 0x7f0   : > { %v3231_v28 = vpop.f32.mrf.mxu3 }
 0x7f1   : > { %v3232_v42 = vadd.f32 %v3569_v41, %v3231_v28 }
 0x7f3   : > { %3257 = vst [vmem:[%s6671_s28 + $0x58] sm:$0xff] %v3232_v42 }
 0x7f8   : > { %v3234_v12 = vpop.f32.mrf.mxu3 }
 0x7f9   : > { %v3235_v58 = vadd.f32 %v3569_v41, %v3234_v12 }
 0x7fb   : > { %3258 = vst [vmem:[%s6671_s28 + $0x60] sm:$0xff] %v3235_v58 }
 0x800   : > { %v3237_v13 = vpop.f32.mrf.mxu3 }
 0x801   : > { %v3238_v54 = vadd.f32 %v3569_v41, %v3237_v13 }
 0x803   : > { %3259 = vst [vmem:[%s6671_s28 + $0x68] sm:$0xff] %v3238_v54 }
 0x808   : > { %v3240_v18 = vpop.f32.mrf.mxu3 }
 0x809   : > { %v3241_v51 = vadd.f32 %v3569_v41, %v3240_v18 }
 0x80b   : > { %3260 = vst [vmem:[%s6671_s28 + $0x70] sm:$0xff] %v3241_v51 }
 0x810   : > { %v3243_v59 = vpop.f32.mrf.mxu3 }
 0x811   : > { %v3244_v49 = vadd.f32 %v3569_v41, %v3243_v59 }
 0x813   : > { %3261 = vst [vmem:[%s6671_s28 + $0x78] sm:$0xff] %v3244_v49 }
 0x814   : > { %4109 = shalt.err (!%p4106_p3)
}
 0x815   : > { %s4154_s20 = smov 128   ;;  %s4155_s23 = smov 8  }
 0x816   : > { %3519 = dma.vmem_to_hbm [thread:$0]  (%p4220_p5), %s3276_s7, 2048, %s3278_s8, %s3263_s9, %s4154_s20, %s4154_s20, %s4155_s23  }
 0x817 PF: > { %p3525_p4 = scmp.ge.s32.totalorder %s4144_s18, 2  ;;  %s3292_s27 = sand.u32 1, %s4132_s15  }
 0x818   : > { %s3293_s28 = scalar_lea.sflag [#allocation3], %s3292_s27 }
 0x819   : > { %p3522_p7 = pnand %p3525_p4, %p4224_p6 }
 0x81b   : > { %p3523_p8 = pneg %p3522_p7 }
 0x81d   : > { %4127 = dma.done.wait (%p3523_p8), %s3293_s28, 2048  }
 0x81e   : > { %4129 = vsyncadd (%p3523_p8), %s3293_s28, 4294965248  ;;  %p14_p9 = scmp.ge.s32.totalorder %s4207_s21, 4   ;;  %s7322_s15 = smov %s4136_s16 }
 0x81f   : > { %s7323_s16 = smov %s4140_s17  ;;  %s7324_s17 = smov %s4218_s24 }
 0x820   : > { %s7325_s18 = smov %s4207_s21  ;;  %16 = sbr.rel (!%p14_p9) target bundleno = 3 (0x3), region = 71 }
 0x825   :  { %3299 = vsyncpa [#allocation3], 1 }
 0x826   :  { %3301 = vsyncpa [#allocation3 + $0x1], 1 }

</bundles_post_ra>
